<compile_context>
chip_gen: v7x
topology: tpu7x:2x2x1
jax: 0.10.0
libtpu: 0.0.40
codegen_flags: <defaults>
</compile_context>

<pallas_src>
import jax
import jax.numpy as jnp
from jax.experimental import pallas as pl
from jax.experimental.pallas import tpu as pltpu


_BN_EPS = 1e-5
_LANE = 128


def _round_up(x, m):
    return ((x + m - 1) // m) * m


def _row_pack_factor():
    """G=2 row-packing (duplicated block-diagonal weights) fills the 256-deep
    MXU on v6e/v7x.  On 128-wide-MXU generations (v5e/v5p/v4/...) it only adds
    all-zero MXU tiles, so keep G=1 there."""
    kind = ""
    try:
        kind = jax.devices()[0].device_kind.lower()
    except Exception:
        pass
    for old_gen in ("v2", "v3", "v4", "v5"):
        if old_gen in kind:
            return 1
    return 2


def _choose_tile(rows, max_tile_rows):
    """Row-tile in packed-row units.  `rows` is a multiple of 128.  The tile
    must be a multiple of 128, divide `rows`, be <= max_tile_rows, and (when
    rows >= 256) leave at least 2 grid steps so both v7x TensorCores are used."""
    if rows <= _LANE:
        return rows
    tile = min(max_tile_rows, rows // 2)
    tile = max(_LANE, (tile // _LANE) * _LANE)
    while rows % tile != 0:
        tile -= _LANE
    return tile


def _blockdiag_dup(w):
    """(K, M) -> (2K, 2M) block-diagonal duplication (for G=2 row-packing)."""
    z = jnp.zeros_like(w)
    return jnp.concatenate(
        [jnp.concatenate([w, z], axis=1), jnp.concatenate([z, w], axis=1)],
        axis=0)


# ----------------------------------------------------------------------------
# Fused Pallas kernel: shared MLP + all branch hidden layers + all final layers
# ----------------------------------------------------------------------------
def _fused_head_kernel(x_ref, ws_ref, bs_ref, wh_ref, bh_ref, wf_ref, bf_ref,
                       o_ref):
    # bf16 cast happens in-kernel (VPU has plenty of slack); the wrapper never
    # makes an extra HBM round trip for the cast.
    x = x_ref[...].astype(jnp.bfloat16)
    # shared_mlp: Linear (BN scale pre-folded into W) + shift + ReLU
    h = jnp.dot(x, ws_ref[...], preferred_element_type=jnp.float32)
    h = jnp.maximum(h + bs_ref[...], 0.0)
    # all branch hidden layers, concatenated along the output-channel dim
    h = jnp.dot(h.astype(jnp.bfloat16), wh_ref[...],
                preferred_element_type=jnp.float32)
    h = jnp.maximum(h + bh_ref[...], 0.0)
    # all branch final layers: block-diagonal weight -> lane-dense output slab
    y = jnp.dot(h.astype(jnp.bfloat16), wf_ref[...],
                preferred_element_type=jnp.float32)
    o_ref[...] = (y + bf_ref[...]).astype(o_ref.dtype)


def _build_fused_call(rows, tile, gcin, gd, ghp, gcp, flops, bytes_accessed,
                      single_buffer_weights):
    def w_spec(shape):
        if single_buffer_weights:
            # Grid-invariant weights: one resident VMEM buffer is enough.
            return pl.BlockSpec(shape, lambda i: (0, 0),
                                pipeline_mode=pl.Buffered(1))
        return pl.BlockSpec(shape, lambda i: (0, 0))

    return pl.pallas_call(
        _fused_head_kernel,
        out_shape=jax.ShapeDtypeStruct((rows, gcp), jnp.float32),
        grid_spec=pltpu.PrefetchScalarGridSpec(
            num_scalar_prefetch=0,
            grid=(rows // tile,),
            in_specs=[
                pl.BlockSpec((tile, gcin), lambda i: (i, 0)),  # x tile (f32)
                w_spec((gcin, gd)),                            # shared W
                w_spec((1, gd)),                               # shared shift
                w_spec((gd, ghp)),                             # hidden W concat
                w_spec((1, ghp)),                              # hidden shift
                w_spec((ghp, gcp)),                            # final W block-diag
                w_spec((1, gcp)),                              # final bias
            ],
            out_specs=pl.BlockSpec((tile, gcp), lambda i: (i, 0)),
        ),
        compiler_params=pltpu.CompilerParams(
            dimension_semantics=("parallel",),
            vmem_limit_bytes=32 * 1024 * 1024,
        ),
        cost_estimate=pl.CostEstimate(flops=flops, transcendentals=0,
                                      bytes_accessed=bytes_accessed),
    )


def fused_forward(params, pixel_features, *, max_tile_rows=1024):
    """pixel_features: (N, Cin) f32 -> list of per-head dicts of (N, out_ch)."""
    N, Cin = pixel_features.shape
    G = params["pack_factor"]
    packed = params["packed"]
    w_shared, b_shared = packed["w_shared"], packed["b_shared"]
    w_hidden, b_hidden = packed["w_hidden"], packed["b_hidden"]
    w_final, b_final = packed["w_final"], packed["b_final"]

    gcin, gd = w_shared.shape
    ghp = w_hidden.shape[1]
    gcp = w_final.shape[1]
    cp = gcp // G
    assert gcin == G * Cin, (gcin, G, Cin)

    # Pad N only to a multiple of G*128 (caps padded-row MXU waste), then
    # row-pack G consecutive pixels into one kernel row (zero-copy reshape).
    pad_to = G * _LANE
    n_pad = _round_up(max(N, pad_to), pad_to)
    x = pixel_features
    if n_pad != N:
        x = jnp.pad(x, ((0, n_pad - N), (0, 0)))
    rows = n_pad // G
    x = x.reshape(rows, gcin)

    tile = _choose_tile(rows, max_tile_rows)

    d, hp = gd // G, ghp // G
    flops = 2 * n_pad * (Cin * d + d * hp + hp * cp)
    weight_bytes = sum(int(a.size) * a.dtype.itemsize
                       for a in (w_shared, b_shared, w_hidden, b_hidden,
                                 w_final, b_final))
    bytes_accessed = int(x.size) * 4 + weight_bytes + rows * gcp * 4

    args = (x, w_shared, b_shared, w_hidden, b_hidden, w_final, b_final)
    try:
        out = _build_fused_call(rows, tile, gcin, gd, ghp, gcp, flops,
                                bytes_accessed,
                                single_buffer_weights=True)(*args)
    except Exception:
        # Fallback if pl.Buffered(1) is rejected by this jax/libtpu version.
        out = _build_fused_call(rows, tile, gcin, gd, ghp, gcp, flops,
                                bytes_accessed,
                                single_buffer_weights=False)(*args)

    # Un-pack rows (zero-copy row-major reshape), then a single narrow slice.
    # Per-branch views are taken from the small (N, cout_total) array instead
    # of repeatedly slicing the full lane-dense slab.
    out = out.reshape(n_pad, cp)[:N, :params["cout_total"]]
    pred_dicts = []
    for head_slices in params["slices"]:
        pred_dicts.append({name: out[:, s:e] for (name, s, e) in head_slices})
    return pred_dicts


# ----------------------------------------------------------------------------
# Deterministic parameter construction (mirrors the PyTorch __init__ shapes)
# and packing into the fused-kernel layout.
# ----------------------------------------------------------------------------
def build_params(key, input_channels, shared_mlp_channel, class_names_each_head,
                 head_dict, num_hm_conv, init_bias=-2.19):
    D = shared_mlp_channel
    k_shared, k_heads = jax.random.split(key)

    def bn_fold(k, cout):
        kg, kb, km, kv = jax.random.split(k, 4)
        gamma = 1.0 + 0.1 * jax.random.normal(kg, (cout,), jnp.float32)
        beta = 0.1 * jax.random.normal(kb, (cout,), jnp.float32)
        mean = 0.1 * jax.random.normal(km, (cout,), jnp.float32)
        var = jnp.abs(1.0 + 0.1 * jax.random.normal(kv, (cout,), jnp.float32))
        scale = gamma / jnp.sqrt(var + _BN_EPS)
        shift = beta - mean * scale
        return scale, shift

    def linear_bn_relu(k, cin, cout):
        # Linear(cin->cout, bias=False) + BatchNorm1d(cout) + ReLU,
        # BN scale folded into W columns, stored in bf16 (kernel dtype).
        kw, kbn = jax.random.split(k)
        w = jax.random.normal(kw, (cin, cout), jnp.float32) * jnp.sqrt(2.0 / cin)
        scale, shift = bn_fold(kbn, cout)
        return dict(w=(w * scale[None, :]).astype(jnp.bfloat16),
                    shift=shift.astype(jnp.float32), relu=True)

    def final_linear(k, cin, cout, bias_fill=None):
        # Linear(cin->cout, bias=True); 'hm' branch bias filled with init_bias.
        w = jax.random.normal(k, (cin, cout), jnp.float32) * jnp.sqrt(2.0 / cin)
        b = (jnp.full((cout,), bias_fill, jnp.float32) if bias_fill is not None
             else jnp.zeros((cout,), jnp.float32))
        return dict(w=w.astype(jnp.bfloat16), shift=b, relu=False)

    shared = linear_bn_relu(k_shared, input_channels, D)

    heads = []
    for h_idx, cur_class_names in enumerate(class_names_each_head):
        cur_head_dict = dict(head_dict)
        cur_head_dict["hm"] = dict(out_channels=len(cur_class_names),
                                   num_conv=num_hm_conv)
        hkey = jax.random.fold_in(k_heads, h_idx)
        branches = {}
        for b_idx, (name, cfg) in enumerate(cur_head_dict.items()):
            # TODO(synk): fused packing below assumes num_conv == 2 (one hidden
            # Linear+BN+ReLU then the final Linear); deeper stacks would need an
            # extra fused hidden matmul level.
            assert cfg["num_conv"] == 2, "fused kernel assumes num_conv == 2"
            bkey = jax.random.fold_in(hkey, b_idx)
            k_hid, k_fin = jax.random.split(bkey)
            # substring match mirrors the PyTorch `if 'hm' in cur_name` check
            branches[name] = dict(
                hidden=linear_bn_relu(k_hid, D, D),
                final=final_linear(k_fin, D, cfg["out_channels"],
                                   bias_fill=init_bias if "hm" in name else None),
            )
        heads.append(branches)

    # ---- pack all branches (across all heads) for the fused kernel ----
    branch_list = []
    for h_idx, branches in enumerate(heads):
        for name, layers in branches.items():
            branch_list.append((h_idx, name, layers))

    n_b = len(branch_list)
    Hp = _round_up(n_b * D, _LANE)                    # concat hidden width, padded
    cout_total = sum(int(l["final"]["w"].shape[1]) for (_, _, l) in branch_list)
    Cp = _round_up(cout_total, _LANE)                 # lane-dense output width

    w_hidden = jnp.zeros((D, Hp), jnp.float32)
    b_hidden = jnp.zeros((Hp,), jnp.float32)
    w_final = jnp.zeros((Hp, Cp), jnp.float32)
    b_final = jnp.zeros((Cp,), jnp.float32)
    slices = [[] for _ in heads]
    col = 0
    for b, (h_idx, name, layers) in enumerate(branch_list):
        r0 = b * D
        w_hidden = w_hidden.at[:, r0:r0 + D].set(
            layers["hidden"]["w"].astype(jnp.float32))
        b_hidden = b_hidden.at[r0:r0 + D].set(layers["hidden"]["shift"])
        cout = int(layers["final"]["w"].shape[1])
        w_final = w_final.at[r0:r0 + D, col:col + cout].set(
            layers["final"]["w"].astype(jnp.float32))
        b_final = b_final.at[col:col + cout].set(layers["final"]["shift"])
        slices[h_idx].append((name, col, col + cout))
        col += cout

    w_s = shared["w"]                                  # (Cin, D)  bf16
    b_s = shared["shift"].reshape(1, D)                # (1, D)    f32
    w_h = w_hidden.astype(jnp.bfloat16)                # (D, Hp)   bf16
    b_h = b_hidden.reshape(1, Hp)                      # (1, Hp)   f32
    w_f = w_final.astype(jnp.bfloat16)                 # (Hp, Cp)  bf16
    b_f = b_final.reshape(1, Cp)                       # (1, Cp)   f32

    # G=2 row-packing (v6e/v7x): duplicated block-diagonal weights so two
    # consecutive pixels share one MXU row-pass.  Numerically identical
    # (the extra blocks are exact zeros; f32 accumulation).
    G = _row_pack_factor()
    if G == 2:
        w_s, w_h, w_f = map(_blockdiag_dup, (w_s, w_h, w_f))
        b_s, b_h, b_f = (jnp.concatenate([b, b], axis=1) for b in (b_s, b_h, b_f))

    packed = dict(w_shared=w_s, b_shared=b_s, w_hidden=w_h, b_hidden=b_h,
                  w_final=w_f, b_final=b_f)
    return dict(shared=shared, heads=heads, packed=packed, pack_factor=G,
                slices=slices, cout_total=cout_total)


# ----------------------------------------------------------------------------
# Forward pass (matches SparseAnchorFreeHead.forward for inference)
# ----------------------------------------------------------------------------
def sparse_anchor_free_head_forward(params, pixel_features):
    """pixel_features: (N, C) -> list of pred dicts, one per separate head."""
    pred_dicts = fused_forward(params, pixel_features)
    # TODO(synk): generate_predicted_boxes (sigmoid + top-k heatmap decode,
    # score thresholding, class-agnostic NMS) and training-time assign_targets
    # are dynamic-shape, data-dependent post-processing with no clean Pallas
    # equivalent; intentionally not implemented here.
    return pred_dicts


# ----------------------------------------------------------------------------
# Pure-JAX reference (per-branch stacks, same bf16 weights / f32 accumulation)
# ----------------------------------------------------------------------------
def reference_forward(params, pixel_features):
    def apply(layer, x):
        y = jnp.dot(x.astype(jnp.bfloat16), layer["w"],
                    preferred_element_type=jnp.float32) + layer["shift"][None, :]
        return jnp.maximum(y, 0.0) if layer["relu"] else y

    x = apply(params["shared"], pixel_features)
    out = []
    for branches in params["heads"]:
        out.append({name: apply(l["final"], apply(l["hidden"], x))
                    for name, l in branches.items()})
    return out


# ----------------------------------------------------------------------------
if __name__ == "__main__":
    key = jax.random.PRNGKey(0)
    k_feat, k_param = jax.random.split(key)

    # Small synthetic configuration consistent with the module.  N is chosen
    # NOT to be a multiple of 128 to exercise the padding path.
    N = 200                       # number of active (sparse) pixels
    INPUT_CHANNELS = 32           # pixel feature channels
    SHARED_MLP_CHANNEL = 64
    NUM_HM_CONV = 2
    CLASS_NAMES_EACH_HEAD = [["car", "pedestrian", "cyclist"]]
    HEAD_DICT = {
        "center":   dict(out_channels=2, num_conv=2),
        "center_z": dict(out_channels=1, num_conv=2),
        "dim":      dict(out_channels=3, num_conv=2),
        "rot":      dict(out_channels=2, num_conv=2),
    }

    pixel_features = jax.random.normal(k_feat, (N, INPUT_CHANNELS), jnp.float32)
    params = build_params(k_param, INPUT_CHANNELS, SHARED_MLP_CHANNEL,
                          CLASS_NAMES_EACH_HEAD, HEAD_DICT, NUM_HM_CONV)

    pred_dicts = sparse_anchor_free_head_forward(params, pixel_features)
    pred_dicts = jax.block_until_ready(pred_dicts)

    # sanity check against pure-JAX reference
    ref_dicts = reference_forward(params, pixel_features)
    for pd, rd in zip(pred_dicts, ref_dicts):
        for name in rd:
            assert pd[name].shape == rd[name].shape, name
            assert jnp.allclose(pd[name], rd[name], atol=2e-3, rtol=2e-3), name

    print("KERNEL_OK")
</pallas_src>

<mosaic_0001>
module attributes {stable_mosaic.version = 11 : i64} {
  func.func @_fused_head_kernel(%arg0: i32, %arg1: memref<128x64xf32, #tpu.memory_space<vmem>>, %arg2: memref<64x128xbf16, #tpu.memory_space<vmem>>, %arg3: memref<1x128xf32, #tpu.memory_space<vmem>>, %arg4: memref<128x768xbf16, #tpu.memory_space<vmem>>, %arg5: memref<1x768xf32, #tpu.memory_space<vmem>>, %arg6: memref<768x256xbf16, #tpu.memory_space<vmem>>, %arg7: memref<1x256xf32, #tpu.memory_space<vmem>>, %arg8: memref<128x256xf32, #tpu.memory_space<vmem>>) attributes {dimension_semantics = [#tpu.dimension_semantics<parallel>], iteration_bounds = array<i64: 1>, scalar_prefetch = 0 : i64, scratch_operands = 0 : i64, tpu.core_type = #tpu.core_type<tc>, window_params = [{transform_indices = @transform_0, window_bounds = array<i64: 128, 64>}, {pipeline_mode = #tpu.pipeline_mode<synchronous>, transform_indices = @transform_1, window_bounds = array<i64: 64, 128>}, {pipeline_mode = #tpu.pipeline_mode<synchronous>, transform_indices = @transform_2, window_bounds = array<i64: 1, 128>}, {pipeline_mode = #tpu.pipeline_mode<synchronous>, transform_indices = @transform_3, window_bounds = array<i64: 128, 768>}, {pipeline_mode = #tpu.pipeline_mode<synchronous>, transform_indices = @transform_4, window_bounds = array<i64: 1, 768>}, {pipeline_mode = #tpu.pipeline_mode<synchronous>, transform_indices = @transform_5, window_bounds = array<i64: 768, 256>}, {pipeline_mode = #tpu.pipeline_mode<synchronous>, transform_indices = @transform_6, window_bounds = array<i64: 1, 256>}, {transform_indices = @transform_7, window_bounds = array<i64: 128, 256>}]} {
    %c0 = arith.constant 0 : index
    %c0_0 = arith.constant 0 : index
    %0 = vector.load %arg1[%c0, %c0_0] : memref<128x64xf32, #tpu.memory_space<vmem>>, vector<128x64xf32>
    %1 = arith.truncf %0 : vector<128x64xf32> to vector<128x64xbf16>
    %c0_1 = arith.constant 0 : index
    %c0_2 = arith.constant 0 : index
    %2 = vector.load %arg2[%c0_1, %c0_2] : memref<64x128xbf16, #tpu.memory_space<vmem>>, vector<64x128xbf16>
    %cst = arith.constant dense<0.000000e+00> : vector<128x128xf32>
    %3 = tpu.matmul %1, %2, %cst {dimension_numbers = #tpu.dot_dimension_numbers<[1], [0], [0], [1], [0, 0, 1, 1], [], []>} : vector<128x64xbf16>, vector<64x128xbf16>, vector<128x128xf32> -> vector<128x128xf32>
    %c0_3 = arith.constant 0 : index
    %c0_4 = arith.constant 0 : index
    %4 = vector.load %arg3[%c0_3, %c0_4] : memref<1x128xf32, #tpu.memory_space<vmem>>, vector<1x128xf32>
    %5 = vector.broadcast %4 : vector<1x128xf32> to vector<128x128xf32>
    %6 = arith.addf %3, %5 : vector<128x128xf32>
    %cst_5 = arith.constant 0.000000e+00 : f32
    %7 = vector.broadcast %cst_5 : f32 to vector<128x128xf32>
    %8 = arith.maximumf %6, %7 : vector<128x128xf32>
    %9 = arith.truncf %8 : vector<128x128xf32> to vector<128x128xbf16>
    %c0_6 = arith.constant 0 : index
    %c0_7 = arith.constant 0 : index
    %10 = vector.load %arg4[%c0_6, %c0_7] : memref<128x768xbf16, #tpu.memory_space<vmem>>, vector<128x768xbf16>
    %cst_8 = arith.constant dense<0.000000e+00> : vector<128x768xf32>
    %11 = tpu.matmul %9, %10, %cst_8 {dimension_numbers = #tpu.dot_dimension_numbers<[1], [0], [0], [1], [0, 0, 1, 1], [], []>} : vector<128x128xbf16>, vector<128x768xbf16>, vector<128x768xf32> -> vector<128x768xf32>
    %c0_9 = arith.constant 0 : index
    %c0_10 = arith.constant 0 : index
    %12 = vector.load %arg5[%c0_9, %c0_10] : memref<1x768xf32, #tpu.memory_space<vmem>>, vector<1x768xf32>
    %13 = vector.broadcast %12 : vector<1x768xf32> to vector<128x768xf32>
    %14 = arith.addf %11, %13 : vector<128x768xf32>
    %cst_11 = arith.constant 0.000000e+00 : f32
    %15 = vector.broadcast %cst_11 : f32 to vector<128x768xf32>
    %16 = arith.maximumf %14, %15 : vector<128x768xf32>
    %17 = arith.truncf %16 : vector<128x768xf32> to vector<128x768xbf16>
    %c0_12 = arith.constant 0 : index
    %c0_13 = arith.constant 0 : index
    %18 = vector.load %arg6[%c0_12, %c0_13] : memref<768x256xbf16, #tpu.memory_space<vmem>>, vector<768x256xbf16>
    %cst_14 = arith.constant dense<0.000000e+00> : vector<128x256xf32>
    %19 = tpu.matmul %17, %18, %cst_14 {dimension_numbers = #tpu.dot_dimension_numbers<[1], [0], [0], [1], [0, 0, 1, 1], [], []>} : vector<128x768xbf16>, vector<768x256xbf16>, vector<128x256xf32> -> vector<128x256xf32>
    %c0_15 = arith.constant 0 : index
    %c0_16 = arith.constant 0 : index
    %20 = vector.load %arg7[%c0_15, %c0_16] : memref<1x256xf32, #tpu.memory_space<vmem>>, vector<1x256xf32>
    %21 = vector.broadcast %20 : vector<1x256xf32> to vector<128x256xf32>
    %22 = arith.addf %19, %21 : vector<128x256xf32>
    %c0_17 = arith.constant 0 : index
    %c0_18 = arith.constant 0 : index
    %23 = vector.load %arg8[%c0_17, %c0_18] : memref<128x256xf32, #tpu.memory_space<vmem>>, vector<128x256xf32>
    tpu.vector_store %arg8[%c0_17, %c0_18], %22 {strides = array<i32>} : memref<128x256xf32, #tpu.memory_space<vmem>>, vector<128x256xf32>,
    return
  }
  func.func @transform_0(%arg0: i32) -> (i32, i32) {
    %c0_i32 = arith.constant 0 : i32
    %c0_i32_0 = arith.constant 0 : i32
    return %arg0, %c0_i32 : i32, i32
  }
  func.func @transform_1(%arg0: i32) -> (i32, i32) {
    %c0_i32 = arith.constant 0 : i32
    %c0_i32_0 = arith.constant 0 : i32
    %c0_i32_1 = arith.constant 0 : i32
    return %c0_i32, %c0_i32_0 : i32, i32
  }
  func.func @transform_2(%arg0: i32) -> (i32, i32) {
    %c0_i32 = arith.constant 0 : i32
    %c0_i32_0 = arith.constant 0 : i32
    %c0_i32_1 = arith.constant 0 : i32
    return %c0_i32, %c0_i32_0 : i32, i32
  }
  func.func @transform_3(%arg0: i32) -> (i32, i32) {
    %c0_i32 = arith.constant 0 : i32
    %c0_i32_0 = arith.constant 0 : i32
    %c0_i32_1 = arith.constant 0 : i32
    return %c0_i32, %c0_i32_0 : i32, i32
  }
  func.func @transform_4(%arg0: i32) -> (i32, i32) {
    %c0_i32 = arith.constant 0 : i32
    %c0_i32_0 = arith.constant 0 : i32
    %c0_i32_1 = arith.constant 0 : i32
    return %c0_i32, %c0_i32_0 : i32, i32
  }
  func.func @transform_5(%arg0: i32) -> (i32, i32) {
    %c0_i32 = arith.constant 0 : i32
    %c0_i32_0 = arith.constant 0 : i32
    %c0_i32_1 = arith.constant 0 : i32
    return %c0_i32, %c0_i32_0 : i32, i32
  }
  func.func @transform_6(%arg0: i32) -> (i32, i32) {
    %c0_i32 = arith.constant 0 : i32
    %c0_i32_0 = arith.constant 0 : i32
    %c0_i32_1 = arith.constant 0 : i32
    return %c0_i32, %c0_i32_0 : i32, i32
  }
  func.func @transform_7(%arg0: i32) -> (i32, i32) {
    %c0_i32 = arith.constant 0 : i32
    %c0_i32_0 = arith.constant 0 : i32
    return %arg0, %c0_i32 : i32, i32
  }
}

module attributes {stable_mosaic.version = 11 : i64} {
  func.func @_fused_head_kernel(%arg0: i32, %arg1: memref<128x64xf32, #tpu.memory_space<vmem>>, %arg2: memref<64x128xbf16, #tpu.memory_space<vmem>>, %arg3: memref<1x128xf32, #tpu.memory_space<vmem>>, %arg4: memref<128x768xbf16, #tpu.memory_space<vmem>>, %arg5: memref<1x768xf32, #tpu.memory_space<vmem>>, %arg6: memref<768x256xbf16, #tpu.memory_space<vmem>>, %arg7: memref<1x256xf32, #tpu.memory_space<vmem>>, %arg8: memref<128x256xf32, #tpu.memory_space<vmem>>) attributes {dimension_semantics = [#tpu.dimension_semantics<parallel>], iteration_bounds = array<i64: 1>, scalar_prefetch = 0 : i64, scratch_operands = 0 : i64, tpu.core_type = #tpu.core_type<tc>, window_params = [{transform_indices = @transform_0, window_bounds = array<i64: 128, 64>}, {pipeline_mode = #tpu.pipeline_mode<synchronous>, transform_indices = @transform_1, window_bounds = array<i64: 64, 128>}, {pipeline_mode = #tpu.pipeline_mode<synchronous>, transform_indices = @transform_2, window_bounds = array<i64: 1, 128>}, {pipeline_mode = #tpu.pipeline_mode<synchronous>, transform_indices = @transform_3, window_bounds = array<i64: 128, 768>}, {pipeline_mode = #tpu.pipeline_mode<synchronous>, transform_indices = @transform_4, window_bounds = array<i64: 1, 768>}, {pipeline_mode = #tpu.pipeline_mode<synchronous>, transform_indices = @transform_5, window_bounds = array<i64: 768, 256>}, {pipeline_mode = #tpu.pipeline_mode<synchronous>, transform_indices = @transform_6, window_bounds = array<i64: 1, 256>}, {transform_indices = @transform_7, window_bounds = array<i64: 128, 256>}]} {
    %c0 = arith.constant 0 : index
    %c0_0 = arith.constant 0 : index
    %0 = vector.load %arg1[%c0, %c0_0] : memref<128x64xf32, #tpu.memory_space<vmem>>, vector<128x64xf32>
    %1 = arith.truncf %0 : vector<128x64xf32> to vector<128x64xbf16>
    %c0_1 = arith.constant 0 : index
    %c0_2 = arith.constant 0 : index
    %2 = vector.load %arg2[%c0_1, %c0_2] : memref<64x128xbf16, #tpu.memory_space<vmem>>, vector<64x128xbf16>
    %cst = arith.constant dense<0.000000e+00> : vector<128x128xf32>
    %3 = tpu.matmul %1, %2, %cst {dimension_numbers = #tpu.dot_dimension_numbers<[1], [0], [0], [1], [0, 0, 1, 1], [], []>} : vector<128x64xbf16>, vector<64x128xbf16>, vector<128x128xf32> -> vector<128x128xf32>
    %c0_3 = arith.constant 0 : index
    %c0_4 = arith.constant 0 : index
    %4 = vector.load %arg3[%c0_3, %c0_4] : memref<1x128xf32, #tpu.memory_space<vmem>>, vector<1x128xf32>
    %5 = vector.broadcast %4 : vector<1x128xf32> to vector<128x128xf32>
    %6 = arith.addf %3, %5 : vector<128x128xf32>
    %cst_5 = arith.constant 0.000000e+00 : f32
    %7 = vector.broadcast %cst_5 : f32 to vector<128x128xf32>
    %8 = arith.maximumf %6, %7 : vector<128x128xf32>
    %9 = arith.truncf %8 : vector<128x128xf32> to vector<128x128xbf16>
    %c0_6 = arith.constant 0 : index
    %c0_7 = arith.constant 0 : index
    %10 = vector.load %arg4[%c0_6, %c0_7] : memref<128x768xbf16, #tpu.memory_space<vmem>>, vector<128x768xbf16>
    %cst_8 = arith.constant dense<0.000000e+00> : vector<128x768xf32>
    %11 = tpu.matmul %9, %10, %cst_8 {dimension_numbers = #tpu.dot_dimension_numbers<[1], [0], [0], [1], [0, 0, 1, 1], [], []>} : vector<128x128xbf16>, vector<128x768xbf16>, vector<128x768xf32> -> vector<128x768xf32>
    %c0_9 = arith.constant 0 : index
    %c0_10 = arith.constant 0 : index
    %12 = vector.load %arg5[%c0_9, %c0_10] : memref<1x768xf32, #tpu.memory_space<vmem>>, vector<1x768xf32>
    %13 = vector.broadcast %12 : vector<1x768xf32> to vector<128x768xf32>
    %14 = arith.addf %11, %13 : vector<128x768xf32>
    %cst_11 = arith.constant 0.000000e+00 : f32
    %15 = vector.broadcast %cst_11 : f32 to vector<128x768xf32>
    %16 = arith.maximumf %14, %15 : vector<128x768xf32>
    %17 = arith.truncf %16 : vector<128x768xf32> to vector<128x768xbf16>
    %c0_12 = arith.constant 0 : index
    %c0_13 = arith.constant 0 : index
    %18 = vector.load %arg6[%c0_12, %c0_13] : memref<768x256xbf16, #tpu.memory_space<vmem>>, vector<768x256xbf16>
    %cst_14 = arith.constant dense<0.000000e+00> : vector<128x256xf32>
    %19 = tpu.matmul %17, %18, %cst_14 {dimension_numbers = #tpu.dot_dimension_numbers<[1], [0], [0], [1], [0, 0, 1, 1], [], []>} : vector<128x768xbf16>, vector<768x256xbf16>, vector<128x256xf32> -> vector<128x256xf32>
    %c0_15 = arith.constant 0 : index
    %c0_16 = arith.constant 0 : index
    %20 = vector.load %arg7[%c0_15, %c0_16] : memref<1x256xf32, #tpu.memory_space<vmem>>, vector<1x256xf32>
    %21 = vector.broadcast %20 : vector<1x256xf32> to vector<128x256xf32>
    %22 = arith.addf %19, %21 : vector<128x256xf32>
    %c0_17 = arith.constant 0 : index
    %c0_18 = arith.constant 0 : index
    %23 = vector.load %arg8[%c0_17, %c0_18] : memref<128x256xf32, #tpu.memory_space<vmem>>, vector<128x256xf32>
    tpu.vector_store %arg8[%c0_17, %c0_18], %22 {strides = array<i32>} : memref<128x256xf32, #tpu.memory_space<vmem>>, vector<128x256xf32>,
    return
  }
  func.func @transform_0(%arg0: i32) -> (i32, i32) {
    %c0_i32 = arith.constant 0 : i32
    %c0_i32_0 = arith.constant 0 : i32
    return %arg0, %c0_i32 : i32, i32
  }
  func.func @transform_1(%arg0: i32) -> (i32, i32) {
    %c0_i32 = arith.constant 0 : i32
    %c0_i32_0 = arith.constant 0 : i32
    %c0_i32_1 = arith.constant 0 : i32
    return %c0_i32, %c0_i32_0 : i32, i32
  }
  func.func @transform_2(%arg0: i32) -> (i32, i32) {
    %c0_i32 = arith.constant 0 : i32
    %c0_i32_0 = arith.constant 0 : i32
    %c0_i32_1 = arith.constant 0 : i32
    return %c0_i32, %c0_i32_0 : i32, i32
  }
  func.func @transform_3(%arg0: i32) -> (i32, i32) {
    %c0_i32 = arith.constant 0 : i32
    %c0_i32_0 = arith.constant 0 : i32
    %c0_i32_1 = arith.constant 0 : i32
    return %c0_i32, %c0_i32_0 : i32, i32
  }
  func.func @transform_4(%arg0: i32) -> (i32, i32) {
    %c0_i32 = arith.constant 0 : i32
    %c0_i32_0 = arith.constant 0 : i32
    %c0_i32_1 = arith.constant 0 : i32
    return %c0_i32, %c0_i32_0 : i32, i32
  }
  func.func @transform_5(%arg0: i32) -> (i32, i32) {
    %c0_i32 = arith.constant 0 : i32
    %c0_i32_0 = arith.constant 0 : i32
    %c0_i32_1 = arith.constant 0 : i32
    return %c0_i32, %c0_i32_0 : i32, i32
  }
  func.func @transform_6(%arg0: i32) -> (i32, i32) {
    %c0_i32 = arith.constant 0 : i32
    %c0_i32_0 = arith.constant 0 : i32
    %c0_i32_1 = arith.constant 0 : i32
    return %c0_i32, %c0_i32_0 : i32, i32
  }
  func.func @transform_7(%arg0: i32) -> (i32, i32) {
    %c0_i32 = arith.constant 0 : i32
    %c0_i32_0 = arith.constant 0 : i32
    return %arg0, %c0_i32 : i32, i32
  }
}

</mosaic_0001>

<bundles_post_ra>
// kernel: tpu_custom_call.1
= control target key start
LH: loop header
LB: loop body
LE: loop exit
PB: predicated region body
PF: predicated region fallthrough
CT: control target
= control target key end

     0   :  { %12 = vsyncpa [#allocation3], 0  ;;  %s3153_s0 = inlined_call_operand.vmem [shape: f32[128,64], index: 0, kind: input, shape index: {}]   ;;  %s3154_s1 = inlined_call_operand.vmem [shape: bf16[64,128], index: 1, kind: input, shape index: {}]   ;;  %s3155_s2 = inlined_call_operand.vmem [shape: f32[1,128], index: 2, kind: input, shape index: {}]   ;;  %s3156_s3 = inlined_call_operand.hbm [shape: bf16[128,768], index: 3, kind: input, shape index: {}]   ;;  %s3157_s4 = inlined_call_operand.vmem [shape: f32[1,768], index: 4, kind: input, shape index: {}]   ;;  %s3158_s5 = inlined_call_operand.hbm [shape: bf16[768,256], index: 5, kind: input, shape index: {}]   ;;  %s3159_s6 = inlined_call_operand.vmem [shape: f32[1,256], index: 6, kind: input, shape index: {}]   ;;  %s3160_s7 = inlined_call_operand.hbm [shape: f32[128,256], index: 7, kind: output, shape index: {}]  }
   0x1   :  { %13 = vsyncpa [#allocation6], 0 }
   0x2   :  { %14 = vsyncpa [#allocation4], 0  ;;  %s2668_s24 = smov [#allocation2]   ;;  %s2596_s28 = scalar_lea.hbm %s3156_s3, 6144 }
   0x3   :  { %s26_s25 = sshll.u32 %s2668_s24, 4  ;;  %p2597_p0 = scmp.ne.s32.totalorder %s3156_s3, %s2596_s28  ;;  %s27_s25 = int_to_ptr.vmem [resolvable:$true] %s26_s25 }
   0x4   :  { %p2600_p1 = scmp.lt.u32.totalorder %s2596_s28, %s3156_s3 }
   0x6   :  { %p2602_p2 = pnand %p2600_p1, %p2597_p0 }
   0x8   :  { %2605 = shalt.err (!%p2602_p2)
}
   0x9   :  { %s2606_s10 = scalar_lea.vmem %s27_s25, 6144  ;;  %p2611_p4 = scmp.lt.s32.totalorder %s27_s25, %s27_s25 }
   0xa   :  { %p2607_p3 = scmp.ne.s32.totalorder %s27_s25, %s2606_s10  ;;  %p2612_p5 = scmp.lt.s32.totalorder %s2606_s10, %s2606_s10 }
   0xc   :  { %p2613_p6 = por %p2612_p5, %p2611_p4 }
   0xe   :  { %p2614_p7 = pnand %p2613_p6, %p2607_p3 }
  0x10   :  { %2617 = shalt.err (!%p2614_p7)
}
  0x11   :  { %s2669_s11 = smov 384   ;;  %s2670_s12 = smov 24  }
  0x12   :  { %32 = dma.hbm_to_vmem [thread:$0]  %s3156_s3, 6144, %s27_s25, [#allocation3], %s2669_s11, %s2669_s11, %s2670_s12  }
  0x13   :  { %s2671_s15 = smov [#allocation5]   ;;  %s2618_s19 = scalar_lea.hbm %s3158_s5, 12288 }
  0x14   :  { %s40_s16 = sshll.u32 %s2671_s15, 4  ;;  %p2619_p8 = scmp.ne.s32.totalorder %s3158_s5, %s2618_s19  ;;  %s41_s16 = int_to_ptr.vmem [resolvable:$true] %s40_s16 }
  0x15   :  { %p2622_p9 = scmp.lt.u32.totalorder %s2618_s19, %s3158_s5 }
  0x17   :  { %p2624_p10 = pnand %p2622_p9, %p2619_p8 }
  0x19   :  { %2627 = shalt.err (!%p2624_p10)
}
  0x1a   :  { %s2628_s24 = scalar_lea.vmem %s41_s16, 12288  ;;  %p2633_p12 = scmp.lt.s32.totalorder %s41_s16, %s41_s16 }
  0x1b   :  { %p2629_p11 = scmp.ne.s32.totalorder %s41_s16, %s2628_s24  ;;  %p2634_p13 = scmp.lt.s32.totalorder %s2628_s24, %s2628_s24 }
  0x1d   :  { %p2635_p0 = por %p2634_p13, %p2633_p12 }
  0x1f   :  { %p2636_p1 = pnand %p2635_p0, %p2629_p11 }
  0x21   :  { %2639 = shalt.err (!%p2636_p1)
}
  0x22   :  { %s2672_s3 = smov 128   ;;  %s2673_s25 = smov 8  }
  0x23   :  { %46 = dma.hbm_to_vmem [thread:$0]  %s3158_s5, 12288, %s41_s16, [#allocation6], %s2672_s3, %s2672_s3, %s2673_s25  }
  0x24   :  { %2662 = dma.done.wait [#allocation3], 6144  }
  0x25   :  { %2663 = vsyncadd [#allocation3], 4294961152 }
  0x26   :  { %2664 = dma.done.wait [#allocation6], 12288  }
  0x27   :  { %2665 = vsyncadd [#allocation6], 4294955008  ;;  %v2376_v0 = vld [vmem:[%s3154_s1] sm:$0xff]   ;;  %v2377_v1 = vld [vmem:[%s3154_s1 + $0x8] sm:$0xff]   ;;  %vm119_vm0 = vcmask 523264   ;;  %v2674_v61 = vmov 0  }
  0x28   :  { %2214 = vmatprep.subr.bf16.mxu0 %v2376_v0  ;;  %v2378_v2 = vld [vmem:[%s3154_s1 + $0x10] sm:$0xff]   ;;  %v56_v3 = vld [vmem:[%s3153_s0] sm:$0xff]  ;;  %v57_v4 = vld [vmem:[%s3153_s0 + $0x8] sm:$0xff]  ;;  %617 = vmatprep.mubr.bf16.mxu1 %v2674_v61 }
  0x29   :  { %2215 = vmatpush3.bf16.msra.mxu0 %v2376_v0  ;;  %v72_v5 = vpack.c.bf16 %v57_v4, %v56_v3  ;;  %v2379_v6 = vld [vmem:[%s3154_s1 + $0x18] sm:$0xff]   ;;  %v58_v7 = vld [vmem:[%s3153_s0 + $0x10] sm:$0xff]  ;;  %v60_v9 = vld [vmem:[%s3153_s0 + $0x20] sm:$0xff] }
  0x2a   :  { %2216 = vmatprep.subr.bf16.mxu0 %v2377_v1  ;;  %v59_v8 = vld [vmem:[%s3153_s0 + $0x18] sm:$0xff]  ;;  %v61_v12 = vld [vmem:[%s3153_s0 + $0x28] sm:$0xff]  ;;  %v62_v21 = vld [vmem:[%s3153_s0 + $0x30] sm:$0xff] }
  0x2b   :  { %2222 = vmatprep.mubr.msk.bf16.mxu0 %vm119_vm0, %v72_v5  ;;  %v2380_v10 = vld [vmem:[#allocation2 + $0x4] ss:$24 sps:$4 sm:$0xff]   ;;  %v2382_v11 = vld [vmem:[#allocation2] ss:$24 sps:$4 sm:$0xff]   ;;  %v2386_v14 = vld [vmem:[#allocation2 + $0x34] ss:$24 sps:$4 sm:$0xff]   ;;  %v73_v16 = vpack.c.bf16 %v59_v8, %v58_v7  ;;  %v74_v17 = vpack.c.bf16 %v61_v12, %v60_v9 }
  0x2c   :  { %v2385_v13 = vld [vmem:[#allocation2 + $0xc] ss:$24 sps:$4 sm:$0xff]   ;;  %585 = vmatprep.subr.bf16.mxu1 %v2380_v10  ;;  %v2388_v15 = vld [vmem:[#allocation2 + $0x30] ss:$24 sps:$4 sm:$0xff]   ;;  %v2391_v20 = vld [vmem:[#allocation2 + $0x3c] ss:$24 sps:$4 sm:$0xff]  }
  0x2d   :  { %2217 = vmatpush3.bf16.msra.mxu0 %v2377_v1  ;;  %586 = vmatpush1.bf16.msra.mxu1 %v2382_v11  ;;  %v2383_v18 = vld [vmem:[#allocation2 + $0x8] ss:$24 sps:$4 sm:$0xff]   ;;  %v2392_v19 = vld [vmem:[#allocation2 + $0x64] ss:$24 sps:$4 sm:$0xff]   ;;  %v2398_v25 = vld [vmem:[#allocation2 + $0x94] ss:$24 sps:$4 sm:$0xff]  }
  0x2e   :  { %2218 = vmatprep.subr.bf16.mxu0 %v2378_v2  ;;  %587 = vmatprep.subr.bf16.mxu1 %v2386_v14  ;;  %v63_v22 = vld [vmem:[%s3153_s0 + $0x38] sm:$0xff]  ;;  %v64_v24 = vld [vmem:[%s3153_s0 + $0x40] sm:$0xff]  ;;  %v65_v26 = vld [vmem:[%s3153_s0 + $0x48] sm:$0xff] }
  0x2f   :  { %v2394_v23 = vld [vmem:[#allocation2 + $0x60] ss:$24 sps:$4 sm:$0xff]   ;;  %v2397_v28 = vld [vmem:[#allocation2 + $0x6c] ss:$24 sps:$4 sm:$0xff]   ;;  %v2400_v29 = vld [vmem:[#allocation2 + $0x90] ss:$24 sps:$4 sm:$0xff]   ;;  %v75_v30 = vpack.c.bf16 %v63_v22, %v62_v21  ;;  %v76_v32 = vpack.c.bf16 %v65_v26, %v64_v24 }
  0x30   :  { %v2389_v27 = vld [vmem:[#allocation2 + $0x38] ss:$24 sps:$4 sm:$0xff]   ;;  %v2404_v31 = vld [vmem:[#allocation2 + $0xc4] ss:$24 sps:$4 sm:$0xff]   ;;  %v2395_v33 = vld [vmem:[#allocation2 + $0x68] ss:$24 sps:$4 sm:$0xff]  }
  0x31   :  { %2219 = vmatpush3.bf16.msra.mxu0 %v2378_v2  ;;  %588 = vmatpush1.bf16.msra.mxu1 %v2388_v15  ;;  %v2403_v34 = vld [vmem:[#allocation2 + $0x9c] ss:$24 sps:$4 sm:$0xff]   ;;  %v2406_v35 = vld [vmem:[#allocation2 + $0xc0] ss:$24 sps:$4 sm:$0xff]   ;;  %v69_v41 = vld [vmem:[%s3153_s0 + $0x68] sm:$0xff] }
  0x32   :  { %2220 = vmatprep.subr.bf16.mxu0 %v2379_v6  ;;  %589 = vmatprep.subr.bf16.mxu1 %v2392_v19  ;;  %v66_v36 = vld [vmem:[%s3153_s0 + $0x50] sm:$0xff]  ;;  %v67_v37 = vld [vmem:[%s3153_s0 + $0x58] sm:$0xff]  ;;  %v68_v40 = vld [vmem:[%s3153_s0 + $0x60] sm:$0xff] }
  0x33   :  { %v2401_v38 = vld [vmem:[#allocation2 + $0x98] ss:$24 sps:$4 sm:$0xff]   ;;  %v2410_v39 = vld [vmem:[#allocation2 + $0xf4] ss:$24 sps:$4 sm:$0xff]   ;;  %v2407_v44 = vld [vmem:[#allocation2 + $0xc8] ss:$24 sps:$4 sm:$0xff]   ;;  %v77_v45 = vpack.c.bf16 %v67_v37, %v66_v36  ;;  %v78_v47 = vpack.c.bf16 %v69_v41, %v68_v40 }
  0x34   :  { %v2409_v42 = vld [vmem:[#allocation2 + $0xcc] ss:$24 sps:$4 sm:$0xff]   ;;  %v2412_v43 = vld [vmem:[#allocation2 + $0xf0] ss:$24 sps:$4 sm:$0xff]   ;;  %v2415_v46 = vld [vmem:[#allocation2 + $0xfc] ss:$24 sps:$4 sm:$0xff]  }
  0x35   :  { %2221 = vmatpush3.bf16.msra.mxu0 %v2379_v6  ;;  %590 = vmatpush1.bf16.msra.mxu1 %v2394_v23  ;;  %v70_v48 = vld [vmem:[%s3153_s0 + $0x70] sm:$0xff]  ;;  %v71_v49 = vld [vmem:[%s3153_s0 + $0x78] sm:$0xff]  ;;  %v2421_v53 = vld [vmem:[#allocation2 + $0x12c] ss:$24 sps:$4 sm:$0xff]  }
  0x36   :  { %698 = vmatprep.subr.bf16.mxu0 %v2385_v13  ;;  %591 = vmatprep.subr.bf16.mxu1 %v2398_v25  ;;  %v2413_v50 = vld [vmem:[#allocation2 + $0xf8] ss:$24 sps:$4 sm:$0xff]   ;;  %v79_v51 = vpack.c.bf16 %v71_v49, %v70_v48  ;;  %v2416_v52 = vld [vmem:[#allocation2 + $0x124] ss:$24 sps:$4 sm:$0xff]   ;;  %v2419_v55 = vld [vmem:[#allocation2 + $0x128] ss:$24 sps:$4 sm:$0xff]  }
  0x37   :  { %v2418_v54 = vld [vmem:[#allocation2 + $0x120] ss:$24 sps:$4 sm:$0xff]   ;;  %v2422_v56 = vld [vmem:[#allocation2 + $0x154] ss:$24 sps:$4 sm:$0xff]   ;;  %v2424_v58 = vld [vmem:[#allocation2 + $0x150] ss:$24 sps:$4 sm:$0xff]  }
  0x38   :  { %2223 = vmatmul.mubr.msk.bf16.vlgmr.msra.gmra.mrb[0].mxu0 %vm119_vm0, %v73_v16  ;;  %v2427_v57 = vld [vmem:[#allocation2 + $0x15c] ss:$24 sps:$4 sm:$0xff]   ;;  %v2425_v59 = vld [vmem:[#allocation2 + $0x158] ss:$24 sps:$4 sm:$0xff]   ;;  %v2815_v62 = vld [vmem:[%s3155_s2] ss:$0 sm:$0xff] }
  0x39   :  { %2226 = vmatprep.mubr.msk.bf16.mxu0 %vm119_vm0, %v74_v17  ;;  %699 = vmatpush1.bf16.msra.mxu0 %v2383_v18  ;;  %v2430_v60 = vld [vmem:[#allocation2 + $0x14] ss:$24 sps:$4 sm:$0xff]   ;;  %v2428_v13 = vld [vmem:[#allocation2 + $0x10] ss:$24 sps:$4 sm:$0xff]   ;;  %v2433_v16 = vld [vmem:[#allocation2 + $0x44] ss:$24 sps:$4 sm:$0xff]  }
  0x3a   :  { %700 = vmatprep.subr.bf16.mxu0 %v2391_v20  ;;  %592 = vmatpush1.bf16.msra.mxu1 %v2400_v29  ;;  %v2457_v6 = vld [vmem:[#allocation5 + $0x104] ss:$8 sps:$4 sm:$0xff]   ;;  %v2455_v19 = vld [vmem:[#allocation5 + $0x100] ss:$8 sps:$4 sm:$0xff]   ;;  %v2463_v22 = vld [vmem:[#allocation5 + $0x114] ss:$8 sps:$4 sm:$0xff]  }
  0x3b   :  { %593 = vmatprep.subr.bf16.mxu1 %v2404_v31  ;;  %v2431_v26 = vld [vmem:[#allocation2 + $0x40] ss:$24 sps:$4 sm:$0xff]   ;;  %v2436_v29 = vld [vmem:[#allocation2 + $0x74] ss:$24 sps:$4 sm:$0xff]   ;;  %v2439_v40 = vld [vmem:[#allocation2 + $0xa4] ss:$24 sps:$4 sm:$0xff]  }
  0x3c   :  { %v2461_v31 = vld [vmem:[#allocation5 + $0x110] ss:$8 sps:$4 sm:$0xff]   ;;  %v2469_v37 = vld [vmem:[#allocation5 + $0x124] ss:$8 sps:$4 sm:$0xff]   ;;  %v2467_v41 = vld [vmem:[#allocation5 + $0x120] ss:$8 sps:$4 sm:$0xff]  }
  0x3d   :  { %701 = vmatpush1.bf16.msra.mxu0 %v2389_v27 }
  0x3e   :  { %702 = vmatprep.subr.bf16.mxu0 %v2397_v28  ;;  %594 = vmatpush1.bf16.msra.mxu1 %v2406_v35  ;;  %v2434_v35 = vld [vmem:[#allocation2 + $0x70] ss:$24 sps:$4 sm:$0xff]  }
  0x3f   :  { %595 = vmatprep.subr.bf16.mxu1 %v2410_v39 }
  0x40   :  { %2227 = vmatmul.mubr.msk.bf16.gmra.mrb[4].mxu0 %vm119_vm0, %v75_v30 }
  0x41   :  { %2230 = vmatprep.mubr.msk.bf16.mxu0 %vm119_vm0, %v76_v32  ;;  %703 = vmatpush1.bf16.msra.mxu0 %v2395_v33 }
  0x42   :  { %704 = vmatprep.subr.bf16.mxu0 %v2403_v34  ;;  %596 = vmatpush1.bf16.msra.mxu1 %v2412_v43 }
  0x43   :  { %597 = vmatprep.subr.bf16.mxu1 %v2416_v52  ;;  %v2442_v52 = vld [vmem:[#allocation2 + $0xd4] ss:$24 sps:$4 sm:$0xff]  }
  0x45   :  { %705 = vmatpush1.bf16.msra.mxu0 %v2401_v38 }
  0x46   :  { %706 = vmatprep.subr.bf16.mxu0 %v2409_v42  ;;  %598 = vmatpush1.bf16.msra.mxu1 %v2418_v54 }
  0x47   :  { %599 = vmatprep.subr.bf16.mxu1 %v2422_v56 }
  0x48   :  { %2231 = vmatmul.mubr.msk.bf16.gmra.mrb[8].mxu0 %vm119_vm0, %v77_v45 }
  0x49   :  { %2234 = vmatprep.mubr.msk.bf16.mxu0 %vm119_vm0, %v78_v47  ;;  %707 = vmatpush1.bf16.msra.mxu0 %v2407_v44  ;;  %v2475_v44 = vld [vmem:[#allocation5 + $0x134] ss:$8 sps:$4 sm:$0xff]  }
  0x4a   :  { %708 = vmatprep.subr.bf16.mxu0 %v2415_v46  ;;  %600 = vmatpush1.bf16.msra.mxu1 %v2424_v58 }
  0x4b   :  { %811 = vmatprep.subr.bf16.mxu1 %v2430_v60 }
  0x4d   :  { %709 = vmatpush1.bf16.msra.mxu0 %v2413_v50  ;;  %v2437_v50 = vld [vmem:[#allocation2 + $0xa0] ss:$24 sps:$4 sm:$0xff]  }
  0x4e   :  { %710 = vmatprep.subr.bf16.mxu0 %v2421_v53  ;;  %v2473_v53 = vld [vmem:[#allocation5 + $0x130] ss:$8 sps:$4 sm:$0xff]  }
  0x50   :  { %2235 = vmatmul.mubr.msk.bf16.gmra.mrb[12].mxu0 %vm119_vm0, %v79_v51 }
  0x51   :  { %711 = vmatpush1.bf16.msra.mxu0 %v2419_v55  ;;  %730 = vmatprep.mubr.bf16.mxu0 %v2674_v61 }
  0x52   :  { %712 = vmatprep.subr.bf16.mxu0 %v2427_v57  ;;  %v2440_v57 = vld [vmem:[#allocation2 + $0xd0] ss:$24 sps:$4 sm:$0xff]  }
  0x55   :  { %713 = vmatpush1.bf16.msra.mxu0 %v2425_v59  ;;  %v2481_v59 = vld [vmem:[#allocation5 + $0x144] ss:$8 sps:$4 sm:$0xff]  }
  0x56   :  { %1769 = vmatprep.subr.bf16.mxu0 %v2457_v6 }
 0x10b   :  { %v2224_v63 = vpop.f32.mrb[0].mxu0 }
 0x10c   :  { %v187_v0 = vadd.f32 %v2224_v63, %v2815_v62  ;;  %v178_v1 = vpop.f32.mrb[1].mxu0 }
 0x10d   :  { %v179_v2 = vadd.f32 %v2815_v62, %v178_v1  ;;  %v2225_v3 = vpop.f32.mrb[2].mxu0  ;;  %v2479_v1 = vld [vmem:[#allocation5 + $0x140] ss:$8 sps:$4 sm:$0xff]  }
 0x10e   :  { %v190_v4 = vadd.f32 %v2225_v3, %v2815_v62  ;;  %v181_v5 = vpop.f32.mrb[3].mxu0  ;;  %v243_v8 = vmax.f32 %v187_v0, 0.0  ;;  %v2445_v0 = vld [vmem:[#allocation2 + $0x104] ss:$24 sps:$4 sm:$0xff]  }
 0x10f   :  { %v182_v7 = vadd.f32 %v2815_v62, %v181_v5  ;;  %v241_v10 = vmax.f32 %v179_v2, 0.0 }
 0x110   :  { %v244_v9 = vmax.f32 %v190_v4, 0.0  ;;  %v2487_v4 = vld [vmem:[#allocation5 + $0x154] ss:$8 sps:$4 sm:$0xff]  }
 0x111   :  { %v242_v11 = vmax.f32 %v182_v7, 0.0 }
 0x112   :  { %v2821_v12 = vpack.c.bf16 %v244_v9, %v243_v8 }
 0x113   :  { %v2823_v14 = vpack.c.bf16 %v242_v11, %v241_v10  ;;  %v2228_v15 = vpop.f32.mrb[4].mxu0  ;;  %v2443_v10 = vld [vmem:[#allocation2 + $0x100] ss:$24 sps:$4 sm:$0xff]  }
 0x114   :  { %v203_v17 = vadd.f32 %v2228_v15, %v2815_v62  ;;  %v194_v18 = vpop.f32.mrb[5].mxu0  ;;  %v2485_v15 = vld [vmem:[#allocation5 + $0x150] ss:$8 sps:$4 sm:$0xff]  }
 0x115   :  { %618 = vmatmul.mubr.bf16.vlgmr.msra.gmra.mrb[0].mxu1 %v2823_v14  ;;  %731 = vmatmul.mubr.bf16.vlgmr.msra.gmra.mrb[16].mxu0 %v2823_v14  ;;  %v195_v20 = vadd.f32 %v2815_v62, %v194_v18  ;;  %v2229_v21 = vpop.f32.mrb[6].mxu0 }
 0x116   :  { %812 = vmatpush1.bf16.msra.mxu1 %v2428_v13  ;;  %v247_v23 = vmax.f32 %v203_v17, 0.0  ;;  %v206_v24 = vadd.f32 %v2229_v21, %v2815_v62  ;;  %v197_v25 = vpop.f32.mrb[7].mxu0  ;;  %627 = vmatprep.mubr.bf16.mxu1 %v2674_v61  ;;  %v2448_v13 = vld [vmem:[#allocation2 + $0x134] ss:$24 sps:$4 sm:$0xff]   ;;  %v2451_v21 = vld [vmem:[#allocation2 + $0x164] ss:$24 sps:$4 sm:$0xff]  }
 0x117   :  { %v245_v27 = vmax.f32 %v195_v20, 0.0  ;;  %v198_v28 = vadd.f32 %v2815_v62, %v197_v25  ;;  %740 = vmatprep.mubr.bf16.mxu0 %v2674_v61  ;;  %813 = vmatprep.subr.bf16.mxu1 %v2433_v16  ;;  %v2493_v20 = vld [vmem:[#allocation5 + $0x164] ss:$8 sps:$4 sm:$0xff]   ;;  %v2497_v25 = vld [vmem:[#allocation5 + $0x170] ss:$8 sps:$4 sm:$0xff]  }
 0x118   :  { %v248_v30 = vmax.f32 %v206_v24, 0.0  ;;  %1770 = vmatpush1.bf16.msra.mxu0 %v2455_v19  ;;  %v2446_v19 = vld [vmem:[#allocation2 + $0x130] ss:$24 sps:$4 sm:$0xff]   ;;  %v2454_v24 = vld [vmem:[#allocation5 + $0x4] ss:$8 sps:$4 sm:$0xff]  }
 0x119   :  { %v246_v32 = vmax.f32 %v198_v28, 0.0  ;;  %1771 = vmatprep.subr.bf16.mxu0 %v2463_v22  ;;  %v2499_v22 = vld [vmem:[#allocation5 + $0x174] ss:$8 sps:$4 sm:$0xff]  }
 0x11a   :  { %v2833_v33 = vpack.c.bf16 %v248_v30, %v247_v23  ;;  %814 = vmatpush1.bf16.msra.mxu1 %v2431_v26  ;;  %v2449_v23 = vld [vmem:[#allocation2 + $0x160] ss:$24 sps:$4 sm:$0xff]   ;;  %v2505_v26 = vld [vmem:[#allocation5 + $0x184] ss:$8 sps:$4 sm:$0xff]   ;;  %v2511_v28 = vld [vmem:[#allocation5 + $0x194] ss:$8 sps:$4 sm:$0xff]  }
 0x11b   :  { %v2835_v34 = vpack.c.bf16 %v246_v32, %v245_v27  ;;  %815 = vmatprep.subr.bf16.mxu1 %v2436_v29  ;;  %v2232_v36 = vpop.f32.mrb[8].mxu0  ;;  %v2503_v27 = vld [vmem:[#allocation5 + $0x180] ss:$8 sps:$4 sm:$0xff]   ;;  %v2509_v29 = vld [vmem:[#allocation5 + $0x190] ss:$8 sps:$4 sm:$0xff]  }
 0x11c   :  { %v219_v38 = vadd.f32 %v2232_v36, %v2815_v62  ;;  %v210_v39 = vpop.f32.mrb[9].mxu0  ;;  %1772 = vmatpush1.bf16.msra.mxu0 %v2461_v31  ;;  %v2517_v30 = vld [vmem:[#allocation5 + $0x1a4] ss:$8 sps:$4 sm:$0xff]   ;;  %v2515_v31 = vld [vmem:[#allocation5 + $0x1a0] ss:$8 sps:$4 sm:$0xff]  }
 0x11d   :  { %628 = vmatmul.mubr.bf16.gmra.mrb[4].mxu1 %v2821_v12  ;;  %741 = vmatmul.mubr.bf16.gmra.mrb[20].mxu0 %v2821_v12  ;;  %v211_v42 = vadd.f32 %v2815_v62, %v210_v39  ;;  %v2233_v43 = vpop.f32.mrb[10].mxu0  ;;  %v2523_v32 = vld [vmem:[#allocation5 + $0x1b4] ss:$8 sps:$4 sm:$0xff]   ;;  %v2529_v36 = vld [vmem:[#allocation5 + $0x1c4] ss:$8 sps:$4 sm:$0xff]  }
 0x11e   :  { %637 = vmatprep.mubr.bf16.mxu1 %v2674_v61  ;;  %750 = vmatprep.mubr.bf16.mxu0 %v2674_v61  ;;  %v251_v45 = vmax.f32 %v219_v38, 0.0  ;;  %v222_v46 = vadd.f32 %v2233_v43, %v2815_v62  ;;  %v213_v47 = vpop.f32.mrb[11].mxu0  ;;  %v2535_v38 = vld [vmem:[#allocation5 + $0x1d4] ss:$8 sps:$4 sm:$0xff]   ;;  %v2533_v39 = vld [vmem:[#allocation5 + $0x1d0] ss:$8 sps:$4 sm:$0xff]  }
 0x11f   :  { %816 = vmatpush1.bf16.msra.mxu1 %v2434_v35  ;;  %v249_v48 = vmax.f32 %v211_v42, 0.0  ;;  %v214_v49 = vadd.f32 %v2815_v62, %v213_v47  ;;  %1773 = vmatprep.subr.bf16.mxu0 %v2469_v37  ;;  %v2521_v35 = vld [vmem:[#allocation5 + $0x1b0] ss:$8 sps:$4 sm:$0xff]   ;;  %v2527_v37 = vld [vmem:[#allocation5 + $0x1c0] ss:$8 sps:$4 sm:$0xff]  }
 0x120   :  { %v252_v51 = vmax.f32 %v222_v46, 0.0  ;;  %817 = vmatprep.subr.bf16.mxu1 %v2439_v40  ;;  %1774 = vmatpush1.bf16.msra.mxu0 %v2467_v41  ;;  %v2452_v40 = vld [vmem:[#allocation5] ss:$8 sps:$4 sm:$0xff]   ;;  %v2460_v41 = vld [vmem:[#allocation5 + $0x14] ss:$8 sps:$4 sm:$0xff]  }
 0x121   :  { %v250_v54 = vmax.f32 %v214_v49, 0.0  ;;  %1775 = vmatprep.subr.bf16.mxu0 %v2475_v44  ;;  %v2458_v42 = vld [vmem:[#allocation5 + $0x10] ss:$8 sps:$4 sm:$0xff]   ;;  %v2466_v43 = vld [vmem:[#allocation5 + $0x24] ss:$8 sps:$4 sm:$0xff]  }
 0x122   :  { %v2845_v55 = vpack.c.bf16 %v252_v51, %v251_v45  ;;  %v2464_v44 = vld [vmem:[#allocation5 + $0x20] ss:$8 sps:$4 sm:$0xff]   ;;  %v2472_v45 = vld [vmem:[#allocation5 + $0x34] ss:$8 sps:$4 sm:$0xff]   ;;  %v2470_v46 = vld [vmem:[#allocation5 + $0x30] ss:$8 sps:$4 sm:$0xff]  }
 0x123   :  { %v2847_v56 = vpack.c.bf16 %v250_v54, %v249_v48  ;;  %818 = vmatpush1.bf16.msra.mxu1 %v2437_v50  ;;  %v2236_v58 = vpop.f32.mrb[12].mxu0  ;;  %v2478_v47 = vld [vmem:[#allocation5 + $0x44] ss:$8 sps:$4 sm:$0xff]   ;;  %v2484_v48 = vld [vmem:[#allocation5 + $0x54] ss:$8 sps:$4 sm:$0xff]  }
 0x124   :  { %819 = vmatprep.subr.bf16.mxu1 %v2442_v52  ;;  %v235_v60 = vadd.f32 %v2236_v58, %v2815_v62  ;;  %v226_v63 = vpop.f32.mrb[13].mxu0  ;;  %1776 = vmatpush1.bf16.msra.mxu0 %v2473_v53  ;;  %v2482_v49 = vld [vmem:[#allocation5 + $0x50] ss:$8 sps:$4 sm:$0xff]   ;;  %v2490_v50 = vld [vmem:[#allocation5 + $0x64] ss:$8 sps:$4 sm:$0xff]  }
 0x125   :  { %638 = vmatmul.mubr.bf16.gmra.mrb[8].mxu1 %v2835_v34  ;;  %751 = vmatmul.mubr.bf16.gmra.mrb[24].mxu0 %v2835_v34  ;;  %v227_v2 = vadd.f32 %v2815_v62, %v226_v63  ;;  %v2237_v3 = vpop.f32.mrb[14].mxu0  ;;  %v2541_v51 = vld [vmem:[#allocation5 + $0x1e4] ss:$8 sps:$4 sm:$0xff]   ;;  %v2539_v52 = vld [vmem:[#allocation5 + $0x1e0] ss:$8 sps:$4 sm:$0xff]  }
 0x126   :  { %647 = vmatprep.mubr.bf16.mxu1 %v2674_v61  ;;  %760 = vmatprep.mubr.bf16.mxu0 %v2674_v61  ;;  %v255_v5 = vmax.f32 %v235_v60, 0.0  ;;  %v238_v6 = vadd.f32 %v2237_v3, %v2815_v62  ;;  %v229_v7 = vpop.f32.mrb[15].mxu0  ;;  %v2496_v53 = vld [vmem:[#allocation5 + $0x74] ss:$8 sps:$4 sm:$0xff]   ;;  %v2502_v58 = vld [vmem:[#allocation5 + $0x84] ss:$8 sps:$4 sm:$0xff]  }
 0x127   :  { %820 = vmatpush1.bf16.msra.mxu1 %v2440_v57  ;;  %v253_v8 = vmax.f32 %v227_v2, 0.0  ;;  %v230_v9 = vadd.f32 %v2815_v62, %v229_v7  ;;  %1777 = vmatprep.subr.bf16.mxu0 %v2481_v59  ;;  %v2491_v62 = vld [vmem:[#allocation5 + $0x160] ss:$8 sps:$4 sm:$0xff]   ;;  %v2547_v54 = vld [vmem:[#allocation5 + $0x1f4] ss:$8 sps:$4 sm:$0xff]  }
 0x128   :  { %v256_v11 = vmax.f32 %v238_v6, 0.0  ;;  %821 = vmatprep.subr.bf16.mxu1 %v2445_v0  ;;  %1778 = vmatpush1.bf16.msra.mxu0 %v2479_v1  ;;  %v2545_v57 = vld [vmem:[#allocation5 + $0x1f0] ss:$8 sps:$4 sm:$0xff]   ;;  %v2550_v59 = vld [vmem:[#allocation5 + $0x204] ss:$8 sps:$4 sm:$0xff]  }
 0x129   :  { %v254_v16 = vmax.f32 %v230_v9, 0.0  ;;  %1779 = vmatprep.subr.bf16.mxu0 %v2487_v4  ;;  %v2500_v60 = vld [vmem:[#allocation5 + $0x80] ss:$8 sps:$4 sm:$0xff]   ;;  %v2508_v63 = vld [vmem:[#allocation5 + $0x94] ss:$8 sps:$4 sm:$0xff]  }
 0x12a   :  { %v2857_v17 = vpack.c.bf16 %v256_v11, %v255_v5  ;;  %v2514_v0 = vld [vmem:[#allocation5 + $0xa4] ss:$8 sps:$4 sm:$0xff]   ;;  %v2512_v1 = vld [vmem:[#allocation5 + $0xa0] ss:$8 sps:$4 sm:$0xff]   ;;  %v2520_v2 = vld [vmem:[#allocation5 + $0xb4] ss:$8 sps:$4 sm:$0xff]  }
 0x12b   :  { %v2859_v18 = vpack.c.bf16 %v254_v16, %v253_v8  ;;  %822 = vmatpush1.bf16.msra.mxu1 %v2443_v10  ;;  %v2518_v3 = vld [vmem:[#allocation5 + $0xb0] ss:$8 sps:$4 sm:$0xff]   ;;  %v2526_v4 = vld [vmem:[#allocation5 + $0xc4] ss:$8 sps:$4 sm:$0xff]   ;;  %v2532_v5 = vld [vmem:[#allocation5 + $0xd4] ss:$8 sps:$4 sm:$0xff]   ;;  %v315_v10 = vlaneseq }
 0x12c   :  { %823 = vmatprep.subr.bf16.mxu1 %v2448_v13  ;;  %1780 = vmatpush1.bf16.msra.mxu0 %v2485_v15  ;;  %v2530_v6 = vld [vmem:[#allocation5 + $0xd0] ss:$8 sps:$4 sm:$0xff]   ;;  %v2538_v7 = vld [vmem:[#allocation5 + $0xe4] ss:$8 sps:$4 sm:$0xff]   ;;  %v2544_v8 = vld [vmem:[#allocation5 + $0xf4] ss:$8 sps:$4 sm:$0xff]  }
 0x12d   :  { %648 = vmatmul.mubr.bf16.gmra.mrb[12].mxu1 %v2833_v33  ;;  %761 = vmatmul.mubr.bf16.gmra.mrb[28].mxu0 %v2833_v33  ;;  %v2542_v9 = vld [vmem:[#allocation5 + $0xf0] ss:$8 sps:$4 sm:$0xff]   ;;  %v2895_v11 = vshrl.u32 %v315_v10, 7  ;;  %v2902_v15 = vld [vmem:[%s3157_s4] sm:$0x3f] }
 0x12e   :  { %657 = vmatprep.mubr.bf16.mxu1 %v2674_v61  ;;  %770 = vmatprep.mubr.bf16.mxu0 %v2674_v61 }
 0x12f   :  { %824 = vmatpush1.bf16.msra.mxu1 %v2446_v19  ;;  %1781 = vmatprep.subr.bf16.mxu0 %v2493_v20  ;;  %v325_v13 = vsub.s32 2, %v2895_v11  ;;  %v321_v16 = vsub.s32 1, %v2895_v11 }
 0x130   :  { %825 = vmatprep.subr.bf16.mxu1 %v2451_v21  ;;  %1782 = vmatpush1.bf16.msra.mxu0 %v2491_v62 }
 0x131   :  { %1783 = vmatprep.subr.bf16.mxu0 %v2499_v22  ;;  %v2912_v19 = vrot.slane %v2902_v15, %v325_v13  ;;  %v2917_v20 = vrot.slane %v2902_v15, %v321_v16 }
 0x133   :  { %826 = vmatpush1.bf16.msra.mxu1 %v2449_v23 }
 0x134   :  { %1656 = vmatprep.subr.bf16.mxu1 %v2454_v24  ;;  %1784 = vmatpush1.bf16.msra.mxu0 %v2497_v25 }
 0x135   :  { %658 = vmatmul.mubr.bf16.gmra.mrb[16].mxu1 %v2847_v56  ;;  %771 = vmatmul.mubr.bf16.gmra.mrb[32].mxu0 %v2847_v56 }
 0x136   :  { %667 = vmatprep.mubr.bf16.mxu1 %v2674_v61  ;;  %780 = vmatprep.mubr.bf16.mxu0 %v2674_v61 }
 0x137   :  { %1785 = vmatprep.subr.bf16.mxu0 %v2505_v26 }
 0x138   :  { %1786 = vmatpush1.bf16.msra.mxu0 %v2503_v27 }
 0x139   :  { %1787 = vmatprep.subr.bf16.mxu0 %v2511_v28 }
 0x13c   :  { %1788 = vmatpush1.bf16.msra.mxu0 %v2509_v29 }
 0x13d   :  { %668 = vmatmul.mubr.bf16.gmra.mrb[20].mxu1 %v2845_v55  ;;  %781 = vmatmul.mubr.bf16.gmra.mrb[36].mxu0 %v2845_v55 }
 0x13e   :  { %677 = vmatprep.mubr.bf16.mxu1 %v2674_v61  ;;  %790 = vmatprep.mubr.bf16.mxu0 %v2674_v61 }
 0x13f   :  { %1789 = vmatprep.subr.bf16.mxu0 %v2517_v30 }
 0x140   :  { %1790 = vmatpush1.bf16.msra.mxu0 %v2515_v31 }
 0x141   :  { %1791 = vmatprep.subr.bf16.mxu0 %v2523_v32 }
 0x144   :  { %1792 = vmatpush1.bf16.msra.mxu0 %v2521_v35 }
 0x145   :  { %678 = vmatmul.mubr.bf16.gmra.mrb[24].mxu1 %v2859_v18  ;;  %791 = vmatmul.mubr.bf16.gmra.mrb[40].mxu0 %v2859_v18 }
 0x146   :  { %687 = vmatprep.mubr.bf16.mxu1 %v2674_v61  ;;  %800 = vmatprep.mubr.bf16.mxu0 %v2674_v61 }
 0x147   :  { %1793 = vmatprep.subr.bf16.mxu0 %v2529_v36 }
 0x148   :  { %1794 = vmatpush1.bf16.msra.mxu0 %v2527_v37 }
 0x149   :  { %1795 = vmatprep.subr.bf16.mxu0 %v2535_v38 }
 0x14c   :  { %1796 = vmatpush1.bf16.msra.mxu0 %v2533_v39 }
 0x14d   :  { %688 = vmatmul.mubr.bf16.gmra.mrb[28].mxu1 %v2857_v17  ;;  %801 = vmatmul.mubr.bf16.gmra.mrb[44].mxu0 %v2857_v17 }
 0x14e   :  { %843 = vmatprep.mubr.bf16.mxu1 %v2674_v61  ;;  %1797 = vmatprep.subr.bf16.mxu0 %v2541_v51 }
 0x150   :  { %1798 = vmatpush1.bf16.msra.mxu0 %v2539_v52 }
 0x151   :  { %1799 = vmatprep.subr.bf16.mxu0 %v2547_v54 }
 0x154   :  { %1800 = vmatpush1.bf16.msra.mxu0 %v2545_v57  ;;  %v2553_v57 = vld [vmem:[#allocation5 + $0x214] ss:$8 sps:$4 sm:$0xff]  }
 0x155   :  { %844 = vmatmul.mubr.bf16.vlgmr.msra.gmra.mrb[32].mxu1 %v2823_v14  ;;  %v2476_v14 = vld [vmem:[#allocation5 + $0x40] ss:$8 sps:$4 sm:$0xff]   ;;  %1882 = vmatprep.subr.bf16.mxu0 %v2550_v59 }
 0x156   :  { %853 = vmatprep.mubr.bf16.mxu1 %v2674_v61  ;;  %1657 = vmatpush1.bf16.msra.mxu1 %v2452_v40 }
 0x157   :  { %1658 = vmatprep.subr.bf16.mxu1 %v2460_v41 }
 0x15a   :  { %1659 = vmatpush1.bf16.msra.mxu1 %v2458_v42 }
 0x15b   :  { %1660 = vmatprep.subr.bf16.mxu1 %v2466_v43 }
 0x15d   :  { %854 = vmatmul.mubr.bf16.gmra.mrb[36].mxu1 %v2821_v12  ;;  %v2488_v12 = vld [vmem:[#allocation5 + $0x60] ss:$8 sps:$4 sm:$0xff]  }
 0x15e   :  { %863 = vmatprep.mubr.bf16.mxu1 %v2674_v61  ;;  %1661 = vmatpush1.bf16.msra.mxu1 %v2464_v44 }
 0x15f   :  { %1662 = vmatprep.subr.bf16.mxu1 %v2472_v45 }
 0x162   :  { %1663 = vmatpush1.bf16.msra.mxu1 %v2470_v46 }
 0x163   :  { %1664 = vmatprep.subr.bf16.mxu1 %v2478_v47 }
 0x165   :  { %864 = vmatmul.mubr.bf16.gmra.mrb[40].mxu1 %v2835_v34  ;;  %v2494_v34 = vld [vmem:[#allocation5 + $0x70] ss:$8 sps:$4 sm:$0xff]  }
 0x166   :  { %873 = vmatprep.mubr.bf16.mxu1 %v2674_v61  ;;  %1665 = vmatpush1.bf16.msra.mxu1 %v2476_v14 }
 0x167   :  { %1666 = vmatprep.subr.bf16.mxu1 %v2484_v48 }
 0x16a   :  { %1667 = vmatpush1.bf16.msra.mxu1 %v2482_v49 }
 0x16b   :  { %1668 = vmatprep.subr.bf16.mxu1 %v2490_v50 }
 0x16d   :  { %874 = vmatmul.mubr.bf16.gmra.mrb[44].mxu1 %v2833_v33  ;;  %v2506_v33 = vld [vmem:[#allocation5 + $0x90] ss:$8 sps:$4 sm:$0xff]  }
 0x16e   :  { %883 = vmatprep.mubr.bf16.mxu1 %v2674_v61  ;;  %1669 = vmatpush1.bf16.msra.mxu1 %v2488_v12  ;;  %v2548_v12 = vld [vmem:[#allocation5 + $0x200] ss:$8 sps:$4 sm:$0xff]  }
 0x16f   :  { %1670 = vmatprep.subr.bf16.mxu1 %v2496_v53 }
 0x172   :  { %1671 = vmatpush1.bf16.msra.mxu1 %v2494_v34 }
 0x173   :  { %1672 = vmatprep.subr.bf16.mxu1 %v2502_v58 }
 0x175   :  { %884 = vmatmul.mubr.bf16.gmra.mrb[48].mxu1 %v2847_v56  ;;  %v2524_v56 = vld [vmem:[#allocation5 + $0xc0] ss:$8 sps:$4 sm:$0xff]  }
 0x176   :  { %893 = vmatprep.mubr.bf16.mxu1 %v2674_v61  ;;  %1673 = vmatpush1.bf16.msra.mxu1 %v2500_v60 }
 0x177   :  { %1674 = vmatprep.subr.bf16.mxu1 %v2508_v63 }
 0x17a   :  { %1675 = vmatpush1.bf16.msra.mxu1 %v2506_v33 }
 0x17b   :  { %1676 = vmatprep.subr.bf16.mxu1 %v2514_v0 }
 0x17d   :  { %894 = vmatmul.mubr.bf16.gmra.mrb[52].mxu1 %v2845_v55  ;;  %v2536_v55 = vld [vmem:[#allocation5 + $0xe0] ss:$8 sps:$4 sm:$0xff]  }
 0x17e   :  { %903 = vmatprep.mubr.bf16.mxu1 %v2674_v61  ;;  %1677 = vmatpush1.bf16.msra.mxu1 %v2512_v1 }
 0x17f   :  { %1678 = vmatprep.subr.bf16.mxu1 %v2520_v2 }
 0x182   :  { %1679 = vmatpush1.bf16.msra.mxu1 %v2518_v3 }
 0x183   :  { %1680 = vmatprep.subr.bf16.mxu1 %v2526_v4 }
 0x185   :  { %904 = vmatmul.mubr.bf16.gmra.mrb[56].mxu1 %v2859_v18 }
 0x186   :  { %913 = vmatprep.mubr.bf16.mxu1 %v2674_v61  ;;  %1681 = vmatpush1.bf16.msra.mxu1 %v2524_v56  ;;  %v317_v61 = vsub.s32 0, %v2895_v11  ;;  %v2551_v56 = vld [vmem:[#allocation5 + $0x210] ss:$8 sps:$4 sm:$0xff]  }
 0x187   :  { %1682 = vmatprep.subr.bf16.mxu1 %v2532_v5 }
 0x188   :  { %v2909_v18 = vrot.slane %v2902_v15, %v317_v61 }
 0x18a   :  { %1683 = vmatpush1.bf16.msra.mxu1 %v2530_v6 }
 0x18b   :  { %1684 = vmatprep.subr.bf16.mxu1 %v2538_v7 }
 0x18d   :  { %914 = vmatmul.mubr.bf16.gmra.mrb[60].mxu1 %v2857_v17  ;;  %v329_v17 = vsub.s32 3, %v2895_v11 }
 0x18e   :  { %1685 = vmatpush1.bf16.msra.mxu1 %v2536_v55 }
 0x18f   :  { %1686 = vmatprep.subr.bf16.mxu1 %v2544_v8  ;;  %v2920_v21 = vrot.slane %v2902_v15, %v329_v17  ;;  %v2556_v8 = vld [vmem:[#allocation5 + $0x224] ss:$8 sps:$4 sm:$0xff]  }
 0x192   :  { %1687 = vmatpush1.bf16.msra.mxu1 %v2542_v9 }
 0x193   :  { %2238 = vmatprep.subr.bf16.mxu1 %v2550_v59 }
 0x1e8   :  { %v619_v62 = vpop.f32.mrb[0].mxu1  ;;  %v732_v22 = vpop.f32.mrb[16].mxu0 }
 0x1e9   :  { %v620_v23 = vadd.f32 %v619_v62, %v2909_v18  ;;  %v733_v24 = vadd.f32 %v732_v22, %v2912_v19  ;;  %v621_v25 = vpop.f32.mrb[1].mxu1  ;;  %v734_v26 = vpop.f32.mrb[17].mxu0 }
 0x1ea   :  { %v622_v27 = vadd.f32 %v621_v25, %v2917_v20  ;;  %v735_v28 = vadd.f32 %v734_v26, %v2920_v21  ;;  %v623_v29 = vpop.f32.mrb[2].mxu1  ;;  %v736_v30 = vpop.f32.mrb[18].mxu0 }
 0x1eb   :  { %v624_v31 = vadd.f32 %v623_v29, %v2909_v18  ;;  %v737_v32 = vadd.f32 %v736_v30, %v2912_v19  ;;  %v625_v35 = vpop.f32.mrb[3].mxu1  ;;  %v738_v36 = vpop.f32.mrb[19].mxu0  ;;  %v924_v39 = vmax.f32 %v620_v23, 0.0  ;;  %v926_v40 = vmax.f32 %v733_v24, 0.0 }
 0x1ec   :  { %v626_v37 = vadd.f32 %v625_v35, %v2917_v20  ;;  %v739_v38 = vadd.f32 %v738_v36, %v2920_v21  ;;  %v925_v43 = vmax.f32 %v622_v27, 0.0  ;;  %v927_v44 = vmax.f32 %v735_v28, 0.0  ;;  %v2554_v27 = vld [vmem:[#allocation5 + $0x220] ss:$8 sps:$4 sm:$0xff]  }
 0x1ed   :  { %v930_v41 = vmax.f32 %v624_v31, 0.0  ;;  %v932_v42 = vmax.f32 %v737_v32, 0.0  ;;  %v2559_v32 = vld [vmem:[#allocation5 + $0x234] ss:$8 sps:$4 sm:$0xff]  }
 0x1ee   :  { %v931_v45 = vmax.f32 %v626_v37, 0.0  ;;  %v933_v46 = vmax.f32 %v739_v38, 0.0 }
 0x1ef   :  { %v1020_v47 = vpack.c.bf16 %v930_v41, %v924_v39  ;;  %v1022_v14 = vpack.c.bf16 %v932_v42, %v926_v40 }
 0x1f0   :  { %v1021_v48 = vpack.c.bf16 %v931_v45, %v925_v43  ;;  %v1023_v49 = vpack.c.bf16 %v933_v46, %v927_v44  ;;  %v629_v50 = vpop.f32.mrb[4].mxu1  ;;  %v742_v51 = vpop.f32.mrb[20].mxu0  ;;  %v2557_v45 = vld [vmem:[#allocation5 + $0x230] ss:$8 sps:$4 sm:$0xff]  }
 0x1f1   :  { %v630_v52 = vadd.f32 %v629_v50, %v2909_v18  ;;  %v743_v53 = vadd.f32 %v742_v51, %v2912_v19  ;;  %v631_v54 = vpop.f32.mrb[5].mxu1  ;;  %v744_v34 = vpop.f32.mrb[21].mxu0 }
 0x1f2   :  { %v632_v58 = vadd.f32 %v631_v54, %v2917_v20  ;;  %v745_v59 = vadd.f32 %v744_v34, %v2920_v21  ;;  %v633_v60 = vpop.f32.mrb[6].mxu1  ;;  %v746_v63 = vpop.f32.mrb[22].mxu0  ;;  %1688 = vmatprep.mubr.bf16.mxu1 %v1021_v48  ;;  %1801 = vmatprep.mubr.bf16.mxu0 %v1023_v49  ;;  %v2562_v49 = vld [vmem:[#allocation5 + $0x244] ss:$8 sps:$4 sm:$0xff]  }
 0x1f3   :  { %v634_v33 = vadd.f32 %v633_v60, %v2909_v18  ;;  %v747_v0 = vadd.f32 %v746_v63, %v2912_v19  ;;  %v635_v1 = vpop.f32.mrb[7].mxu1  ;;  %v748_v2 = vpop.f32.mrb[23].mxu0  ;;  %1689 = vmatmul.mubr.bf16.vlgmr.msra.gmra.mrb[64].mxu1 %v1020_v47  ;;  %1802 = vmatmul.mubr.bf16.vlgmr.msra.gmra.mrb[48].mxu0 %v1022_v14  ;;  %v936_v5 = vmax.f32 %v630_v52, 0.0  ;;  %v938_v6 = vmax.f32 %v743_v53, 0.0  ;;  %v2560_v60 = vld [vmem:[#allocation5 + $0x240] ss:$8 sps:$4 sm:$0xff]  }
 0x1f4   :  { %v636_v3 = vadd.f32 %v635_v1, %v2917_v20  ;;  %v749_v4 = vadd.f32 %v748_v2, %v2920_v21  ;;  %1883 = vmatpush1.bf16.msra.mxu0 %v2548_v12  ;;  %2254 = vmatpush1.bf16.msra.mxu1 %v2548_v12  ;;  %v937_v9 = vmax.f32 %v632_v58, 0.0  ;;  %v939_v10 = vmax.f32 %v745_v59, 0.0  ;;  %v2565_v2 = vld [vmem:[#allocation5 + $0x254] ss:$8 sps:$4 sm:$0xff]  }
 0x1f5   :  { %v942_v7 = vmax.f32 %v634_v33, 0.0  ;;  %v944_v55 = vmax.f32 %v747_v0, 0.0  ;;  %1884 = vmatprep.subr.bf16.mxu0 %v2553_v57  ;;  %2239 = vmatprep.subr.bf16.mxu1 %v2553_v57 }
 0x1f6   :  { %v943_v13 = vmax.f32 %v636_v3, 0.0  ;;  %v945_v17 = vmax.f32 %v749_v4, 0.0 }
 0x1f7   :  { %v1026_v62 = vpack.c.bf16 %v942_v7, %v936_v5  ;;  %v1028_v22 = vpack.c.bf16 %v944_v55, %v938_v6 }
 0x1f8   :  { %v1027_v23 = vpack.c.bf16 %v943_v13, %v937_v9  ;;  %v1029_v24 = vpack.c.bf16 %v945_v17, %v939_v10  ;;  %v639_v25 = vpop.f32.mrb[8].mxu1  ;;  %v752_v26 = vpop.f32.mrb[24].mxu0  ;;  %1885 = vmatpush1.bf16.msra.mxu0 %v2551_v56  ;;  %2255 = vmatpush1.bf16.msra.mxu1 %v2551_v56  ;;  %v2563_v13 = vld [vmem:[#allocation5 + $0x250] ss:$8 sps:$4 sm:$0xff]  }
 0x1f9   :  { %v640_v28 = vadd.f32 %v639_v25, %v2909_v18  ;;  %v753_v29 = vadd.f32 %v752_v26, %v2912_v19  ;;  %v641_v30 = vpop.f32.mrb[9].mxu1  ;;  %v754_v31 = vpop.f32.mrb[25].mxu0  ;;  %1886 = vmatprep.subr.bf16.mxu0 %v2556_v8  ;;  %2240 = vmatprep.subr.bf16.mxu1 %v2556_v8 }
 0x1fa   :  { %v642_v35 = vadd.f32 %v641_v30, %v2917_v20  ;;  %v755_v36 = vadd.f32 %v754_v31, %v2920_v21  ;;  %v643_v37 = vpop.f32.mrb[10].mxu1  ;;  %v756_v38 = vpop.f32.mrb[26].mxu0  ;;  %1698 = vmatprep.mubr.bf16.mxu1 %v1027_v23  ;;  %1811 = vmatprep.mubr.bf16.mxu0 %v1029_v24  ;;  %v2568_v24 = vld [vmem:[#allocation5 + $0x264] ss:$8 sps:$4 sm:$0xff]  }
 0x1fb   :  { %v644_v39 = vadd.f32 %v643_v37, %v2909_v18  ;;  %v757_v40 = vadd.f32 %v756_v38, %v2912_v19  ;;  %v645_v41 = vpop.f32.mrb[11].mxu1  ;;  %v758_v42 = vpop.f32.mrb[27].mxu0  ;;  %1699 = vmatmul.mubr.bf16.gmra.mrb[68].mxu1 %v1026_v62  ;;  %1812 = vmatmul.mubr.bf16.gmra.mrb[52].mxu0 %v1028_v22  ;;  %v948_v46 = vmax.f32 %v640_v28, 0.0  ;;  %v950_v47 = vmax.f32 %v753_v29, 0.0  ;;  %v2566_v37 = vld [vmem:[#allocation5 + $0x260] ss:$8 sps:$4 sm:$0xff]  }
 0x1fc   :  { %v646_v43 = vadd.f32 %v645_v41, %v2917_v20  ;;  %v759_v44 = vadd.f32 %v758_v42, %v2920_v21  ;;  %1887 = vmatpush1.bf16.msra.mxu0 %v2554_v27  ;;  %2256 = vmatpush1.bf16.msra.mxu1 %v2554_v27  ;;  %v949_v50 = vmax.f32 %v642_v35, 0.0  ;;  %v951_v51 = vmax.f32 %v755_v36, 0.0  ;;  %v2571_v42 = vld [vmem:[#allocation5 + $0x274] ss:$8 sps:$4 sm:$0xff]  }
 0x1fd   :  { %v954_v14 = vmax.f32 %v644_v39, 0.0  ;;  %v956_v48 = vmax.f32 %v757_v40, 0.0  ;;  %1888 = vmatprep.subr.bf16.mxu0 %v2559_v32  ;;  %2241 = vmatprep.subr.bf16.mxu1 %v2559_v32 }
 0x1fe   :  { %v955_v12 = vmax.f32 %v646_v43, 0.0  ;;  %v957_v52 = vmax.f32 %v759_v44, 0.0 }
 0x1ff   :  { %v1032_v53 = vpack.c.bf16 %v954_v14, %v948_v46  ;;  %v1034_v54 = vpack.c.bf16 %v956_v48, %v950_v47 }
 0x200   :  { %v1033_v34 = vpack.c.bf16 %v955_v12, %v949_v50  ;;  %v1035_v57 = vpack.c.bf16 %v957_v52, %v951_v51  ;;  %v649_v58 = vpop.f32.mrb[12].mxu1  ;;  %v762_v59 = vpop.f32.mrb[28].mxu0  ;;  %1889 = vmatpush1.bf16.msra.mxu0 %v2557_v45  ;;  %2257 = vmatpush1.bf16.msra.mxu1 %v2557_v45  ;;  %v2569_v12 = vld [vmem:[#allocation5 + $0x270] ss:$8 sps:$4 sm:$0xff]  }
 0x201   :  { %v650_v63 = vadd.f32 %v649_v58, %v2909_v18  ;;  %v763_v33 = vadd.f32 %v762_v59, %v2912_v19  ;;  %v651_v0 = vpop.f32.mrb[13].mxu1  ;;  %v764_v1 = vpop.f32.mrb[29].mxu0  ;;  %1890 = vmatprep.subr.bf16.mxu0 %v2562_v49  ;;  %2242 = vmatprep.subr.bf16.mxu1 %v2562_v49 }
 0x202   :  { %v652_v3 = vadd.f32 %v651_v0, %v2917_v20  ;;  %v765_v4 = vadd.f32 %v764_v1, %v2920_v21  ;;  %v653_v56 = vpop.f32.mrb[14].mxu1  ;;  %v766_v5 = vpop.f32.mrb[30].mxu0  ;;  %1708 = vmatprep.mubr.bf16.mxu1 %v1033_v34  ;;  %1821 = vmatprep.mubr.bf16.mxu0 %v1035_v57  ;;  %v2574_v57 = vld [vmem:[#allocation5 + $0x284] ss:$8 sps:$4 sm:$0xff]  }
 0x203   :  { %v654_v6 = vadd.f32 %v653_v56, %v2909_v18  ;;  %v767_v7 = vadd.f32 %v766_v5, %v2912_v19  ;;  %v655_v55 = vpop.f32.mrb[15].mxu1  ;;  %v768_v8 = vpop.f32.mrb[31].mxu0  ;;  %1709 = vmatmul.mubr.bf16.gmra.mrb[72].mxu1 %v1032_v53  ;;  %1822 = vmatmul.mubr.bf16.gmra.mrb[56].mxu0 %v1034_v54  ;;  %v960_v17 = vmax.f32 %v650_v63, 0.0  ;;  %v962_v62 = vmax.f32 %v763_v33, 0.0  ;;  %v2572_v56 = vld [vmem:[#allocation5 + $0x280] ss:$8 sps:$4 sm:$0xff]  }
 0x204   :  { %v656_v9 = vadd.f32 %v655_v55, %v2917_v20  ;;  %v769_v10 = vadd.f32 %v768_v8, %v2920_v21  ;;  %1891 = vmatpush1.bf16.msra.mxu0 %v2560_v60  ;;  %2258 = vmatpush1.bf16.msra.mxu1 %v2560_v60  ;;  %v961_v25 = vmax.f32 %v652_v3, 0.0  ;;  %v963_v26 = vmax.f32 %v765_v4, 0.0  ;;  %v2577_v8 = vld [vmem:[#allocation5 + $0x294] ss:$8 sps:$4 sm:$0xff]  }
 0x205   :  { %v966_v22 = vmax.f32 %v654_v6, 0.0  ;;  %v968_v23 = vmax.f32 %v767_v7, 0.0  ;;  %1892 = vmatprep.subr.bf16.mxu0 %v2565_v2  ;;  %2243 = vmatprep.subr.bf16.mxu1 %v2565_v2 }
 0x206   :  { %v967_v27 = vmax.f32 %v656_v9, 0.0  ;;  %v969_v28 = vmax.f32 %v769_v10, 0.0 }
 0x207   :  { %v1038_v29 = vpack.c.bf16 %v966_v22, %v960_v17  ;;  %v1040_v30 = vpack.c.bf16 %v968_v23, %v962_v62 }
 0x208   :  { %v1039_v31 = vpack.c.bf16 %v967_v27, %v961_v25  ;;  %v1041_v32 = vpack.c.bf16 %v969_v28, %v963_v26  ;;  %v659_v35 = vpop.f32.mrb[16].mxu1  ;;  %v772_v36 = vpop.f32.mrb[32].mxu0  ;;  %1893 = vmatpush1.bf16.msra.mxu0 %v2563_v13  ;;  %2259 = vmatpush1.bf16.msra.mxu1 %v2563_v13  ;;  %v2575_v27 = vld [vmem:[#allocation5 + $0x290] ss:$8 sps:$4 sm:$0xff]  }
 0x209   :  { %v660_v38 = vadd.f32 %v659_v35, %v2909_v18  ;;  %v773_v39 = vadd.f32 %v772_v36, %v2912_v19  ;;  %v661_v40 = vpop.f32.mrb[17].mxu1  ;;  %v774_v41 = vpop.f32.mrb[33].mxu0  ;;  %1894 = vmatprep.subr.bf16.mxu0 %v2568_v24  ;;  %2244 = vmatprep.subr.bf16.mxu1 %v2568_v24 }
 0x20a   :  { %v662_v43 = vadd.f32 %v661_v40, %v2917_v20  ;;  %v775_v44 = vadd.f32 %v774_v41, %v2920_v21  ;;  %v663_v45 = vpop.f32.mrb[18].mxu1  ;;  %v776_v46 = vpop.f32.mrb[34].mxu0  ;;  %1718 = vmatprep.mubr.bf16.mxu1 %v1039_v31  ;;  %1831 = vmatprep.mubr.bf16.mxu0 %v1041_v32  ;;  %v2580_v32 = vld [vmem:[#allocation5 + $0x2a4] ss:$8 sps:$4 sm:$0xff]  }
 0x20b   :  { %v664_v47 = vadd.f32 %v663_v45, %v2909_v18  ;;  %v777_v14 = vadd.f32 %v776_v46, %v2912_v19  ;;  %v665_v48 = vpop.f32.mrb[19].mxu1  ;;  %v778_v49 = vpop.f32.mrb[35].mxu0  ;;  %1719 = vmatmul.mubr.bf16.gmra.mrb[76].mxu1 %v1038_v29  ;;  %1832 = vmatmul.mubr.bf16.gmra.mrb[60].mxu0 %v1040_v30  ;;  %v972_v52 = vmax.f32 %v660_v38, 0.0  ;;  %v974_v53 = vmax.f32 %v773_v39, 0.0  ;;  %v2578_v45 = vld [vmem:[#allocation5 + $0x2a0] ss:$8 sps:$4 sm:$0xff]  }
 0x20c   :  { %v666_v50 = vadd.f32 %v665_v48, %v2917_v20  ;;  %v779_v51 = vadd.f32 %v778_v49, %v2920_v21  ;;  %1895 = vmatpush1.bf16.msra.mxu0 %v2566_v37  ;;  %2260 = vmatpush1.bf16.msra.mxu1 %v2566_v37  ;;  %v973_v58 = vmax.f32 %v662_v43, 0.0  ;;  %v975_v59 = vmax.f32 %v775_v44, 0.0  ;;  %v2583_v49 = vld [vmem:[#allocation5 + $0x2b4] ss:$8 sps:$4 sm:$0xff]  }
 0x20d   :  { %v978_v54 = vmax.f32 %v664_v47, 0.0  ;;  %v980_v34 = vmax.f32 %v777_v14, 0.0  ;;  %1896 = vmatprep.subr.bf16.mxu0 %v2571_v42  ;;  %2245 = vmatprep.subr.bf16.mxu1 %v2571_v42 }
 0x20e   :  { %v979_v60 = vmax.f32 %v666_v50, 0.0  ;;  %v981_v63 = vmax.f32 %v779_v51, 0.0 }
 0x20f   :  { %v1044_v33 = vpack.c.bf16 %v978_v54, %v972_v52  ;;  %v1046_v0 = vpack.c.bf16 %v980_v34, %v974_v53 }
 0x210   :  { %v1045_v1 = vpack.c.bf16 %v979_v60, %v973_v58  ;;  %v1047_v2 = vpack.c.bf16 %v981_v63, %v975_v59  ;;  %v669_v3 = vpop.f32.mrb[20].mxu1  ;;  %v782_v4 = vpop.f32.mrb[36].mxu0  ;;  %1897 = vmatpush1.bf16.msra.mxu0 %v2569_v12  ;;  %2261 = vmatpush1.bf16.msra.mxu1 %v2569_v12  ;;  %v2581_v60 = vld [vmem:[#allocation5 + $0x2b0] ss:$8 sps:$4 sm:$0xff]  }
 0x211   :  { %v670_v5 = vadd.f32 %v669_v3, %v2909_v18  ;;  %v783_v6 = vadd.f32 %v782_v4, %v2912_v19  ;;  %v671_v7 = vpop.f32.mrb[21].mxu1  ;;  %v784_v55 = vpop.f32.mrb[37].mxu0  ;;  %1898 = vmatprep.subr.bf16.mxu0 %v2574_v57  ;;  %2246 = vmatprep.subr.bf16.mxu1 %v2574_v57 }
 0x212   :  { %v672_v9 = vadd.f32 %v671_v7, %v2917_v20  ;;  %v785_v10 = vadd.f32 %v784_v55, %v2920_v21  ;;  %v673_v13 = vpop.f32.mrb[22].mxu1  ;;  %v786_v17 = vpop.f32.mrb[38].mxu0  ;;  %1728 = vmatprep.mubr.bf16.mxu1 %v1045_v1  ;;  %1841 = vmatprep.mubr.bf16.mxu0 %v1047_v2  ;;  %v2586_v2 = vld [vmem:[#allocation5 + $0x2c4] ss:$8 sps:$4 sm:$0xff]   ;;  %v333_v55 = vsub.s32 4, %v2895_v11 }
 0x213   :  { %v674_v62 = vadd.f32 %v673_v13, %v2909_v18  ;;  %v787_v22 = vadd.f32 %v786_v17, %v2912_v19  ;;  %v675_v23 = vpop.f32.mrb[23].mxu1  ;;  %v788_v24 = vpop.f32.mrb[39].mxu0  ;;  %1729 = vmatmul.mubr.bf16.gmra.mrb[80].mxu1 %v1044_v33  ;;  %1842 = vmatmul.mubr.bf16.gmra.mrb[64].mxu0 %v1046_v0  ;;  %v984_v28 = vmax.f32 %v670_v5, 0.0  ;;  %v986_v29 = vmax.f32 %v783_v6, 0.0  ;;  %v2584_v17 = vld [vmem:[#allocation5 + $0x2c0] ss:$8 sps:$4 sm:$0xff]  }
 0x214   :  { %v676_v25 = vadd.f32 %v675_v23, %v2917_v20  ;;  %v789_v26 = vadd.f32 %v788_v24, %v2920_v21  ;;  %1899 = vmatpush1.bf16.msra.mxu0 %v2572_v56  ;;  %2262 = vmatpush1.bf16.msra.mxu1 %v2572_v56  ;;  %v985_v35 = vmax.f32 %v672_v9, 0.0  ;;  %v987_v36 = vmax.f32 %v785_v10, 0.0 }
 0x215   :  { %v990_v30 = vmax.f32 %v674_v62, 0.0  ;;  %v992_v31 = vmax.f32 %v787_v22, 0.0  ;;  %1900 = vmatprep.subr.bf16.mxu0 %v2577_v8  ;;  %2247 = vmatprep.subr.bf16.mxu1 %v2577_v8  ;;  %v337_v62 = vsub.s32 5, %v2895_v11 }
 0x216   :  { %v991_v37 = vmax.f32 %v676_v25, 0.0  ;;  %v993_v38 = vmax.f32 %v789_v26, 0.0  ;;  %v2589_v26 = vld [vmem:[#allocation5 + $0x2d4] ss:$8 sps:$4 sm:$0xff]  }
 0x217   :  { %v1050_v39 = vpack.c.bf16 %v990_v30, %v984_v28  ;;  %v1052_v40 = vpack.c.bf16 %v992_v31, %v986_v29 }
 0x218   :  { %v1051_v41 = vpack.c.bf16 %v991_v37, %v985_v35  ;;  %v1053_v42 = vpack.c.bf16 %v993_v38, %v987_v36  ;;  %v679_v43 = vpop.f32.mrb[24].mxu1  ;;  %v792_v44 = vpop.f32.mrb[40].mxu0  ;;  %1901 = vmatpush1.bf16.msra.mxu0 %v2575_v27  ;;  %2263 = vmatpush1.bf16.msra.mxu1 %v2575_v27  ;;  %v2987_v37 = vrot.slane %v2902_v15, %v333_v55 }
 0x219   :  { %v680_v46 = vadd.f32 %v679_v43, %v2909_v18  ;;  %v793_v47 = vadd.f32 %v792_v44, %v2912_v19  ;;  %v681_v14 = vpop.f32.mrb[25].mxu1  ;;  %v794_v48 = vpop.f32.mrb[41].mxu0  ;;  %1902 = vmatprep.subr.bf16.mxu0 %v2580_v32  ;;  %2248 = vmatprep.subr.bf16.mxu1 %v2580_v32  ;;  %v2592_v44 = vld [vmem:[#allocation5 + $0x2e4] ss:$8 sps:$4 sm:$0xff]  }
 0x21a   :  { %v682_v50 = vadd.f32 %v681_v14, %v2917_v20  ;;  %v795_v51 = vadd.f32 %v794_v48, %v2920_v21  ;;  %v683_v12 = vpop.f32.mrb[26].mxu1  ;;  %v796_v52 = vpop.f32.mrb[42].mxu0  ;;  %1738 = vmatprep.mubr.bf16.mxu1 %v1051_v41  ;;  %1851 = vmatprep.mubr.bf16.mxu0 %v1053_v42  ;;  %v2992_v41 = vrot.slane %v2902_v15, %v337_v62  ;;  %v2590_v15 = vld [vmem:[#allocation5 + $0x2e0] ss:$8 sps:$4 sm:$0xff]  }
 0x21b   :  { %v684_v53 = vadd.f32 %v683_v12, %v2909_v18  ;;  %v797_v54 = vadd.f32 %v796_v52, %v2912_v19  ;;  %v685_v34 = vpop.f32.mrb[27].mxu1  ;;  %v798_v57 = vpop.f32.mrb[43].mxu0  ;;  %1739 = vmatmul.mubr.bf16.gmra.mrb[84].mxu1 %v1050_v39  ;;  %1852 = vmatmul.mubr.bf16.gmra.mrb[68].mxu0 %v1052_v40  ;;  %v996_v63 = vmax.f32 %v680_v46, 0.0  ;;  %v998_v33 = vmax.f32 %v793_v47, 0.0  ;;  %v2587_v40 = vld [vmem:[#allocation5 + $0x2d0] ss:$8 sps:$4 sm:$0xff]  }
 0x21c   :  { %v686_v58 = vadd.f32 %v685_v34, %v2917_v20  ;;  %v799_v59 = vadd.f32 %v798_v57, %v2920_v21  ;;  %1903 = vmatpush1.bf16.msra.mxu0 %v2578_v45  ;;  %2264 = vmatpush1.bf16.msra.mxu1 %v2578_v45  ;;  %v997_v3 = vmax.f32 %v682_v50, 0.0  ;;  %v999_v4 = vmax.f32 %v795_v51, 0.0  ;;  %v2595_v52 = vld [vmem:[#allocation5 + $0x2f4] ss:$8 sps:$4 sm:$0xff]  }
 0x21d   :  { %v1002_v0 = vmax.f32 %v684_v53, 0.0  ;;  %v1004_v1 = vmax.f32 %v797_v54, 0.0  ;;  %1904 = vmatprep.subr.bf16.mxu0 %v2583_v49  ;;  %2249 = vmatprep.subr.bf16.mxu1 %v2583_v49 }
 0x21e   :  { %v1003_v56 = vmax.f32 %v686_v58, 0.0  ;;  %v1005_v5 = vmax.f32 %v799_v59, 0.0  ;;  %v2593_v59 = vld [vmem:[#allocation5 + $0x2f0] ss:$8 sps:$4 sm:$0xff]  }
 0x21f   :  { %v1056_v6 = vpack.c.bf16 %v1002_v0, %v996_v63  ;;  %v1058_v7 = vpack.c.bf16 %v1004_v1, %v998_v33 }
 0x220   :  { %v1057_v8 = vpack.c.bf16 %v1003_v56, %v997_v3  ;;  %v1059_v9 = vpack.c.bf16 %v1005_v5, %v999_v4  ;;  %v689_v10 = vpop.f32.mrb[28].mxu1  ;;  %v802_v13 = vpop.f32.mrb[44].mxu0  ;;  %1905 = vmatpush1.bf16.msra.mxu0 %v2581_v60  ;;  %2265 = vmatpush1.bf16.msra.mxu1 %v2581_v60 }
 0x221   :  { %v690_v22 = vadd.f32 %v689_v10, %v2909_v18  ;;  %v803_v23 = vadd.f32 %v802_v13, %v2912_v19  ;;  %v691_v24 = vpop.f32.mrb[29].mxu1  ;;  %v804_v25 = vpop.f32.mrb[45].mxu0  ;;  %1906 = vmatprep.subr.bf16.mxu0 %v2586_v2  ;;  %2250 = vmatprep.subr.bf16.mxu1 %v2586_v2 }
 0x222   :  { %v692_v27 = vadd.f32 %v691_v24, %v2917_v20  ;;  %v805_v28 = vadd.f32 %v804_v25, %v2920_v21  ;;  %v693_v29 = vpop.f32.mrb[30].mxu1  ;;  %v806_v30 = vpop.f32.mrb[46].mxu0  ;;  %1748 = vmatprep.mubr.bf16.mxu1 %v1057_v8  ;;  %1861 = vmatprep.mubr.bf16.mxu0 %v1059_v9 }
 0x223   :  { %v694_v31 = vadd.f32 %v693_v29, %v2909_v18  ;;  %v807_v32 = vadd.f32 %v806_v30, %v2912_v19  ;;  %v695_v35 = vpop.f32.mrb[31].mxu1  ;;  %v808_v36 = vpop.f32.mrb[47].mxu0  ;;  %1749 = vmatmul.mubr.bf16.gmra.mrb[88].mxu1 %v1056_v6  ;;  %1862 = vmatmul.mubr.bf16.gmra.mrb[72].mxu0 %v1058_v7  ;;  %v1008_v18 = vmax.f32 %v690_v22, 0.0  ;;  %v1010_v42 = vmax.f32 %v803_v23, 0.0 }
 0x224   :  { %v696_v38 = vadd.f32 %v695_v35, %v2917_v20  ;;  %v809_v39 = vadd.f32 %v808_v36, %v2920_v21  ;;  %1907 = vmatpush1.bf16.msra.mxu0 %v2584_v17  ;;  %2266 = vmatpush1.bf16.msra.mxu1 %v2584_v17  ;;  %v1009_v45 = vmax.f32 %v692_v27, 0.0  ;;  %v1011_v46 = vmax.f32 %v805_v28, 0.0 }
 0x225   :  { %v1014_v19 = vmax.f32 %v694_v31, 0.0  ;;  %v1016_v43 = vmax.f32 %v807_v32, 0.0  ;;  %1908 = vmatprep.subr.bf16.mxu0 %v2589_v26  ;;  %2251 = vmatprep.subr.bf16.mxu1 %v2589_v26 }
 0x226   :  { %v1015_v47 = vmax.f32 %v696_v38, 0.0  ;;  %v1017_v14 = vmax.f32 %v809_v39, 0.0 }
 0x227   :  { %v1062_v20 = vpack.c.bf16 %v1014_v19, %v1008_v18  ;;  %v1064_v48 = vpack.c.bf16 %v1016_v43, %v1010_v42 }
 0x228   :  { %v1063_v21 = vpack.c.bf16 %v1015_v47, %v1009_v45  ;;  %v1065_v49 = vpack.c.bf16 %v1017_v14, %v1011_v46  ;;  %v845_v50 = vpop.f32.mrb[32].mxu1  ;;  %1909 = vmatpush1.bf16.msra.mxu0 %v2587_v40  ;;  %2267 = vmatpush1.bf16.msra.mxu1 %v2587_v40 }
 0x229   :  { %v846_v51 = vadd.f32 %v845_v50, %v2987_v37  ;;  %v847_v12 = vpop.f32.mrb[33].mxu1  ;;  %1910 = vmatprep.subr.bf16.mxu0 %v2592_v44  ;;  %2252 = vmatprep.subr.bf16.mxu1 %v2592_v44 }
 0x22a   :  { %v848_v53 = vadd.f32 %v847_v12, %v2992_v41  ;;  %v849_v54 = vpop.f32.mrb[34].mxu1  ;;  %1758 = vmatprep.mubr.bf16.mxu1 %v1063_v21  ;;  %1871 = vmatprep.mubr.bf16.mxu0 %v1065_v49 }
 0x22b   :  { %v850_v34 = vadd.f32 %v849_v54, %v2987_v37  ;;  %v851_v57 = vpop.f32.mrb[35].mxu1  ;;  %1759 = vmatmul.mubr.bf16.gmra.mrb[92].mxu1 %v1062_v20  ;;  %1872 = vmatmul.mubr.bf16.gmra.mrb[76].mxu0 %v1064_v48  ;;  %v928_v60 = vmax.f32 %v846_v51, 0.0 }
 0x22c   :  { %v852_v58 = vadd.f32 %v851_v57, %v2992_v41  ;;  %1911 = vmatpush1.bf16.msra.mxu0 %v2590_v15  ;;  %2268 = vmatpush1.bf16.msra.mxu1 %v2590_v15  ;;  %v929_v33 = vmax.f32 %v848_v53, 0.0 }
 0x22d   :  { %v934_v63 = vmax.f32 %v850_v34, 0.0  ;;  %1912 = vmatprep.subr.bf16.mxu0 %v2595_v52  ;;  %2253 = vmatprep.subr.bf16.mxu1 %v2595_v52 }
 0x22e   :  { %v935_v0 = vmax.f32 %v852_v58, 0.0 }
 0x22f   :  { %v1024_v1 = vpack.c.bf16 %v934_v63, %v928_v60 }
 0x230   :  { %v1025_v2 = vpack.c.bf16 %v935_v0, %v929_v33  ;;  %v855_v3 = vpop.f32.mrb[36].mxu1  ;;  %1913 = vmatpush1.bf16.msra.mxu0 %v2593_v59  ;;  %2269 = vmatpush1.bf16.msra.mxu1 %v2593_v59 }
 0x231   :  { %v856_v4 = vadd.f32 %v855_v3, %v2987_v37  ;;  %v857_v56 = vpop.f32.mrb[37].mxu1 }
 0x232   :  { %v858_v5 = vadd.f32 %v857_v56, %v2992_v41  ;;  %v859_v6 = vpop.f32.mrb[38].mxu1  ;;  %1914 = vmatprep.mubr.bf16.mxu0 %v1025_v2 }
 0x233   :  { %v860_v7 = vadd.f32 %v859_v6, %v2987_v37  ;;  %v861_v55 = vpop.f32.mrb[39].mxu1  ;;  %1915 = vmatmul.mubr.bf16.vlgmr.msra.gmra.mrb[48].mxu0 %v1024_v1  ;;  %v940_v9 = vmax.f32 %v856_v4, 0.0 }
 0x234   :  { %v862_v8 = vadd.f32 %v861_v55, %v2992_v41  ;;  %v941_v13 = vmax.f32 %v858_v5, 0.0 }
 0x235   :  { %v946_v10 = vmax.f32 %v860_v7, 0.0 }
 0x236   :  { %v947_v17 = vmax.f32 %v862_v8, 0.0 }
 0x237   :  { %v1030_v62 = vpack.c.bf16 %v946_v10, %v940_v9 }
 0x238   :  { %v1031_v22 = vpack.c.bf16 %v947_v17, %v941_v13  ;;  %v865_v23 = vpop.f32.mrb[40].mxu1 }
 0x239   :  { %v866_v24 = vadd.f32 %v865_v23, %v2987_v37  ;;  %v867_v25 = vpop.f32.mrb[41].mxu1 }
 0x23a   :  { %v868_v26 = vadd.f32 %v867_v25, %v2992_v41  ;;  %v869_v27 = vpop.f32.mrb[42].mxu1  ;;  %1924 = vmatprep.mubr.bf16.mxu0 %v1031_v22 }
 0x23b   :  { %v870_v28 = vadd.f32 %v869_v27, %v2987_v37  ;;  %v871_v29 = vpop.f32.mrb[43].mxu1  ;;  %1925 = vmatmul.mubr.bf16.gmra.mrb[52].mxu0 %v1030_v62  ;;  %v952_v31 = vmax.f32 %v866_v24, 0.0 }
 0x23c   :  { %v872_v30 = vadd.f32 %v871_v29, %v2992_v41  ;;  %v953_v35 = vmax.f32 %v868_v26, 0.0 }
 0x23d   :  { %v958_v32 = vmax.f32 %v870_v28, 0.0 }
 0x23e   :  { %v959_v36 = vmax.f32 %v872_v30, 0.0 }
 0x23f   :  { %v1036_v38 = vpack.c.bf16 %v958_v32, %v952_v31 }
 0x240   :  { %v1037_v39 = vpack.c.bf16 %v959_v36, %v953_v35  ;;  %v875_v40 = vpop.f32.mrb[44].mxu1 }
 0x241   :  { %v876_v18 = vadd.f32 %v875_v40, %v2987_v37  ;;  %v877_v42 = vpop.f32.mrb[45].mxu1 }
 0x242   :  { %v878_v19 = vadd.f32 %v877_v42, %v2992_v41  ;;  %v879_v43 = vpop.f32.mrb[46].mxu1  ;;  %1934 = vmatprep.mubr.bf16.mxu0 %v1037_v39 }
 0x243   :  { %v880_v44 = vadd.f32 %v879_v43, %v2987_v37  ;;  %v881_v45 = vpop.f32.mrb[47].mxu1  ;;  %1935 = vmatmul.mubr.bf16.gmra.mrb[56].mxu0 %v1036_v38  ;;  %v964_v47 = vmax.f32 %v876_v18, 0.0 }
 0x244   :  { %v882_v46 = vadd.f32 %v881_v45, %v2992_v41  ;;  %v965_v20 = vmax.f32 %v878_v19, 0.0 }
 0x245   :  { %v970_v14 = vmax.f32 %v880_v44, 0.0 }
 0x246   :  { %v971_v48 = vmax.f32 %v882_v46, 0.0 }
 0x247   :  { %v1042_v21 = vpack.c.bf16 %v970_v14, %v964_v47 }
 0x248   :  { %v1043_v49 = vpack.c.bf16 %v971_v48, %v965_v20  ;;  %v885_v50 = vpop.f32.mrb[48].mxu1 }
 0x249   :  { %v886_v15 = vadd.f32 %v885_v50, %v2987_v37  ;;  %v887_v51 = vpop.f32.mrb[49].mxu1 }
 0x24a   :  { %v888_v12 = vadd.f32 %v887_v51, %v2992_v41  ;;  %v889_v52 = vpop.f32.mrb[50].mxu1  ;;  %1944 = vmatprep.mubr.bf16.mxu0 %v1043_v49 }
 0x24b   :  { %v890_v53 = vadd.f32 %v889_v52, %v2987_v37  ;;  %v891_v54 = vpop.f32.mrb[51].mxu1  ;;  %1945 = vmatmul.mubr.bf16.gmra.mrb[60].mxu0 %v1042_v21  ;;  %v976_v57 = vmax.f32 %v886_v15, 0.0 }
 0x24c   :  { %v892_v34 = vadd.f32 %v891_v54, %v2992_v41  ;;  %v977_v59 = vmax.f32 %v888_v12, 0.0 }
 0x24d   :  { %v982_v58 = vmax.f32 %v890_v53, 0.0 }
 0x24e   :  { %v983_v60 = vmax.f32 %v892_v34, 0.0 }
 0x24f   :  { %v1048_v63 = vpack.c.bf16 %v982_v58, %v976_v57 }
 0x250   :  { %v1049_v33 = vpack.c.bf16 %v983_v60, %v977_v59  ;;  %v895_v0 = vpop.f32.mrb[52].mxu1 }
 0x251   :  { %v896_v1 = vadd.f32 %v895_v0, %v2987_v37  ;;  %v897_v2 = vpop.f32.mrb[53].mxu1 }
 0x252   :  { %v898_v3 = vadd.f32 %v897_v2, %v2992_v41  ;;  %v899_v4 = vpop.f32.mrb[54].mxu1  ;;  %1954 = vmatprep.mubr.bf16.mxu0 %v1049_v33 }
 0x253   :  { %v900_v56 = vadd.f32 %v899_v4, %v2987_v37  ;;  %v901_v5 = vpop.f32.mrb[55].mxu1  ;;  %1955 = vmatmul.mubr.bf16.gmra.mrb[64].mxu0 %v1048_v63  ;;  %v988_v7 = vmax.f32 %v896_v1, 0.0 }
 0x254   :  { %v902_v6 = vadd.f32 %v901_v5, %v2992_v41  ;;  %v989_v8 = vmax.f32 %v898_v3, 0.0 }
 0x255   :  { %v994_v55 = vmax.f32 %v900_v56, 0.0 }
 0x256   :  { %v995_v9 = vmax.f32 %v902_v6, 0.0 }
 0x257   :  { %v1054_v10 = vpack.c.bf16 %v994_v55, %v988_v7  ;;  %v1164_v55 = vld [vmem:[%s3159_s6] sm:$0x3]  ;;  %s2675_s6 = smov [#allocation7]  }
 0x258   :  { %v1055_v13 = vpack.c.bf16 %v995_v9, %v989_v8  ;;  %v905_v17 = vpop.f32.mrb[56].mxu1  ;;  %v3071_v8 = vrot.slane %v1164_v55, %v317_v61  ;;  %v3075_v9 = vrot.slane %v1164_v55, %v321_v16  ;;  %s2032_s21 = sshll.u32 %s2675_s6, 4  ;;  %s2033_s21 = int_to_ptr.vmem [resolvable:$true] %s2032_s21 }
 0x259   :  { %v906_v62 = vadd.f32 %v905_v17, %v2987_v37  ;;  %v907_v22 = vpop.f32.mrb[57].mxu1  ;;  %s2640_s22 = scalar_lea.vmem %s2033_s21, 4096  ;;  %p2645_p3 = scmp.lt.s32.totalorder %s2033_s21, %s2033_s21 }
 0x25a   :  { %v908_v23 = vadd.f32 %v907_v22, %v2992_v41  ;;  %v909_v24 = vpop.f32.mrb[58].mxu1  ;;  %1964 = vmatprep.mubr.bf16.mxu0 %v1055_v13  ;;  %p2641_p2 = scmp.ne.s32.totalorder %s2033_s21, %s2640_s22  ;;  %p2646_p4 = scmp.lt.s32.totalorder %s2640_s22, %s2640_s22 }
 0x25b   :  { %v910_v25 = vadd.f32 %v909_v24, %v2987_v37  ;;  %v911_v26 = vpop.f32.mrb[59].mxu1  ;;  %1965 = vmatmul.mubr.bf16.gmra.mrb[68].mxu0 %v1054_v10  ;;  %v1000_v28 = vmax.f32 %v906_v62, 0.0 }
 0x25c   :  { %v912_v27 = vadd.f32 %v911_v26, %v2992_v41  ;;  %v1001_v30 = vmax.f32 %v908_v23, 0.0  ;;  %p2647_p5 = por %p2646_p4, %p2645_p3 }
 0x25d   :  { %v1006_v29 = vmax.f32 %v910_v25, 0.0 }
 0x25e   :  { %v1007_v31 = vmax.f32 %v912_v27, 0.0  ;;  %p2648_p6 = pnand %p2647_p5, %p2641_p2 }
 0x25f   :  { %v1060_v32 = vpack.c.bf16 %v1006_v29, %v1000_v28 }
 0x260   :  { %v1061_v35 = vpack.c.bf16 %v1007_v31, %v1001_v30  ;;  %v915_v36 = vpop.f32.mrb[60].mxu1 }
 0x261   :  { %v916_v38 = vadd.f32 %v915_v36, %v2987_v37  ;;  %v917_v39 = vpop.f32.mrb[61].mxu1 }
 0x262   :  { %v918_v40 = vadd.f32 %v917_v39, %v2992_v41  ;;  %v919_v18 = vpop.f32.mrb[62].mxu1  ;;  %1974 = vmatprep.mubr.bf16.mxu0 %v1061_v35 }
 0x263   :  { %v920_v42 = vadd.f32 %v919_v18, %v2987_v37  ;;  %v921_v19 = vpop.f32.mrb[63].mxu1  ;;  %1975 = vmatmul.mubr.bf16.gmra.mrb[72].mxu0 %v1060_v32  ;;  %v1012_v44 = vmax.f32 %v916_v38, 0.0 }
 0x264   :  { %v922_v43 = vadd.f32 %v921_v19, %v2992_v41  ;;  %v1013_v46 = vmax.f32 %v918_v40, 0.0 }
 0x265   :  { %v1018_v45 = vmax.f32 %v920_v42, 0.0 }
 0x266   :  { %v1019_v47 = vmax.f32 %v922_v43, 0.0 }
 0x267   :  { %v1066_v14 = vpack.c.bf16 %v1018_v45, %v1012_v44 }
 0x268   :  { %v1067_v20 = vpack.c.bf16 %v1019_v47, %v1013_v46 }
 0x26a   :  { %1984 = vmatprep.mubr.bf16.mxu1 %v1067_v20 }
 0x26b   :  { %1985 = vmatmul.mubr.bf16.vlgmr.msra.gmra.mrb[96].mxu1 %v1066_v14 }
 0x2c6   :  { %v1690_v48 = vpop.f32.mrb[64].mxu1 }
 0x2c7   :  { %v1692_v21 = vpop.f32.mrb[65].mxu1  ;;  %v1691_v31 = vadd.f32 %v1690_v48, %v3071_v8 }
 0x2c8   :  { %v1694_v49 = vpop.f32.mrb[66].mxu1  ;;  %v1693_v32 = vadd.f32 %v1692_v21, %v3075_v9 }
 0x2c9   :  { %v1696_v50 = vpop.f32.mrb[67].mxu1  ;;  %v1695_v36 = vadd.f32 %v1694_v49, %v3071_v8 }
 0x2ca   :  { %v1697_v40 = vadd.f32 %v1696_v50, %v3075_v9 }
 0x2ce   :  { %v1700_v15 = vpop.f32.mrb[68].mxu1 }
 0x2cf   :  { %v1702_v51 = vpop.f32.mrb[69].mxu1  ;;  %v1701_v45 = vadd.f32 %v1700_v15, %v3071_v8 }
 0x2d0   :  { %v1704_v12 = vpop.f32.mrb[70].mxu1  ;;  %v1703_v46 = vadd.f32 %v1702_v51, %v3075_v9 }
 0x2d1   :  { %v1706_v37 = vpop.f32.mrb[71].mxu1  ;;  %v1705_v14 = vadd.f32 %v1704_v12, %v3071_v8 }
 0x2d2   :  { %v1707_v21 = vadd.f32 %v1706_v37, %v3075_v9 }
 0x2d6   :  { %v3026_v52 = vpop.f32.mrb[72].mxu1 }
 0x2d7   :  { %v3028_v53 = vpop.f32.mrb[73].mxu1  ;;  %v1711_v15 = vadd.f32 %v3026_v52, %v3071_v8 }
 0x2d8   :  { %v3030_v41 = vpop.f32.mrb[74].mxu1  ;;  %v1713_v51 = vadd.f32 %v3028_v53, %v3075_v9 }
 0x2d9   :  { %v3032_v54 = vpop.f32.mrb[75].mxu1 }
 0x2de   :  { %v3034_v34 = vpop.f32.mrb[76].mxu1 }
 0x2df   :  { %v3036_v57 = vpop.f32.mrb[77].mxu1  ;;  %v1721_v52 = vadd.f32 %v3034_v34, %v3071_v8 }
 0x2e0   :  { %v3038_v58 = vpop.f32.mrb[78].mxu1  ;;  %v1723_v53 = vadd.f32 %v3036_v57, %v3075_v9 }
 0x2e1   :  { %v3040_v59 = vpop.f32.mrb[79].mxu1 }
 0x2e6   :  { %v3042_v60 = vpop.f32.mrb[80].mxu1 }
 0x2e7   :  { %v3044_v63 = vpop.f32.mrb[81].mxu1  ;;  %v1731_v34 = vadd.f32 %v3042_v60, %v3071_v8 }
 0x2e8   :  { %v3046_v33 = vpop.f32.mrb[82].mxu1  ;;  %v1733_v57 = vadd.f32 %v3044_v63, %v3075_v9 }
 0x2e9   :  { %v3048_v0 = vpop.f32.mrb[83].mxu1 }
 0x2ee   :  { %v3050_v1 = vpop.f32.mrb[84].mxu1 }
 0x2ef   :  { %v3052_v2 = vpop.f32.mrb[85].mxu1  ;;  %v1741_v60 = vadd.f32 %v3050_v1, %v3071_v8 }
 0x2f0   :  { %v3054_v3 = vpop.f32.mrb[86].mxu1  ;;  %v1743_v63 = vadd.f32 %v3052_v2, %v3075_v9 }
 0x2f1   :  { %v3056_v4 = vpop.f32.mrb[87].mxu1 }
 0x2f6   :  { %v3058_v56 = vpop.f32.mrb[88].mxu1 }
 0x2f7   :  { %v3060_v5 = vpop.f32.mrb[89].mxu1  ;;  %v1751_v1 = vadd.f32 %v3058_v56, %v3071_v8 }
 0x2f8   :  { %v3062_v6 = vpop.f32.mrb[90].mxu1  ;;  %v1753_v2 = vadd.f32 %v3060_v5, %v3075_v9 }
 0x2f9   :  { %v3064_v7 = vpop.f32.mrb[91].mxu1 }
 0x2fe   :  { %v1760_v10 = vpop.f32.mrb[92].mxu1  ;;  %v1873_v13 = vpop.f32.mrb[76].mxu0 }
 0x2ff   :  { %v1761_v17 = vadd.f32 %v1760_v10, %v3071_v8  ;;  %v1762_v62 = vpop.f32.mrb[93].mxu1  ;;  %v1875_v22 = vpop.f32.mrb[77].mxu0 }
 0x300   :  { %v1763_v23 = vadd.f32 %v1762_v62, %v3075_v9  ;;  %v1764_v24 = vpop.f32.mrb[94].mxu1  ;;  %v1877_v25 = vpop.f32.mrb[78].mxu0 }
 0x301   :  { %v3079_v26 = vadd.f32 %v1873_v13, %v1761_v17  ;;  %v1765_v27 = vadd.f32 %v1764_v24, %v3071_v8  ;;  %v1766_v61 = vpop.f32.mrb[95].mxu1  ;;  %v1879_v28 = vpop.f32.mrb[79].mxu0  ;;  %v1715_v17 = vadd.f32 %v3030_v41, %v3071_v8 }
 0x302   :  { %v3082_v29 = vadd.f32 %v1875_v22, %v1763_v23  ;;  %v1767_v11 = vadd.f32 %v1766_v61, %v3075_v9  ;;  %v1717_v22 = vadd.f32 %v3032_v54, %v3075_v9 }
 0x303   :  { %v3085_v16 = vadd.f32 %v1877_v25, %v1765_v27 }
 0x304   :  { %v3087_v30 = vadd.f32 %v1879_v28, %v1767_v11  ;;  %v1725_v28 = vadd.f32 %v3038_v58, %v3071_v8 }
 0x306   :  { %v1916_v35 = vpop.f32.mrb[48].mxu0 }
 0x307   :  { %v2271_v38 = vadd.f32 %v1916_v35, %v1691_v31  ;;  %v1918_v39 = vpop.f32.mrb[49].mxu0  ;;  %v1727_v31 = vadd.f32 %v3040_v59, %v3075_v9 }
 0x308   :  { %v2273_v18 = vadd.f32 %v1918_v39, %v1693_v32  ;;  %v1920_v42 = vpop.f32.mrb[50].mxu0 }
 0x309   :  { %1995 = vst [vmem:[#allocation7] sm:$0xff] %v2271_v38  ;;  %v2275_v19 = vadd.f32 %v1920_v42, %v1695_v36  ;;  %v1922_v43 = vpop.f32.mrb[51].mxu0  ;;  %v1737_v42 = vadd.f32 %v3048_v0, %v3075_v9 }
 0x30a   :  { %1996 = vst [vmem:[#allocation7 + $0x8] sm:$0xff] %v2273_v18  ;;  %v2277_v44 = vadd.f32 %v1922_v43, %v1697_v40  ;;  %v1735_v40 = vadd.f32 %v3046_v33, %v3071_v8 }
 0x30b   :  { %1997 = vst [vmem:[#allocation7 + $0x10] sm:$0xff] %v2275_v19 }
 0x30c   :  { %1998 = vst [vmem:[#allocation7 + $0x18] sm:$0xff] %v2277_v44 }
 0x30e   :  { %v1926_v47 = vpop.f32.mrb[52].mxu0 }
 0x30f   :  { %v2279_v20 = vadd.f32 %v1926_v47, %v1701_v45  ;;  %v1928_v48 = vpop.f32.mrb[53].mxu0  ;;  %v1745_v47 = vadd.f32 %v3054_v3, %v3071_v8 }
 0x310   :  { %v2281_v49 = vadd.f32 %v1928_v48, %v1703_v46  ;;  %v1930_v50 = vpop.f32.mrb[54].mxu0 }
 0x311   :  { %1999 = vst [vmem:[#allocation7 + $0x20] sm:$0xff] %v2279_v20  ;;  %v2283_v55 = vadd.f32 %v1930_v50, %v1705_v14  ;;  %v1932_v10 = vpop.f32.mrb[55].mxu0  ;;  %v1747_v20 = vadd.f32 %v3056_v4, %v3075_v9 }
 0x312   :  { %2000 = vst [vmem:[#allocation7 + $0x28] sm:$0xff] %v2281_v49  ;;  %v2285_v13 = vadd.f32 %v1932_v10, %v1707_v21  ;;  %v1755_v10 = vadd.f32 %v3062_v6, %v3071_v8 }
 0x313   :  { %2001 = vst [vmem:[#allocation7 + $0x30] sm:$0xff] %v2283_v55 }
 0x314   :  { %2002 = vst [vmem:[#allocation7 + $0x38] sm:$0xff] %v2285_v13 }
 0x316   :  { %v1936_v12 = vpop.f32.mrb[56].mxu0 }
 0x317   :  { %v2287_v37 = vadd.f32 %v1936_v12, %v1711_v15  ;;  %v1938_v62 = vpop.f32.mrb[57].mxu0  ;;  %v1757_v15 = vadd.f32 %v3064_v7, %v3075_v9 }
 0x318   :  { %v2289_v23 = vadd.f32 %v1938_v62, %v1713_v51  ;;  %v1940_v24 = vpop.f32.mrb[58].mxu0 }
 0x319   :  { %2003 = vst [vmem:[#allocation7 + $0x40] sm:$0xff] %v2287_v37  ;;  %v2291_v25 = vadd.f32 %v1940_v24, %v1715_v17  ;;  %v1942_v27 = vpop.f32.mrb[59].mxu0 }
 0x31a   :  { %2004 = vst [vmem:[#allocation7 + $0x48] sm:$0xff] %v2289_v23  ;;  %v2293_v61 = vadd.f32 %v1942_v27, %v1717_v22 }
 0x31b   :  { %2005 = vst [vmem:[#allocation7 + $0x50] sm:$0xff] %v2291_v25 }
 0x31c   :  { %2006 = vst [vmem:[#allocation7 + $0x58] sm:$0xff] %v2293_v61 }
 0x31e   :  { %v1946_v41 = vpop.f32.mrb[60].mxu0 }
 0x31f   :  { %v2295_v54 = vadd.f32 %v1946_v41, %v1721_v52  ;;  %v1948_v11 = vpop.f32.mrb[61].mxu0 }
 0x320   :  { %v2297_v32 = vadd.f32 %v1948_v11, %v1723_v53  ;;  %v1950_v35 = vpop.f32.mrb[62].mxu0 }
 0x321   :  { %2007 = vst [vmem:[#allocation7 + $0x60] sm:$0xff] %v2295_v54  ;;  %v2299_v36 = vadd.f32 %v1950_v35, %v1725_v28  ;;  %v1952_v38 = vpop.f32.mrb[63].mxu0 }
 0x322   :  { %2008 = vst [vmem:[#allocation7 + $0x68] sm:$0xff] %v2297_v32  ;;  %v2301_v39 = vadd.f32 %v1952_v38, %v1727_v31 }
 0x323   :  { %2009 = vst [vmem:[#allocation7 + $0x70] sm:$0xff] %v2299_v36 }
 0x324   :  { %2010 = vst [vmem:[#allocation7 + $0x78] sm:$0xff] %v2301_v39 }
 0x326   :  { %v1956_v58 = vpop.f32.mrb[64].mxu0 }
 0x327   :  { %v2303_v59 = vadd.f32 %v1956_v58, %v1731_v34  ;;  %v1958_v18 = vpop.f32.mrb[65].mxu0 }
 0x328   :  { %v2305_v19 = vadd.f32 %v1958_v18, %v1733_v57  ;;  %v1960_v43 = vpop.f32.mrb[66].mxu0 }
 0x329   :  { %2011 = vst [vmem:[#allocation7 + $0x80] sm:$0xff] %v2303_v59  ;;  %v2307_v44 = vadd.f32 %v1960_v43, %v1735_v40  ;;  %v1962_v45 = vpop.f32.mrb[67].mxu0 }
 0x32a   :  { %2012 = vst [vmem:[#allocation7 + $0x88] sm:$0xff] %v2305_v19  ;;  %v2309_v46 = vadd.f32 %v1962_v45, %v1737_v42 }
 0x32b   :  { %2013 = vst [vmem:[#allocation7 + $0x90] sm:$0xff] %v2307_v44 }
 0x32c   :  { %2014 = vst [vmem:[#allocation7 + $0x98] sm:$0xff] %v2309_v46 }
 0x32e   :  { %v1966_v33 = vpop.f32.mrb[68].mxu0 }
 0x32f   :  { %v2311_v0 = vadd.f32 %v1966_v33, %v1741_v60  ;;  %v1968_v14 = vpop.f32.mrb[69].mxu0 }
 0x330   :  { %v2313_v48 = vadd.f32 %v1968_v14, %v1743_v63  ;;  %v1970_v21 = vpop.f32.mrb[70].mxu0 }
 0x331   :  { %2015 = vst [vmem:[#allocation7 + $0xa0] sm:$0xff] %v2311_v0  ;;  %v2315_v49 = vadd.f32 %v1970_v21, %v1745_v47  ;;  %v1972_v50 = vpop.f32.mrb[71].mxu0 }
 0x332   :  { %2016 = vst [vmem:[#allocation7 + $0xa8] sm:$0xff] %v2313_v48  ;;  %v2317_v55 = vadd.f32 %v1972_v50, %v1747_v20 }
 0x333   :  { %2017 = vst [vmem:[#allocation7 + $0xb0] sm:$0xff] %v2315_v49 }
 0x334   :  { %2018 = vst [vmem:[#allocation7 + $0xb8] sm:$0xff] %v2317_v55 }
 0x336   :  { %v1976_v3 = vpop.f32.mrb[72].mxu0 }
 0x337   :  { %v2319_v4 = vadd.f32 %v1976_v3, %v1751_v1  ;;  %v1978_v13 = vpop.f32.mrb[73].mxu0 }
 0x338   :  { %v2321_v51 = vadd.f32 %v1978_v13, %v1753_v2  ;;  %v1980_v12 = vpop.f32.mrb[74].mxu0 }
 0x339   :  { %2019 = vst [vmem:[#allocation7 + $0xc0] sm:$0xff] %v2319_v4  ;;  %v2323_v17 = vadd.f32 %v1980_v12, %v1755_v10  ;;  %v1982_v37 = vpop.f32.mrb[75].mxu0 }
 0x33a   :  { %2020 = vst [vmem:[#allocation7 + $0xc8] sm:$0xff] %v2321_v51  ;;  %v2325_v62 = vadd.f32 %v1982_v37, %v1757_v15 }
 0x33b   :  { %2021 = vst [vmem:[#allocation7 + $0xd0] sm:$0xff] %v2323_v17 }
 0x33c   :  { %2022 = vst [vmem:[#allocation7 + $0xd8] sm:$0xff] %v2325_v62 }
 0x33e   :  { %v1986_v56 = vpop.f32.mrb[96].mxu1 }
 0x33f   :  { %v1987_v5 = vadd.f32 %v1986_v56, %v3079_v26  ;;  %v1988_v6 = vpop.f32.mrb[97].mxu1 }
 0x340   :  { %v1989_v8 = vadd.f32 %v1988_v6, %v3082_v29  ;;  %v1990_v22 = vpop.f32.mrb[98].mxu1 }
 0x341   :  { %2023 = vst [vmem:[#allocation7 + $0xe0] sm:$0xff] %v1987_v5  ;;  %v1991_v7 = vadd.f32 %v1990_v22, %v3085_v16  ;;  %v1992_v9 = vpop.f32.mrb[99].mxu1 }
 0x342   :  { %2024 = vst [vmem:[#allocation7 + $0xe8] sm:$0xff] %v1989_v8  ;;  %v1993_v23 = vadd.f32 %v1992_v9, %v3087_v30 }
 0x343   :  { %2025 = vst [vmem:[#allocation7 + $0xf0] sm:$0xff] %v1991_v7 }
 0x344   :  { %2026 = vst [vmem:[#allocation7 + $0xf8] sm:$0xff] %v1993_v23 }
 0x345   :  { %2651 = shalt.err (!%p2648_p6)
}
 0x346   :  { %s2652_s24 = scalar_lea.hbm %s3160_s7, 4096 }
 0x347   :  { %p2653_p7 = scmp.ne.s32.totalorder %s3160_s7, %s2652_s24  ;;  %p2656_p8 = scmp.lt.u32.totalorder %s2652_s24, %s3160_s7 }
 0x349   :  { %p2658_p9 = pnand %p2656_p8, %p2653_p7 }
 0x34b   :  { %2661 = shalt.err (!%p2658_p9)
}
 0x34c   :  { %s2676_s28 = smov 256   ;;  %s2677_s29 = smov 16  }
 0x34d   :  { %2038 = dma.vmem_to_hbm [thread:$0]  %s2033_s21, 4096, %s3160_s7, [#allocation4], %s2676_s28, %s2676_s28, %s2677_s29  }
 0x34e   :  { %2666 = dma.done.wait [#allocation4], 4096  }
 0x34f   :  { %2667 = vsyncadd [#allocation4], 4294963200 }
 0x350   :  { %2042 = vsyncpa [#allocation3], 1 }
 0x351   :  { %2043 = vsyncpa [#allocation6], 1 }
 0x352   :  { %2044 = vsyncpa [#allocation4], 1 }

// kernel: tpu_custom_call.1
= control target key start
LH: loop header
LB: loop body
LE: loop exit
PB: predicated region body
PF: predicated region fallthrough
CT: control target
= control target key end

     0   :  { %12 = vsyncpa [#allocation3], 0  ;;  %s3153_s0 = inlined_call_operand.vmem [shape: f32[128,64], index: 0, kind: input, shape index: {}]   ;;  %s3154_s1 = inlined_call_operand.vmem [shape: bf16[64,128], index: 1, kind: input, shape index: {}]   ;;  %s3155_s2 = inlined_call_operand.vmem [shape: f32[1,128], index: 2, kind: input, shape index: {}]   ;;  %s3156_s3 = inlined_call_operand.hbm [shape: bf16[128,768], index: 3, kind: input, shape index: {}]   ;;  %s3157_s4 = inlined_call_operand.vmem [shape: f32[1,768], index: 4, kind: input, shape index: {}]   ;;  %s3158_s5 = inlined_call_operand.hbm [shape: bf16[768,256], index: 5, kind: input, shape index: {}]   ;;  %s3159_s6 = inlined_call_operand.vmem [shape: f32[1,256], index: 6, kind: input, shape index: {}]   ;;  %s3160_s7 = inlined_call_operand.hbm [shape: f32[128,256], index: 7, kind: output, shape index: {}]  }
   0x1   :  { %13 = vsyncpa [#allocation6], 0 }
   0x2   :  { %14 = vsyncpa [#allocation4], 0  ;;  %s2668_s24 = smov [#allocation2]   ;;  %s2596_s28 = scalar_lea.hbm %s3156_s3, 6144 }
   0x3   :  { %s26_s25 = sshll.u32 %s2668_s24, 4  ;;  %p2597_p0 = scmp.ne.s32.totalorder %s3156_s3, %s2596_s28  ;;  %s27_s25 = int_to_ptr.vmem [resolvable:$true] %s26_s25 }
   0x4   :  { %p2600_p1 = scmp.lt.u32.totalorder %s2596_s28, %s3156_s3 }
   0x6   :  { %p2602_p2 = pnand %p2600_p1, %p2597_p0 }
   0x8   :  { %2605 = shalt.err (!%p2602_p2)
}
   0x9   :  { %s2606_s10 = scalar_lea.vmem %s27_s25, 6144  ;;  %p2611_p4 = scmp.lt.s32.totalorder %s27_s25, %s27_s25 }
   0xa   :  { %p2607_p3 = scmp.ne.s32.totalorder %s27_s25, %s2606_s10  ;;  %p2612_p5 = scmp.lt.s32.totalorder %s2606_s10, %s2606_s10 }
   0xc   :  { %p2613_p6 = por %p2612_p5, %p2611_p4 }
   0xe   :  { %p2614_p7 = pnand %p2613_p6, %p2607_p3 }
  0x10   :  { %2617 = shalt.err (!%p2614_p7)
}
  0x11   :  { %s2669_s11 = smov 384   ;;  %s2670_s12 = smov 24  }
  0x12   :  { %32 = dma.hbm_to_vmem [thread:$0]  %s3156_s3, 6144, %s27_s25, [#allocation3], %s2669_s11, %s2669_s11, %s2670_s12  }
  0x13   :  { %s2671_s15 = smov [#allocation5]   ;;  %s2618_s19 = scalar_lea.hbm %s3158_s5, 12288 }
  0x14   :  { %s40_s16 = sshll.u32 %s2671_s15, 4  ;;  %p2619_p8 = scmp.ne.s32.totalorder %s3158_s5, %s2618_s19  ;;  %s41_s16 = int_to_ptr.vmem [resolvable:$true] %s40_s16 }
  0x15   :  { %p2622_p9 = scmp.lt.u32.totalorder %s2618_s19, %s3158_s5 }
  0x17   :  { %p2624_p10 = pnand %p2622_p9, %p2619_p8 }
  0x19   :  { %2627 = shalt.err (!%p2624_p10)
}
  0x1a   :  { %s2628_s24 = scalar_lea.vmem %s41_s16, 12288  ;;  %p2633_p12 = scmp.lt.s32.totalorder %s41_s16, %s41_s16 }
  0x1b   :  { %p2629_p11 = scmp.ne.s32.totalorder %s41_s16, %s2628_s24  ;;  %p2634_p13 = scmp.lt.s32.totalorder %s2628_s24, %s2628_s24 }
  0x1d   :  { %p2635_p0 = por %p2634_p13, %p2633_p12 }
  0x1f   :  { %p2636_p1 = pnand %p2635_p0, %p2629_p11 }
  0x21   :  { %2639 = shalt.err (!%p2636_p1)
}
  0x22   :  { %s2672_s3 = smov 128   ;;  %s2673_s25 = smov 8  }
  0x23   :  { %46 = dma.hbm_to_vmem [thread:$0]  %s3158_s5, 12288, %s41_s16, [#allocation6], %s2672_s3, %s2672_s3, %s2673_s25  }
  0x24   :  { %2662 = dma.done.wait [#allocation3], 6144  }
  0x25   :  { %2663 = vsyncadd [#allocation3], 4294961152 }
  0x26   :  { %2664 = dma.done.wait [#allocation6], 12288  }
  0x27   :  { %2665 = vsyncadd [#allocation6], 4294955008  ;;  %v2376_v0 = vld [vmem:[%s3154_s1] sm:$0xff]   ;;  %v2377_v1 = vld [vmem:[%s3154_s1 + $0x8] sm:$0xff]   ;;  %vm119_vm0 = vcmask 523264   ;;  %v2674_v61 = vmov 0  }
  0x28   :  { %2214 = vmatprep.subr.bf16.mxu0 %v2376_v0  ;;  %v2378_v2 = vld [vmem:[%s3154_s1 + $0x10] sm:$0xff]   ;;  %v56_v3 = vld [vmem:[%s3153_s0] sm:$0xff]  ;;  %v57_v4 = vld [vmem:[%s3153_s0 + $0x8] sm:$0xff]  ;;  %617 = vmatprep.mubr.bf16.mxu1 %v2674_v61 }
  0x29   :  { %2215 = vmatpush3.bf16.msra.mxu0 %v2376_v0  ;;  %v72_v5 = vpack.c.bf16 %v57_v4, %v56_v3  ;;  %v2379_v6 = vld [vmem:[%s3154_s1 + $0x18] sm:$0xff]   ;;  %v58_v7 = vld [vmem:[%s3153_s0 + $0x10] sm:$0xff]  ;;  %v60_v9 = vld [vmem:[%s3153_s0 + $0x20] sm:$0xff] }
  0x2a   :  { %2216 = vmatprep.subr.bf16.mxu0 %v2377_v1  ;;  %v59_v8 = vld [vmem:[%s3153_s0 + $0x18] sm:$0xff]  ;;  %v61_v12 = vld [vmem:[%s3153_s0 + $0x28] sm:$0xff]  ;;  %v62_v21 = vld [vmem:[%s3153_s0 + $0x30] sm:$0xff] }
  0x2b   :  { %2222 = vmatprep.mubr.msk.bf16.mxu0 %vm119_vm0, %v72_v5  ;;  %v2380_v10 = vld [vmem:[#allocation2 + $0x4] ss:$24 sps:$4 sm:$0xff]   ;;  %v2382_v11 = vld [vmem:[#allocation2] ss:$24 sps:$4 sm:$0xff]   ;;  %v2386_v14 = vld [vmem:[#allocation2 + $0x34] ss:$24 sps:$4 sm:$0xff]   ;;  %v73_v16 = vpack.c.bf16 %v59_v8, %v58_v7  ;;  %v74_v17 = vpack.c.bf16 %v61_v12, %v60_v9 }
  0x2c   :  { %v2385_v13 = vld [vmem:[#allocation2 + $0xc] ss:$24 sps:$4 sm:$0xff]   ;;  %585 = vmatprep.subr.bf16.mxu1 %v2380_v10  ;;  %v2388_v15 = vld [vmem:[#allocation2 + $0x30] ss:$24 sps:$4 sm:$0xff]   ;;  %v2391_v20 = vld [vmem:[#allocation2 + $0x3c] ss:$24 sps:$4 sm:$0xff]  }
  0x2d   :  { %2217 = vmatpush3.bf16.msra.mxu0 %v2377_v1  ;;  %586 = vmatpush1.bf16.msra.mxu1 %v2382_v11  ;;  %v2383_v18 = vld [vmem:[#allocation2 + $0x8] ss:$24 sps:$4 sm:$0xff]   ;;  %v2392_v19 = vld [vmem:[#allocation2 + $0x64] ss:$24 sps:$4 sm:$0xff]   ;;  %v2398_v25 = vld [vmem:[#allocation2 + $0x94] ss:$24 sps:$4 sm:$0xff]  }
  0x2e   :  { %2218 = vmatprep.subr.bf16.mxu0 %v2378_v2  ;;  %587 = vmatprep.subr.bf16.mxu1 %v2386_v14  ;;  %v63_v22 = vld [vmem:[%s3153_s0 + $0x38] sm:$0xff]  ;;  %v64_v24 = vld [vmem:[%s3153_s0 + $0x40] sm:$0xff]  ;;  %v65_v26 = vld [vmem:[%s3153_s0 + $0x48] sm:$0xff] }
  0x2f   :  { %v2394_v23 = vld [vmem:[#allocation2 + $0x60] ss:$24 sps:$4 sm:$0xff]   ;;  %v2397_v28 = vld [vmem:[#allocation2 + $0x6c] ss:$24 sps:$4 sm:$0xff]   ;;  %v2400_v29 = vld [vmem:[#allocation2 + $0x90] ss:$24 sps:$4 sm:$0xff]   ;;  %v75_v30 = vpack.c.bf16 %v63_v22, %v62_v21  ;;  %v76_v32 = vpack.c.bf16 %v65_v26, %v64_v24 }
  0x30   :  { %v2389_v27 = vld [vmem:[#allocation2 + $0x38] ss:$24 sps:$4 sm:$0xff]   ;;  %v2404_v31 = vld [vmem:[#allocation2 + $0xc4] ss:$24 sps:$4 sm:$0xff]   ;;  %v2395_v33 = vld [vmem:[#allocation2 + $0x68] ss:$24 sps:$4 sm:$0xff]  }
  0x31   :  { %2219 = vmatpush3.bf16.msra.mxu0 %v2378_v2  ;;  %588 = vmatpush1.bf16.msra.mxu1 %v2388_v15  ;;  %v2403_v34 = vld [vmem:[#allocation2 + $0x9c] ss:$24 sps:$4 sm:$0xff]   ;;  %v2406_v35 = vld [vmem:[#allocation2 + $0xc0] ss:$24 sps:$4 sm:$0xff]   ;;  %v69_v41 = vld [vmem:[%s3153_s0 + $0x68] sm:$0xff] }
  0x32   :  { %2220 = vmatprep.subr.bf16.mxu0 %v2379_v6  ;;  %589 = vmatprep.subr.bf16.mxu1 %v2392_v19  ;;  %v66_v36 = vld [vmem:[%s3153_s0 + $0x50] sm:$0xff]  ;;  %v67_v37 = vld [vmem:[%s3153_s0 + $0x58] sm:$0xff]  ;;  %v68_v40 = vld [vmem:[%s3153_s0 + $0x60] sm:$0xff] }
  0x33   :  { %v2401_v38 = vld [vmem:[#allocation2 + $0x98] ss:$24 sps:$4 sm:$0xff]   ;;  %v2410_v39 = vld [vmem:[#allocation2 + $0xf4] ss:$24 sps:$4 sm:$0xff]   ;;  %v2407_v44 = vld [vmem:[#allocation2 + $0xc8] ss:$24 sps:$4 sm:$0xff]   ;;  %v77_v45 = vpack.c.bf16 %v67_v37, %v66_v36  ;;  %v78_v47 = vpack.c.bf16 %v69_v41, %v68_v40 }
  0x34   :  { %v2409_v42 = vld [vmem:[#allocation2 + $0xcc] ss:$24 sps:$4 sm:$0xff]   ;;  %v2412_v43 = vld [vmem:[#allocation2 + $0xf0] ss:$24 sps:$4 sm:$0xff]   ;;  %v2415_v46 = vld [vmem:[#allocation2 + $0xfc] ss:$24 sps:$4 sm:$0xff]  }
  0x35   :  { %2221 = vmatpush3.bf16.msra.mxu0 %v2379_v6  ;;  %590 = vmatpush1.bf16.msra.mxu1 %v2394_v23  ;;  %v70_v48 = vld [vmem:[%s3153_s0 + $0x70] sm:$0xff]  ;;  %v71_v49 = vld [vmem:[%s3153_s0 + $0x78] sm:$0xff]  ;;  %v2421_v53 = vld [vmem:[#allocation2 + $0x12c] ss:$24 sps:$4 sm:$0xff]  }
  0x36   :  { %698 = vmatprep.subr.bf16.mxu0 %v2385_v13  ;;  %591 = vmatprep.subr.bf16.mxu1 %v2398_v25  ;;  %v2413_v50 = vld [vmem:[#allocation2 + $0xf8] ss:$24 sps:$4 sm:$0xff]   ;;  %v79_v51 = vpack.c.bf16 %v71_v49, %v70_v48  ;;  %v2416_v52 = vld [vmem:[#allocation2 + $0x124] ss:$24 sps:$4 sm:$0xff]   ;;  %v2419_v55 = vld [vmem:[#allocation2 + $0x128] ss:$24 sps:$4 sm:$0xff]  }
  0x37   :  { %v2418_v54 = vld [vmem:[#allocation2 + $0x120] ss:$24 sps:$4 sm:$0xff]   ;;  %v2422_v56 = vld [vmem:[#allocation2 + $0x154] ss:$24 sps:$4 sm:$0xff]   ;;  %v2424_v58 = vld [vmem:[#allocation2 + $0x150] ss:$24 sps:$4 sm:$0xff]  }
  0x38   :  { %2223 = vmatmul.mubr.msk.bf16.vlgmr.msra.gmra.mrb[0].mxu0 %vm119_vm0, %v73_v16  ;;  %v2427_v57 = vld [vmem:[#allocation2 + $0x15c] ss:$24 sps:$4 sm:$0xff]   ;;  %v2425_v59 = vld [vmem:[#allocation2 + $0x158] ss:$24 sps:$4 sm:$0xff]   ;;  %v2815_v62 = vld [vmem:[%s3155_s2] ss:$0 sm:$0xff] }
  0x39   :  { %2226 = vmatprep.mubr.msk.bf16.mxu0 %vm119_vm0, %v74_v17  ;;  %699 = vmatpush1.bf16.msra.mxu0 %v2383_v18  ;;  %v2430_v60 = vld [vmem:[#allocation2 + $0x14] ss:$24 sps:$4 sm:$0xff]   ;;  %v2428_v13 = vld [vmem:[#allocation2 + $0x10] ss:$24 sps:$4 sm:$0xff]   ;;  %v2433_v16 = vld [vmem:[#allocation2 + $0x44] ss:$24 sps:$4 sm:$0xff]  }
  0x3a   :  { %700 = vmatprep.subr.bf16.mxu0 %v2391_v20  ;;  %592 = vmatpush1.bf16.msra.mxu1 %v2400_v29  ;;  %v2457_v6 = vld [vmem:[#allocation5 + $0x104] ss:$8 sps:$4 sm:$0xff]   ;;  %v2455_v19 = vld [vmem:[#allocation5 + $0x100] ss:$8 sps:$4 sm:$0xff]   ;;  %v2463_v22 = vld [vmem:[#allocation5 + $0x114] ss:$8 sps:$4 sm:$0xff]  }
  0x3b   :  { %593 = vmatprep.subr.bf16.mxu1 %v2404_v31  ;;  %v2431_v26 = vld [vmem:[#allocation2 + $0x40] ss:$24 sps:$4 sm:$0xff]   ;;  %v2436_v29 = vld [vmem:[#allocation2 + $0x74] ss:$24 sps:$4 sm:$0xff]   ;;  %v2439_v40 = vld [vmem:[#allocation2 + $0xa4] ss:$24 sps:$4 sm:$0xff]  }
  0x3c   :  { %v2461_v31 = vld [vmem:[#allocation5 + $0x110] ss:$8 sps:$4 sm:$0xff]   ;;  %v2469_v37 = vld [vmem:[#allocation5 + $0x124] ss:$8 sps:$4 sm:$0xff]   ;;  %v2467_v41 = vld [vmem:[#allocation5 + $0x120] ss:$8 sps:$4 sm:$0xff]  }
  0x3d   :  { %701 = vmatpush1.bf16.msra.mxu0 %v2389_v27 }
  0x3e   :  { %702 = vmatprep.subr.bf16.mxu0 %v2397_v28  ;;  %594 = vmatpush1.bf16.msra.mxu1 %v2406_v35  ;;  %v2434_v35 = vld [vmem:[#allocation2 + $0x70] ss:$24 sps:$4 sm:$0xff]  }
  0x3f   :  { %595 = vmatprep.subr.bf16.mxu1 %v2410_v39 }
  0x40   :  { %2227 = vmatmul.mubr.msk.bf16.gmra.mrb[4].mxu0 %vm119_vm0, %v75_v30 }
  0x41   :  { %2230 = vmatprep.mubr.msk.bf16.mxu0 %vm119_vm0, %v76_v32  ;;  %703 = vmatpush1.bf16.msra.mxu0 %v2395_v33 }
  0x42   :  { %704 = vmatprep.subr.bf16.mxu0 %v2403_v34  ;;  %596 = vmatpush1.bf16.msra.mxu1 %v2412_v43 }
  0x43   :  { %597 = vmatprep.subr.bf16.mxu1 %v2416_v52  ;;  %v2442_v52 = vld [vmem:[#allocation2 + $0xd4] ss:$24 sps:$4 sm:$0xff]  }
  0x45   :  { %705 = vmatpush1.bf16.msra.mxu0 %v2401_v38 }
  0x46   :  { %706 = vmatprep.subr.bf16.mxu0 %v2409_v42  ;;  %598 = vmatpush1.bf16.msra.mxu1 %v2418_v54 }
  0x47   :  { %599 = vmatprep.subr.bf16.mxu1 %v2422_v56 }
  0x48   :  { %2231 = vmatmul.mubr.msk.bf16.gmra.mrb[8].mxu0 %vm119_vm0, %v77_v45 }
  0x49   :  { %2234 = vmatprep.mubr.msk.bf16.mxu0 %vm119_vm0, %v78_v47  ;;  %707 = vmatpush1.bf16.msra.mxu0 %v2407_v44  ;;  %v2475_v44 = vld [vmem:[#allocation5 + $0x134] ss:$8 sps:$4 sm:$0xff]  }
  0x4a   :  { %708 = vmatprep.subr.bf16.mxu0 %v2415_v46  ;;  %600 = vmatpush1.bf16.msra.mxu1 %v2424_v58 }
  0x4b   :  { %811 = vmatprep.subr.bf16.mxu1 %v2430_v60 }
  0x4d   :  { %709 = vmatpush1.bf16.msra.mxu0 %v2413_v50  ;;  %v2437_v50 = vld [vmem:[#allocation2 + $0xa0] ss:$24 sps:$4 sm:$0xff]  }
  0x4e   :  { %710 = vmatprep.subr.bf16.mxu0 %v2421_v53  ;;  %v2473_v53 = vld [vmem:[#allocation5 + $0x130] ss:$8 sps:$4 sm:$0xff]  }
  0x50   :  { %2235 = vmatmul.mubr.msk.bf16.gmra.mrb[12].mxu0 %vm119_vm0, %v79_v51 }
  0x51   :  { %711 = vmatpush1.bf16.msra.mxu0 %v2419_v55  ;;  %730 = vmatprep.mubr.bf16.mxu0 %v2674_v61 }
  0x52   :  { %712 = vmatprep.subr.bf16.mxu0 %v2427_v57  ;;  %v2440_v57 = vld [vmem:[#allocation2 + $0xd0] ss:$24 sps:$4 sm:$0xff]  }
  0x55   :  { %713 = vmatpush1.bf16.msra.mxu0 %v2425_v59  ;;  %v2481_v59 = vld [vmem:[#allocation5 + $0x144] ss:$8 sps:$4 sm:$0xff]  }
  0x56   :  { %1769 = vmatprep.subr.bf16.mxu0 %v2457_v6 }
 0x10b   :  { %v2224_v63 = vpop.f32.mrb[0].mxu0 }
 0x10c   :  { %v187_v0 = vadd.f32 %v2224_v63, %v2815_v62  ;;  %v178_v1 = vpop.f32.mrb[1].mxu0 }
 0x10d   :  { %v179_v2 = vadd.f32 %v2815_v62, %v178_v1  ;;  %v2225_v3 = vpop.f32.mrb[2].mxu0  ;;  %v2479_v1 = vld [vmem:[#allocation5 + $0x140] ss:$8 sps:$4 sm:$0xff]  }
 0x10e   :  { %v190_v4 = vadd.f32 %v2225_v3, %v2815_v62  ;;  %v181_v5 = vpop.f32.mrb[3].mxu0  ;;  %v243_v8 = vmax.f32 %v187_v0, 0.0  ;;  %v2445_v0 = vld [vmem:[#allocation2 + $0x104] ss:$24 sps:$4 sm:$0xff]  }
 0x10f   :  { %v182_v7 = vadd.f32 %v2815_v62, %v181_v5  ;;  %v241_v10 = vmax.f32 %v179_v2, 0.0 }
 0x110   :  { %v244_v9 = vmax.f32 %v190_v4, 0.0  ;;  %v2487_v4 = vld [vmem:[#allocation5 + $0x154] ss:$8 sps:$4 sm:$0xff]  }
 0x111   :  { %v242_v11 = vmax.f32 %v182_v7, 0.0 }
 0x112   :  { %v2821_v12 = vpack.c.bf16 %v244_v9, %v243_v8 }
 0x113   :  { %v2823_v14 = vpack.c.bf16 %v242_v11, %v241_v10  ;;  %v2228_v15 = vpop.f32.mrb[4].mxu0  ;;  %v2443_v10 = vld [vmem:[#allocation2 + $0x100] ss:$24 sps:$4 sm:$0xff]  }
 0x114   :  { %v203_v17 = vadd.f32 %v2228_v15, %v2815_v62  ;;  %v194_v18 = vpop.f32.mrb[5].mxu0  ;;  %v2485_v15 = vld [vmem:[#allocation5 + $0x150] ss:$8 sps:$4 sm:$0xff]  }
 0x115   :  { %618 = vmatmul.mubr.bf16.vlgmr.msra.gmra.mrb[0].mxu1 %v2823_v14  ;;  %731 = vmatmul.mubr.bf16.vlgmr.msra.gmra.mrb[16].mxu0 %v2823_v14  ;;  %v195_v20 = vadd.f32 %v2815_v62, %v194_v18  ;;  %v2229_v21 = vpop.f32.mrb[6].mxu0 }
 0x116   :  { %812 = vmatpush1.bf16.msra.mxu1 %v2428_v13  ;;  %v247_v23 = vmax.f32 %v203_v17, 0.0  ;;  %v206_v24 = vadd.f32 %v2229_v21, %v2815_v62  ;;  %v197_v25 = vpop.f32.mrb[7].mxu0  ;;  %627 = vmatprep.mubr.bf16.mxu1 %v2674_v61  ;;  %v2448_v13 = vld [vmem:[#allocation2 + $0x134] ss:$24 sps:$4 sm:$0xff]   ;;  %v2451_v21 = vld [vmem:[#allocation2 + $0x164] ss:$24 sps:$4 sm:$0xff]  }
 0x117   :  { %v245_v27 = vmax.f32 %v195_v20, 0.0  ;;  %v198_v28 = vadd.f32 %v2815_v62, %v197_v25  ;;  %740 = vmatprep.mubr.bf16.mxu0 %v2674_v61  ;;  %813 = vmatprep.subr.bf16.mxu1 %v2433_v16  ;;  %v2493_v20 = vld [vmem:[#allocation5 + $0x164] ss:$8 sps:$4 sm:$0xff]   ;;  %v2497_v25 = vld [vmem:[#allocation5 + $0x170] ss:$8 sps:$4 sm:$0xff]  }
 0x118   :  { %v248_v30 = vmax.f32 %v206_v24, 0.0  ;;  %1770 = vmatpush1.bf16.msra.mxu0 %v2455_v19  ;;  %v2446_v19 = vld [vmem:[#allocation2 + $0x130] ss:$24 sps:$4 sm:$0xff]   ;;  %v2454_v24 = vld [vmem:[#allocation5 + $0x4] ss:$8 sps:$4 sm:$0xff]  }
 0x119   :  { %v246_v32 = vmax.f32 %v198_v28, 0.0  ;;  %1771 = vmatprep.subr.bf16.mxu0 %v2463_v22  ;;  %v2499_v22 = vld [vmem:[#allocation5 + $0x174] ss:$8 sps:$4 sm:$0xff]  }
 0x11a   :  { %v2833_v33 = vpack.c.bf16 %v248_v30, %v247_v23  ;;  %814 = vmatpush1.bf16.msra.mxu1 %v2431_v26  ;;  %v2449_v23 = vld [vmem:[#allocation2 + $0x160] ss:$24 sps:$4 sm:$0xff]   ;;  %v2505_v26 = vld [vmem:[#allocation5 + $0x184] ss:$8 sps:$4 sm:$0xff]   ;;  %v2511_v28 = vld [vmem:[#allocation5 + $0x194] ss:$8 sps:$4 sm:$0xff]  }
 0x11b   :  { %v2835_v34 = vpack.c.bf16 %v246_v32, %v245_v27  ;;  %815 = vmatprep.subr.bf16.mxu1 %v2436_v29  ;;  %v2232_v36 = vpop.f32.mrb[8].mxu0  ;;  %v2503_v27 = vld [vmem:[#allocation5 + $0x180] ss:$8 sps:$4 sm:$0xff]   ;;  %v2509_v29 = vld [vmem:[#allocation5 + $0x190] ss:$8 sps:$4 sm:$0xff]  }
 0x11c   :  { %v219_v38 = vadd.f32 %v2232_v36, %v2815_v62  ;;  %v210_v39 = vpop.f32.mrb[9].mxu0  ;;  %1772 = vmatpush1.bf16.msra.mxu0 %v2461_v31  ;;  %v2517_v30 = vld [vmem:[#allocation5 + $0x1a4] ss:$8 sps:$4 sm:$0xff]   ;;  %v2515_v31 = vld [vmem:[#allocation5 + $0x1a0] ss:$8 sps:$4 sm:$0xff]  }
 0x11d   :  { %628 = vmatmul.mubr.bf16.gmra.mrb[4].mxu1 %v2821_v12  ;;  %741 = vmatmul.mubr.bf16.gmra.mrb[20].mxu0 %v2821_v12  ;;  %v211_v42 = vadd.f32 %v2815_v62, %v210_v39  ;;  %v2233_v43 = vpop.f32.mrb[10].mxu0  ;;  %v2523_v32 = vld [vmem:[#allocation5 + $0x1b4] ss:$8 sps:$4 sm:$0xff]   ;;  %v2529_v36 = vld [vmem:[#allocation5 + $0x1c4] ss:$8 sps:$4 sm:$0xff]  }
 0x11e   :  { %637 = vmatprep.mubr.bf16.mxu1 %v2674_v61  ;;  %750 = vmatprep.mubr.bf16.mxu0 %v2674_v61  ;;  %v251_v45 = vmax.f32 %v219_v38, 0.0  ;;  %v222_v46 = vadd.f32 %v2233_v43, %v2815_v62  ;;  %v213_v47 = vpop.f32.mrb[11].mxu0  ;;  %v2535_v38 = vld [vmem:[#allocation5 + $0x1d4] ss:$8 sps:$4 sm:$0xff]   ;;  %v2533_v39 = vld [vmem:[#allocation5 + $0x1d0] ss:$8 sps:$4 sm:$0xff]  }
 0x11f   :  { %816 = vmatpush1.bf16.msra.mxu1 %v2434_v35  ;;  %v249_v48 = vmax.f32 %v211_v42, 0.0  ;;  %v214_v49 = vadd.f32 %v2815_v62, %v213_v47  ;;  %1773 = vmatprep.subr.bf16.mxu0 %v2469_v37  ;;  %v2521_v35 = vld [vmem:[#allocation5 + $0x1b0] ss:$8 sps:$4 sm:$0xff]   ;;  %v2527_v37 = vld [vmem:[#allocation5 + $0x1c0] ss:$8 sps:$4 sm:$0xff]  }
 0x120   :  { %v252_v51 = vmax.f32 %v222_v46, 0.0  ;;  %817 = vmatprep.subr.bf16.mxu1 %v2439_v40  ;;  %1774 = vmatpush1.bf16.msra.mxu0 %v2467_v41  ;;  %v2452_v40 = vld [vmem:[#allocation5] ss:$8 sps:$4 sm:$0xff]   ;;  %v2460_v41 = vld [vmem:[#allocation5 + $0x14] ss:$8 sps:$4 sm:$0xff]  }
 0x121   :  { %v250_v54 = vmax.f32 %v214_v49, 0.0  ;;  %1775 = vmatprep.subr.bf16.mxu0 %v2475_v44  ;;  %v2458_v42 = vld [vmem:[#allocation5 + $0x10] ss:$8 sps:$4 sm:$0xff]   ;;  %v2466_v43 = vld [vmem:[#allocation5 + $0x24] ss:$8 sps:$4 sm:$0xff]  }
 0x122   :  { %v2845_v55 = vpack.c.bf16 %v252_v51, %v251_v45  ;;  %v2464_v44 = vld [vmem:[#allocation5 + $0x20] ss:$8 sps:$4 sm:$0xff]   ;;  %v2472_v45 = vld [vmem:[#allocation5 + $0x34] ss:$8 sps:$4 sm:$0xff]   ;;  %v2470_v46 = vld [vmem:[#allocation5 + $0x30] ss:$8 sps:$4 sm:$0xff]  }
 0x123   :  { %v2847_v56 = vpack.c.bf16 %v250_v54, %v249_v48  ;;  %818 = vmatpush1.bf16.msra.mxu1 %v2437_v50  ;;  %v2236_v58 = vpop.f32.mrb[12].mxu0  ;;  %v2478_v47 = vld [vmem:[#allocation5 + $0x44] ss:$8 sps:$4 sm:$0xff]   ;;  %v2484_v48 = vld [vmem:[#allocation5 + $0x54] ss:$8 sps:$4 sm:$0xff]  }
 0x124   :  { %819 = vmatprep.subr.bf16.mxu1 %v2442_v52  ;;  %v235_v60 = vadd.f32 %v2236_v58, %v2815_v62  ;;  %v226_v63 = vpop.f32.mrb[13].mxu0  ;;  %1776 = vmatpush1.bf16.msra.mxu0 %v2473_v53  ;;  %v2482_v49 = vld [vmem:[#allocation5 + $0x50] ss:$8 sps:$4 sm:$0xff]   ;;  %v2490_v50 = vld [vmem:[#allocation5 + $0x64] ss:$8 sps:$4 sm:$0xff]  }
 0x125   :  { %638 = vmatmul.mubr.bf16.gmra.mrb[8].mxu1 %v2835_v34  ;;  %751 = vmatmul.mubr.bf16.gmra.mrb[24].mxu0 %v2835_v34  ;;  %v227_v2 = vadd.f32 %v2815_v62, %v226_v63  ;;  %v2237_v3 = vpop.f32.mrb[14].mxu0  ;;  %v2541_v51 = vld [vmem:[#allocation5 + $0x1e4] ss:$8 sps:$4 sm:$0xff]   ;;  %v2539_v52 = vld [vmem:[#allocation5 + $0x1e0] ss:$8 sps:$4 sm:$0xff]  }
 0x126   :  { %647 = vmatprep.mubr.bf16.mxu1 %v2674_v61  ;;  %760 = vmatprep.mubr.bf16.mxu0 %v2674_v61  ;;  %v255_v5 = vmax.f32 %v235_v60, 0.0  ;;  %v238_v6 = vadd.f32 %v2237_v3, %v2815_v62  ;;  %v229_v7 = vpop.f32.mrb[15].mxu0  ;;  %v2496_v53 = vld [vmem:[#allocation5 + $0x74] ss:$8 sps:$4 sm:$0xff]   ;;  %v2502_v58 = vld [vmem:[#allocation5 + $0x84] ss:$8 sps:$4 sm:$0xff]  }
 0x127   :  { %820 = vmatpush1.bf16.msra.mxu1 %v2440_v57  ;;  %v253_v8 = vmax.f32 %v227_v2, 0.0  ;;  %v230_v9 = vadd.f32 %v2815_v62, %v229_v7  ;;  %1777 = vmatprep.subr.bf16.mxu0 %v2481_v59  ;;  %v2491_v62 = vld [vmem:[#allocation5 + $0x160] ss:$8 sps:$4 sm:$0xff]   ;;  %v2547_v54 = vld [vmem:[#allocation5 + $0x1f4] ss:$8 sps:$4 sm:$0xff]  }
 0x128   :  { %v256_v11 = vmax.f32 %v238_v6, 0.0  ;;  %821 = vmatprep.subr.bf16.mxu1 %v2445_v0  ;;  %1778 = vmatpush1.bf16.msra.mxu0 %v2479_v1  ;;  %v2545_v57 = vld [vmem:[#allocation5 + $0x1f0] ss:$8 sps:$4 sm:$0xff]   ;;  %v2550_v59 = vld [vmem:[#allocation5 + $0x204] ss:$8 sps:$4 sm:$0xff]  }
 0x129   :  { %v254_v16 = vmax.f32 %v230_v9, 0.0  ;;  %1779 = vmatprep.subr.bf16.mxu0 %v2487_v4  ;;  %v2500_v60 = vld [vmem:[#allocation5 + $0x80] ss:$8 sps:$4 sm:$0xff]   ;;  %v2508_v63 = vld [vmem:[#allocation5 + $0x94] ss:$8 sps:$4 sm:$0xff]  }
 0x12a   :  { %v2857_v17 = vpack.c.bf16 %v256_v11, %v255_v5  ;;  %v2514_v0 = vld [vmem:[#allocation5 + $0xa4] ss:$8 sps:$4 sm:$0xff]   ;;  %v2512_v1 = vld [vmem:[#allocation5 + $0xa0] ss:$8 sps:$4 sm:$0xff]   ;;  %v2520_v2 = vld [vmem:[#allocation5 + $0xb4] ss:$8 sps:$4 sm:$0xff]  }
 0x12b   :  { %v2859_v18 = vpack.c.bf16 %v254_v16, %v253_v8  ;;  %822 = vmatpush1.bf16.msra.mxu1 %v2443_v10  ;;  %v2518_v3 = vld [vmem:[#allocation5 + $0xb0] ss:$8 sps:$4 sm:$0xff]   ;;  %v2526_v4 = vld [vmem:[#allocation5 + $0xc4] ss:$8 sps:$4 sm:$0xff]   ;;  %v2532_v5 = vld [vmem:[#allocation5 + $0xd4] ss:$8 sps:$4 sm:$0xff]   ;;  %v315_v10 = vlaneseq }
 0x12c   :  { %823 = vmatprep.subr.bf16.mxu1 %v2448_v13  ;;  %1780 = vmatpush1.bf16.msra.mxu0 %v2485_v15  ;;  %v2530_v6 = vld [vmem:[#allocation5 + $0xd0] ss:$8 sps:$4 sm:$0xff]   ;;  %v2538_v7 = vld [vmem:[#allocation5 + $0xe4] ss:$8 sps:$4 sm:$0xff]   ;;  %v2544_v8 = vld [vmem:[#allocation5 + $0xf4] ss:$8 sps:$4 sm:$0xff]  }
 0x12d   :  { %648 = vmatmul.mubr.bf16.gmra.mrb[12].mxu1 %v2833_v33  ;;  %761 = vmatmul.mubr.bf16.gmra.mrb[28].mxu0 %v2833_v33  ;;  %v2542_v9 = vld [vmem:[#allocation5 + $0xf0] ss:$8 sps:$4 sm:$0xff]   ;;  %v2895_v11 = vshrl.u32 %v315_v10, 7  ;;  %v2902_v15 = vld [vmem:[%s3157_s4] sm:$0x3f] }
 0x12e   :  { %657 = vmatprep.mubr.bf16.mxu1 %v2674_v61  ;;  %770 = vmatprep.mubr.bf16.mxu0 %v2674_v61 }
 0x12f   :  { %824 = vmatpush1.bf16.msra.mxu1 %v2446_v19  ;;  %1781 = vmatprep.subr.bf16.mxu0 %v2493_v20  ;;  %v325_v13 = vsub.s32 2, %v2895_v11  ;;  %v321_v16 = vsub.s32 1, %v2895_v11 }
 0x130   :  { %825 = vmatprep.subr.bf16.mxu1 %v2451_v21  ;;  %1782 = vmatpush1.bf16.msra.mxu0 %v2491_v62 }
 0x131   :  { %1783 = vmatprep.subr.bf16.mxu0 %v2499_v22  ;;  %v2912_v19 = vrot.slane %v2902_v15, %v325_v13  ;;  %v2917_v20 = vrot.slane %v2902_v15, %v321_v16 }
 0x133   :  { %826 = vmatpush1.bf16.msra.mxu1 %v2449_v23 }
 0x134   :  { %1656 = vmatprep.subr.bf16.mxu1 %v2454_v24  ;;  %1784 = vmatpush1.bf16.msra.mxu0 %v2497_v25 }
 0x135   :  { %658 = vmatmul.mubr.bf16.gmra.mrb[16].mxu1 %v2847_v56  ;;  %771 = vmatmul.mubr.bf16.gmra.mrb[32].mxu0 %v2847_v56 }
 0x136   :  { %667 = vmatprep.mubr.bf16.mxu1 %v2674_v61  ;;  %780 = vmatprep.mubr.bf16.mxu0 %v2674_v61 }
 0x137   :  { %1785 = vmatprep.subr.bf16.mxu0 %v2505_v26 }
 0x138   :  { %1786 = vmatpush1.bf16.msra.mxu0 %v2503_v27 }
 0x139   :  { %1787 = vmatprep.subr.bf16.mxu0 %v2511_v28 }
 0x13c   :  { %1788 = vmatpush1.bf16.msra.mxu0 %v2509_v29 }
 0x13d   :  { %668 = vmatmul.mubr.bf16.gmra.mrb[20].mxu1 %v2845_v55  ;;  %781 = vmatmul.mubr.bf16.gmra.mrb[36].mxu0 %v2845_v55 }
 0x13e   :  { %677 = vmatprep.mubr.bf16.mxu1 %v2674_v61  ;;  %790 = vmatprep.mubr.bf16.mxu0 %v2674_v61 }
 0x13f   :  { %1789 = vmatprep.subr.bf16.mxu0 %v2517_v30 }
 0x140   :  { %1790 = vmatpush1.bf16.msra.mxu0 %v2515_v31 }
 0x141   :  { %1791 = vmatprep.subr.bf16.mxu0 %v2523_v32 }
 0x144   :  { %1792 = vmatpush1.bf16.msra.mxu0 %v2521_v35 }
 0x145   :  { %678 = vmatmul.mubr.bf16.gmra.mrb[24].mxu1 %v2859_v18  ;;  %791 = vmatmul.mubr.bf16.gmra.mrb[40].mxu0 %v2859_v18 }
 0x146   :  { %687 = vmatprep.mubr.bf16.mxu1 %v2674_v61  ;;  %800 = vmatprep.mubr.bf16.mxu0 %v2674_v61 }
 0x147   :  { %1793 = vmatprep.subr.bf16.mxu0 %v2529_v36 }
 0x148   :  { %1794 = vmatpush1.bf16.msra.mxu0 %v2527_v37 }
 0x149   :  { %1795 = vmatprep.subr.bf16.mxu0 %v2535_v38 }
 0x14c   :  { %1796 = vmatpush1.bf16.msra.mxu0 %v2533_v39 }
 0x14d   :  { %688 = vmatmul.mubr.bf16.gmra.mrb[28].mxu1 %v2857_v17  ;;  %801 = vmatmul.mubr.bf16.gmra.mrb[44].mxu0 %v2857_v17 }
 0x14e   :  { %843 = vmatprep.mubr.bf16.mxu1 %v2674_v61  ;;  %1797 = vmatprep.subr.bf16.mxu0 %v2541_v51 }
 0x150   :  { %1798 = vmatpush1.bf16.msra.mxu0 %v2539_v52 }
 0x151   :  { %1799 = vmatprep.subr.bf16.mxu0 %v2547_v54 }
 0x154   :  { %1800 = vmatpush1.bf16.msra.mxu0 %v2545_v57  ;;  %v2553_v57 = vld [vmem:[#allocation5 + $0x214] ss:$8 sps:$4 sm:$0xff]  }
 0x155   :  { %844 = vmatmul.mubr.bf16.vlgmr.msra.gmra.mrb[32].mxu1 %v2823_v14  ;;  %v2476_v14 = vld [vmem:[#allocation5 + $0x40] ss:$8 sps:$4 sm:$0xff]   ;;  %1882 = vmatprep.subr.bf16.mxu0 %v2550_v59 }
 0x156   :  { %853 = vmatprep.mubr.bf16.mxu1 %v2674_v61  ;;  %1657 = vmatpush1.bf16.msra.mxu1 %v2452_v40 }
 0x157   :  { %1658 = vmatprep.subr.bf16.mxu1 %v2460_v41 }
 0x15a   :  { %1659 = vmatpush1.bf16.msra.mxu1 %v2458_v42 }
 0x15b   :  { %1660 = vmatprep.subr.bf16.mxu1 %v2466_v43 }
 0x15d   :  { %854 = vmatmul.mubr.bf16.gmra.mrb[36].mxu1 %v2821_v12  ;;  %v2488_v12 = vld [vmem:[#allocation5 + $0x60] ss:$8 sps:$4 sm:$0xff]  }
 0x15e   :  { %863 = vmatprep.mubr.bf16.mxu1 %v2674_v61  ;;  %1661 = vmatpush1.bf16.msra.mxu1 %v2464_v44 }
 0x15f   :  { %1662 = vmatprep.subr.bf16.mxu1 %v2472_v45 }
 0x162   :  { %1663 = vmatpush1.bf16.msra.mxu1 %v2470_v46 }
 0x163   :  { %1664 = vmatprep.subr.bf16.mxu1 %v2478_v47 }
 0x165   :  { %864 = vmatmul.mubr.bf16.gmra.mrb[40].mxu1 %v2835_v34  ;;  %v2494_v34 = vld [vmem:[#allocation5 + $0x70] ss:$8 sps:$4 sm:$0xff]  }
 0x166   :  { %873 = vmatprep.mubr.bf16.mxu1 %v2674_v61  ;;  %1665 = vmatpush1.bf16.msra.mxu1 %v2476_v14 }
 0x167   :  { %1666 = vmatprep.subr.bf16.mxu1 %v2484_v48 }
 0x16a   :  { %1667 = vmatpush1.bf16.msra.mxu1 %v2482_v49 }
 0x16b   :  { %1668 = vmatprep.subr.bf16.mxu1 %v2490_v50 }
 0x16d   :  { %874 = vmatmul.mubr.bf16.gmra.mrb[44].mxu1 %v2833_v33  ;;  %v2506_v33 = vld [vmem:[#allocation5 + $0x90] ss:$8 sps:$4 sm:$0xff]  }
 0x16e   :  { %883 = vmatprep.mubr.bf16.mxu1 %v2674_v61  ;;  %1669 = vmatpush1.bf16.msra.mxu1 %v2488_v12  ;;  %v2548_v12 = vld [vmem:[#allocation5 + $0x200] ss:$8 sps:$4 sm:$0xff]  }
 0x16f   :  { %1670 = vmatprep.subr.bf16.mxu1 %v2496_v53 }
 0x172   :  { %1671 = vmatpush1.bf16.msra.mxu1 %v2494_v34 }
 0x173   :  { %1672 = vmatprep.subr.bf16.mxu1 %v2502_v58 }
 0x175   :  { %884 = vmatmul.mubr.bf16.gmra.mrb[48].mxu1 %v2847_v56  ;;  %v2524_v56 = vld [vmem:[#allocation5 + $0xc0] ss:$8 sps:$4 sm:$0xff]  }
 0x176   :  { %893 = vmatprep.mubr.bf16.mxu1 %v2674_v61  ;;  %1673 = vmatpush1.bf16.msra.mxu1 %v2500_v60 }
 0x177   :  { %1674 = vmatprep.subr.bf16.mxu1 %v2508_v63 }
 0x17a   :  { %1675 = vmatpush1.bf16.msra.mxu1 %v2506_v33 }
 0x17b   :  { %1676 = vmatprep.subr.bf16.mxu1 %v2514_v0 }
 0x17d   :  { %894 = vmatmul.mubr.bf16.gmra.mrb[52].mxu1 %v2845_v55  ;;  %v2536_v55 = vld [vmem:[#allocation5 + $0xe0] ss:$8 sps:$4 sm:$0xff]  }
 0x17e   :  { %903 = vmatprep.mubr.bf16.mxu1 %v2674_v61  ;;  %1677 = vmatpush1.bf16.msra.mxu1 %v2512_v1 }
 0x17f   :  { %1678 = vmatprep.subr.bf16.mxu1 %v2520_v2 }
 0x182   :  { %1679 = vmatpush1.bf16.msra.mxu1 %v2518_v3 }
 0x183   :  { %1680 = vmatprep.subr.bf16.mxu1 %v2526_v4 }
 0x185   :  { %904 = vmatmul.mubr.bf16.gmra.mrb[56].mxu1 %v2859_v18 }
 0x186   :  { %913 = vmatprep.mubr.bf16.mxu1 %v2674_v61  ;;  %1681 = vmatpush1.bf16.msra.mxu1 %v2524_v56  ;;  %v317_v61 = vsub.s32 0, %v2895_v11  ;;  %v2551_v56 = vld [vmem:[#allocation5 + $0x210] ss:$8 sps:$4 sm:$0xff]  }
 0x187   :  { %1682 = vmatprep.subr.bf16.mxu1 %v2532_v5 }
 0x188   :  { %v2909_v18 = vrot.slane %v2902_v15, %v317_v61 }
 0x18a   :  { %1683 = vmatpush1.bf16.msra.mxu1 %v2530_v6 }
 0x18b   :  { %1684 = vmatprep.subr.bf16.mxu1 %v2538_v7 }
 0x18d   :  { %914 = vmatmul.mubr.bf16.gmra.mrb[60].mxu1 %v2857_v17  ;;  %v329_v17 = vsub.s32 3, %v2895_v11 }
 0x18e   :  { %1685 = vmatpush1.bf16.msra.mxu1 %v2536_v55 }
 0x18f   :  { %1686 = vmatprep.subr.bf16.mxu1 %v2544_v8  ;;  %v2920_v21 = vrot.slane %v2902_v15, %v329_v17  ;;  %v2556_v8 = vld [vmem:[#allocation5 + $0x224] ss:$8 sps:$4 sm:$0xff]  }
 0x192   :  { %1687 = vmatpush1.bf16.msra.mxu1 %v2542_v9 }
 0x193   :  { %2238 = vmatprep.subr.bf16.mxu1 %v2550_v59 }
 0x1e8   :  { %v619_v62 = vpop.f32.mrb[0].mxu1  ;;  %v732_v22 = vpop.f32.mrb[16].mxu0 }
 0x1e9   :  { %v620_v23 = vadd.f32 %v619_v62, %v2909_v18  ;;  %v733_v24 = vadd.f32 %v732_v22, %v2912_v19  ;;  %v621_v25 = vpop.f32.mrb[1].mxu1  ;;  %v734_v26 = vpop.f32.mrb[17].mxu0 }
 0x1ea   :  { %v622_v27 = vadd.f32 %v621_v25, %v2917_v20  ;;  %v735_v28 = vadd.f32 %v734_v26, %v2920_v21  ;;  %v623_v29 = vpop.f32.mrb[2].mxu1  ;;  %v736_v30 = vpop.f32.mrb[18].mxu0 }
 0x1eb   :  { %v624_v31 = vadd.f32 %v623_v29, %v2909_v18  ;;  %v737_v32 = vadd.f32 %v736_v30, %v2912_v19  ;;  %v625_v35 = vpop.f32.mrb[3].mxu1  ;;  %v738_v36 = vpop.f32.mrb[19].mxu0  ;;  %v924_v39 = vmax.f32 %v620_v23, 0.0  ;;  %v926_v40 = vmax.f32 %v733_v24, 0.0 }
 0x1ec   :  { %v626_v37 = vadd.f32 %v625_v35, %v2917_v20  ;;  %v739_v38 = vadd.f32 %v738_v36, %v2920_v21  ;;  %v925_v43 = vmax.f32 %v622_v27, 0.0  ;;  %v927_v44 = vmax.f32 %v735_v28, 0.0  ;;  %v2554_v27 = vld [vmem:[#allocation5 + $0x220] ss:$8 sps:$4 sm:$0xff]  }
 0x1ed   :  { %v930_v41 = vmax.f32 %v624_v31, 0.0  ;;  %v932_v42 = vmax.f32 %v737_v32, 0.0  ;;  %v2559_v32 = vld [vmem:[#allocation5 + $0x234] ss:$8 sps:$4 sm:$0xff]  }
 0x1ee   :  { %v931_v45 = vmax.f32 %v626_v37, 0.0  ;;  %v933_v46 = vmax.f32 %v739_v38, 0.0 }
 0x1ef   :  { %v1020_v47 = vpack.c.bf16 %v930_v41, %v924_v39  ;;  %v1022_v14 = vpack.c.bf16 %v932_v42, %v926_v40 }
 0x1f0   :  { %v1021_v48 = vpack.c.bf16 %v931_v45, %v925_v43  ;;  %v1023_v49 = vpack.c.bf16 %v933_v46, %v927_v44  ;;  %v629_v50 = vpop.f32.mrb[4].mxu1  ;;  %v742_v51 = vpop.f32.mrb[20].mxu0  ;;  %v2557_v45 = vld [vmem:[#allocation5 + $0x230] ss:$8 sps:$4 sm:$0xff]  }
 0x1f1   :  { %v630_v52 = vadd.f32 %v629_v50, %v2909_v18  ;;  %v743_v53 = vadd.f32 %v742_v51, %v2912_v19  ;;  %v631_v54 = vpop.f32.mrb[5].mxu1  ;;  %v744_v34 = vpop.f32.mrb[21].mxu0 }
 0x1f2   :  { %v632_v58 = vadd.f32 %v631_v54, %v2917_v20  ;;  %v745_v59 = vadd.f32 %v744_v34, %v2920_v21  ;;  %v633_v60 = vpop.f32.mrb[6].mxu1  ;;  %v746_v63 = vpop.f32.mrb[22].mxu0  ;;  %1688 = vmatprep.mubr.bf16.mxu1 %v1021_v48  ;;  %1801 = vmatprep.mubr.bf16.mxu0 %v1023_v49  ;;  %v2562_v49 = vld [vmem:[#allocation5 + $0x244] ss:$8 sps:$4 sm:$0xff]  }
 0x1f3   :  { %v634_v33 = vadd.f32 %v633_v60, %v2909_v18  ;;  %v747_v0 = vadd.f32 %v746_v63, %v2912_v19  ;;  %v635_v1 = vpop.f32.mrb[7].mxu1  ;;  %v748_v2 = vpop.f32.mrb[23].mxu0  ;;  %1689 = vmatmul.mubr.bf16.vlgmr.msra.gmra.mrb[64].mxu1 %v1020_v47  ;;  %1802 = vmatmul.mubr.bf16.vlgmr.msra.gmra.mrb[48].mxu0 %v1022_v14  ;;  %v936_v5 = vmax.f32 %v630_v52, 0.0  ;;  %v938_v6 = vmax.f32 %v743_v53, 0.0  ;;  %v2560_v60 = vld [vmem:[#allocation5 + $0x240] ss:$8 sps:$4 sm:$0xff]  }
 0x1f4   :  { %v636_v3 = vadd.f32 %v635_v1, %v2917_v20  ;;  %v749_v4 = vadd.f32 %v748_v2, %v2920_v21  ;;  %1883 = vmatpush1.bf16.msra.mxu0 %v2548_v12  ;;  %2254 = vmatpush1.bf16.msra.mxu1 %v2548_v12  ;;  %v937_v9 = vmax.f32 %v632_v58, 0.0  ;;  %v939_v10 = vmax.f32 %v745_v59, 0.0  ;;  %v2565_v2 = vld [vmem:[#allocation5 + $0x254] ss:$8 sps:$4 sm:$0xff]  }
 0x1f5   :  { %v942_v7 = vmax.f32 %v634_v33, 0.0  ;;  %v944_v55 = vmax.f32 %v747_v0, 0.0  ;;  %1884 = vmatprep.subr.bf16.mxu0 %v2553_v57  ;;  %2239 = vmatprep.subr.bf16.mxu1 %v2553_v57 }
 0x1f6   :  { %v943_v13 = vmax.f32 %v636_v3, 0.0  ;;  %v945_v17 = vmax.f32 %v749_v4, 0.0 }
 0x1f7   :  { %v1026_v62 = vpack.c.bf16 %v942_v7, %v936_v5  ;;  %v1028_v22 = vpack.c.bf16 %v944_v55, %v938_v6 }
 0x1f8   :  { %v1027_v23 = vpack.c.bf16 %v943_v13, %v937_v9  ;;  %v1029_v24 = vpack.c.bf16 %v945_v17, %v939_v10  ;;  %v639_v25 = vpop.f32.mrb[8].mxu1  ;;  %v752_v26 = vpop.f32.mrb[24].mxu0  ;;  %1885 = vmatpush1.bf16.msra.mxu0 %v2551_v56  ;;  %2255 = vmatpush1.bf16.msra.mxu1 %v2551_v56  ;;  %v2563_v13 = vld [vmem:[#allocation5 + $0x250] ss:$8 sps:$4 sm:$0xff]  }
 0x1f9   :  { %v640_v28 = vadd.f32 %v639_v25, %v2909_v18  ;;  %v753_v29 = vadd.f32 %v752_v26, %v2912_v19  ;;  %v641_v30 = vpop.f32.mrb[9].mxu1  ;;  %v754_v31 = vpop.f32.mrb[25].mxu0  ;;  %1886 = vmatprep.subr.bf16.mxu0 %v2556_v8  ;;  %2240 = vmatprep.subr.bf16.mxu1 %v2556_v8 }
 0x1fa   :  { %v642_v35 = vadd.f32 %v641_v30, %v2917_v20  ;;  %v755_v36 = vadd.f32 %v754_v31, %v2920_v21  ;;  %v643_v37 = vpop.f32.mrb[10].mxu1  ;;  %v756_v38 = vpop.f32.mrb[26].mxu0  ;;  %1698 = vmatprep.mubr.bf16.mxu1 %v1027_v23  ;;  %1811 = vmatprep.mubr.bf16.mxu0 %v1029_v24  ;;  %v2568_v24 = vld [vmem:[#allocation5 + $0x264] ss:$8 sps:$4 sm:$0xff]  }
 0x1fb   :  { %v644_v39 = vadd.f32 %v643_v37, %v2909_v18  ;;  %v757_v40 = vadd.f32 %v756_v38, %v2912_v19  ;;  %v645_v41 = vpop.f32.mrb[11].mxu1  ;;  %v758_v42 = vpop.f32.mrb[27].mxu0  ;;  %1699 = vmatmul.mubr.bf16.gmra.mrb[68].mxu1 %v1026_v62  ;;  %1812 = vmatmul.mubr.bf16.gmra.mrb[52].mxu0 %v1028_v22  ;;  %v948_v46 = vmax.f32 %v640_v28, 0.0  ;;  %v950_v47 = vmax.f32 %v753_v29, 0.0  ;;  %v2566_v37 = vld [vmem:[#allocation5 + $0x260] ss:$8 sps:$4 sm:$0xff]  }
 0x1fc   :  { %v646_v43 = vadd.f32 %v645_v41, %v2917_v20  ;;  %v759_v44 = vadd.f32 %v758_v42, %v2920_v21  ;;  %1887 = vmatpush1.bf16.msra.mxu0 %v2554_v27  ;;  %2256 = vmatpush1.bf16.msra.mxu1 %v2554_v27  ;;  %v949_v50 = vmax.f32 %v642_v35, 0.0  ;;  %v951_v51 = vmax.f32 %v755_v36, 0.0  ;;  %v2571_v42 = vld [vmem:[#allocation5 + $0x274] ss:$8 sps:$4 sm:$0xff]  }
 0x1fd   :  { %v954_v14 = vmax.f32 %v644_v39, 0.0  ;;  %v956_v48 = vmax.f32 %v757_v40, 0.0  ;;  %1888 = vmatprep.subr.bf16.mxu0 %v2559_v32  ;;  %2241 = vmatprep.subr.bf16.mxu1 %v2559_v32 }
 0x1fe   :  { %v955_v12 = vmax.f32 %v646_v43, 0.0  ;;  %v957_v52 = vmax.f32 %v759_v44, 0.0 }
 0x1ff   :  { %v1032_v53 = vpack.c.bf16 %v954_v14, %v948_v46  ;;  %v1034_v54 = vpack.c.bf16 %v956_v48, %v950_v47 }
 0x200   :  { %v1033_v34 = vpack.c.bf16 %v955_v12, %v949_v50  ;;  %v1035_v57 = vpack.c.bf16 %v957_v52, %v951_v51  ;;  %v649_v58 = vpop.f32.mrb[12].mxu1  ;;  %v762_v59 = vpop.f32.mrb[28].mxu0  ;;  %1889 = vmatpush1.bf16.msra.mxu0 %v2557_v45  ;;  %2257 = vmatpush1.bf16.msra.mxu1 %v2557_v45  ;;  %v2569_v12 = vld [vmem:[#allocation5 + $0x270] ss:$8 sps:$4 sm:$0xff]  }
 0x201   :  { %v650_v63 = vadd.f32 %v649_v58, %v2909_v18  ;;  %v763_v33 = vadd.f32 %v762_v59, %v2912_v19  ;;  %v651_v0 = vpop.f32.mrb[13].mxu1  ;;  %v764_v1 = vpop.f32.mrb[29].mxu0  ;;  %1890 = vmatprep.subr.bf16.mxu0 %v2562_v49  ;;  %2242 = vmatprep.subr.bf16.mxu1 %v2562_v49 }
 0x202   :  { %v652_v3 = vadd.f32 %v651_v0, %v2917_v20  ;;  %v765_v4 = vadd.f32 %v764_v1, %v2920_v21  ;;  %v653_v56 = vpop.f32.mrb[14].mxu1  ;;  %v766_v5 = vpop.f32.mrb[30].mxu0  ;;  %1708 = vmatprep.mubr.bf16.mxu1 %v1033_v34  ;;  %1821 = vmatprep.mubr.bf16.mxu0 %v1035_v57  ;;  %v2574_v57 = vld [vmem:[#allocation5 + $0x284] ss:$8 sps:$4 sm:$0xff]  }
 0x203   :  { %v654_v6 = vadd.f32 %v653_v56, %v2909_v18  ;;  %v767_v7 = vadd.f32 %v766_v5, %v2912_v19  ;;  %v655_v55 = vpop.f32.mrb[15].mxu1  ;;  %v768_v8 = vpop.f32.mrb[31].mxu0  ;;  %1709 = vmatmul.mubr.bf16.gmra.mrb[72].mxu1 %v1032_v53  ;;  %1822 = vmatmul.mubr.bf16.gmra.mrb[56].mxu0 %v1034_v54  ;;  %v960_v17 = vmax.f32 %v650_v63, 0.0  ;;  %v962_v62 = vmax.f32 %v763_v33, 0.0  ;;  %v2572_v56 = vld [vmem:[#allocation5 + $0x280] ss:$8 sps:$4 sm:$0xff]  }
 0x204   :  { %v656_v9 = vadd.f32 %v655_v55, %v2917_v20  ;;  %v769_v10 = vadd.f32 %v768_v8, %v2920_v21  ;;  %1891 = vmatpush1.bf16.msra.mxu0 %v2560_v60  ;;  %2258 = vmatpush1.bf16.msra.mxu1 %v2560_v60  ;;  %v961_v25 = vmax.f32 %v652_v3, 0.0  ;;  %v963_v26 = vmax.f32 %v765_v4, 0.0  ;;  %v2577_v8 = vld [vmem:[#allocation5 + $0x294] ss:$8 sps:$4 sm:$0xff]  }
 0x205   :  { %v966_v22 = vmax.f32 %v654_v6, 0.0  ;;  %v968_v23 = vmax.f32 %v767_v7, 0.0  ;;  %1892 = vmatprep.subr.bf16.mxu0 %v2565_v2  ;;  %2243 = vmatprep.subr.bf16.mxu1 %v2565_v2 }
 0x206   :  { %v967_v27 = vmax.f32 %v656_v9, 0.0  ;;  %v969_v28 = vmax.f32 %v769_v10, 0.0 }
 0x207   :  { %v1038_v29 = vpack.c.bf16 %v966_v22, %v960_v17  ;;  %v1040_v30 = vpack.c.bf16 %v968_v23, %v962_v62 }
 0x208   :  { %v1039_v31 = vpack.c.bf16 %v967_v27, %v961_v25  ;;  %v1041_v32 = vpack.c.bf16 %v969_v28, %v963_v26  ;;  %v659_v35 = vpop.f32.mrb[16].mxu1  ;;  %v772_v36 = vpop.f32.mrb[32].mxu0  ;;  %1893 = vmatpush1.bf16.msra.mxu0 %v2563_v13  ;;  %2259 = vmatpush1.bf16.msra.mxu1 %v2563_v13  ;;  %v2575_v27 = vld [vmem:[#allocation5 + $0x290] ss:$8 sps:$4 sm:$0xff]  }
 0x209   :  { %v660_v38 = vadd.f32 %v659_v35, %v2909_v18  ;;  %v773_v39 = vadd.f32 %v772_v36, %v2912_v19  ;;  %v661_v40 = vpop.f32.mrb[17].mxu1  ;;  %v774_v41 = vpop.f32.mrb[33].mxu0  ;;  %1894 = vmatprep.subr.bf16.mxu0 %v2568_v24  ;;  %2244 = vmatprep.subr.bf16.mxu1 %v2568_v24 }
 0x20a   :  { %v662_v43 = vadd.f32 %v661_v40, %v2917_v20  ;;  %v775_v44 = vadd.f32 %v774_v41, %v2920_v21  ;;  %v663_v45 = vpop.f32.mrb[18].mxu1  ;;  %v776_v46 = vpop.f32.mrb[34].mxu0  ;;  %1718 = vmatprep.mubr.bf16.mxu1 %v1039_v31  ;;  %1831 = vmatprep.mubr.bf16.mxu0 %v1041_v32  ;;  %v2580_v32 = vld [vmem:[#allocation5 + $0x2a4] ss:$8 sps:$4 sm:$0xff]  }
 0x20b   :  { %v664_v47 = vadd.f32 %v663_v45, %v2909_v18  ;;  %v777_v14 = vadd.f32 %v776_v46, %v2912_v19  ;;  %v665_v48 = vpop.f32.mrb[19].mxu1  ;;  %v778_v49 = vpop.f32.mrb[35].mxu0  ;;  %1719 = vmatmul.mubr.bf16.gmra.mrb[76].mxu1 %v1038_v29  ;;  %1832 = vmatmul.mubr.bf16.gmra.mrb[60].mxu0 %v1040_v30  ;;  %v972_v52 = vmax.f32 %v660_v38, 0.0  ;;  %v974_v53 = vmax.f32 %v773_v39, 0.0  ;;  %v2578_v45 = vld [vmem:[#allocation5 + $0x2a0] ss:$8 sps:$4 sm:$0xff]  }
 0x20c   :  { %v666_v50 = vadd.f32 %v665_v48, %v2917_v20  ;;  %v779_v51 = vadd.f32 %v778_v49, %v2920_v21  ;;  %1895 = vmatpush1.bf16.msra.mxu0 %v2566_v37  ;;  %2260 = vmatpush1.bf16.msra.mxu1 %v2566_v37  ;;  %v973_v58 = vmax.f32 %v662_v43, 0.0  ;;  %v975_v59 = vmax.f32 %v775_v44, 0.0  ;;  %v2583_v49 = vld [vmem:[#allocation5 + $0x2b4] ss:$8 sps:$4 sm:$0xff]  }
 0x20d   :  { %v978_v54 = vmax.f32 %v664_v47, 0.0  ;;  %v980_v34 = vmax.f32 %v777_v14, 0.0  ;;  %1896 = vmatprep.subr.bf16.mxu0 %v2571_v42  ;;  %2245 = vmatprep.subr.bf16.mxu1 %v2571_v42 }
 0x20e   :  { %v979_v60 = vmax.f32 %v666_v50, 0.0  ;;  %v981_v63 = vmax.f32 %v779_v51, 0.0 }
 0x20f   :  { %v1044_v33 = vpack.c.bf16 %v978_v54, %v972_v52  ;;  %v1046_v0 = vpack.c.bf16 %v980_v34, %v974_v53 }
 0x210   :  { %v1045_v1 = vpack.c.bf16 %v979_v60, %v973_v58  ;;  %v1047_v2 = vpack.c.bf16 %v981_v63, %v975_v59  ;;  %v669_v3 = vpop.f32.mrb[20].mxu1  ;;  %v782_v4 = vpop.f32.mrb[36].mxu0  ;;  %1897 = vmatpush1.bf16.msra.mxu0 %v2569_v12  ;;  %2261 = vmatpush1.bf16.msra.mxu1 %v2569_v12  ;;  %v2581_v60 = vld [vmem:[#allocation5 + $0x2b0] ss:$8 sps:$4 sm:$0xff]  }
 0x211   :  { %v670_v5 = vadd.f32 %v669_v3, %v2909_v18  ;;  %v783_v6 = vadd.f32 %v782_v4, %v2912_v19  ;;  %v671_v7 = vpop.f32.mrb[21].mxu1  ;;  %v784_v55 = vpop.f32.mrb[37].mxu0  ;;  %1898 = vmatprep.subr.bf16.mxu0 %v2574_v57  ;;  %2246 = vmatprep.subr.bf16.mxu1 %v2574_v57 }
 0x212   :  { %v672_v9 = vadd.f32 %v671_v7, %v2917_v20  ;;  %v785_v10 = vadd.f32 %v784_v55, %v2920_v21  ;;  %v673_v13 = vpop.f32.mrb[22].mxu1  ;;  %v786_v17 = vpop.f32.mrb[38].mxu0  ;;  %1728 = vmatprep.mubr.bf16.mxu1 %v1045_v1  ;;  %1841 = vmatprep.mubr.bf16.mxu0 %v1047_v2  ;;  %v2586_v2 = vld [vmem:[#allocation5 + $0x2c4] ss:$8 sps:$4 sm:$0xff]   ;;  %v333_v55 = vsub.s32 4, %v2895_v11 }
 0x213   :  { %v674_v62 = vadd.f32 %v673_v13, %v2909_v18  ;;  %v787_v22 = vadd.f32 %v786_v17, %v2912_v19  ;;  %v675_v23 = vpop.f32.mrb[23].mxu1  ;;  %v788_v24 = vpop.f32.mrb[39].mxu0  ;;  %1729 = vmatmul.mubr.bf16.gmra.mrb[80].mxu1 %v1044_v33  ;;  %1842 = vmatmul.mubr.bf16.gmra.mrb[64].mxu0 %v1046_v0  ;;  %v984_v28 = vmax.f32 %v670_v5, 0.0  ;;  %v986_v29 = vmax.f32 %v783_v6, 0.0  ;;  %v2584_v17 = vld [vmem:[#allocation5 + $0x2c0] ss:$8 sps:$4 sm:$0xff]  }
 0x214   :  { %v676_v25 = vadd.f32 %v675_v23, %v2917_v20  ;;  %v789_v26 = vadd.f32 %v788_v24, %v2920_v21  ;;  %1899 = vmatpush1.bf16.msra.mxu0 %v2572_v56  ;;  %2262 = vmatpush1.bf16.msra.mxu1 %v2572_v56  ;;  %v985_v35 = vmax.f32 %v672_v9, 0.0  ;;  %v987_v36 = vmax.f32 %v785_v10, 0.0 }
 0x215   :  { %v990_v30 = vmax.f32 %v674_v62, 0.0  ;;  %v992_v31 = vmax.f32 %v787_v22, 0.0  ;;  %1900 = vmatprep.subr.bf16.mxu0 %v2577_v8  ;;  %2247 = vmatprep.subr.bf16.mxu1 %v2577_v8  ;;  %v337_v62 = vsub.s32 5, %v2895_v11 }
 0x216   :  { %v991_v37 = vmax.f32 %v676_v25, 0.0  ;;  %v993_v38 = vmax.f32 %v789_v26, 0.0  ;;  %v2589_v26 = vld [vmem:[#allocation5 + $0x2d4] ss:$8 sps:$4 sm:$0xff]  }
 0x217   :  { %v1050_v39 = vpack.c.bf16 %v990_v30, %v984_v28  ;;  %v1052_v40 = vpack.c.bf16 %v992_v31, %v986_v29 }
 0x218   :  { %v1051_v41 = vpack.c.bf16 %v991_v37, %v985_v35  ;;  %v1053_v42 = vpack.c.bf16 %v993_v38, %v987_v36  ;;  %v679_v43 = vpop.f32.mrb[24].mxu1  ;;  %v792_v44 = vpop.f32.mrb[40].mxu0  ;;  %1901 = vmatpush1.bf16.msra.mxu0 %v2575_v27  ;;  %2263 = vmatpush1.bf16.msra.mxu1 %v2575_v27  ;;  %v2987_v37 = vrot.slane %v2902_v15, %v333_v55 }
 0x219   :  { %v680_v46 = vadd.f32 %v679_v43, %v2909_v18  ;;  %v793_v47 = vadd.f32 %v792_v44, %v2912_v19  ;;  %v681_v14 = vpop.f32.mrb[25].mxu1  ;;  %v794_v48 = vpop.f32.mrb[41].mxu0  ;;  %1902 = vmatprep.subr.bf16.mxu0 %v2580_v32  ;;  %2248 = vmatprep.subr.bf16.mxu1 %v2580_v32  ;;  %v2592_v44 = vld [vmem:[#allocation5 + $0x2e4] ss:$8 sps:$4 sm:$0xff]  }
 0x21a   :  { %v682_v50 = vadd.f32 %v681_v14, %v2917_v20  ;;  %v795_v51 = vadd.f32 %v794_v48, %v2920_v21  ;;  %v683_v12 = vpop.f32.mrb[26].mxu1  ;;  %v796_v52 = vpop.f32.mrb[42].mxu0  ;;  %1738 = vmatprep.mubr.bf16.mxu1 %v1051_v41  ;;  %1851 = vmatprep.mubr.bf16.mxu0 %v1053_v42  ;;  %v2992_v41 = vrot.slane %v2902_v15, %v337_v62  ;;  %v2590_v15 = vld [vmem:[#allocation5 + $0x2e0] ss:$8 sps:$4 sm:$0xff]  }
 0x21b   :  { %v684_v53 = vadd.f32 %v683_v12, %v2909_v18  ;;  %v797_v54 = vadd.f32 %v796_v52, %v2912_v19  ;;  %v685_v34 = vpop.f32.mrb[27].mxu1  ;;  %v798_v57 = vpop.f32.mrb[43].mxu0  ;;  %1739 = vmatmul.mubr.bf16.gmra.mrb[84].mxu1 %v1050_v39  ;;  %1852 = vmatmul.mubr.bf16.gmra.mrb[68].mxu0 %v1052_v40  ;;  %v996_v63 = vmax.f32 %v680_v46, 0.0  ;;  %v998_v33 = vmax.f32 %v793_v47, 0.0  ;;  %v2587_v40 = vld [vmem:[#allocation5 + $0x2d0] ss:$8 sps:$4 sm:$0xff]  }
 0x21c   :  { %v686_v58 = vadd.f32 %v685_v34, %v2917_v20  ;;  %v799_v59 = vadd.f32 %v798_v57, %v2920_v21  ;;  %1903 = vmatpush1.bf16.msra.mxu0 %v2578_v45  ;;  %2264 = vmatpush1.bf16.msra.mxu1 %v2578_v45  ;;  %v997_v3 = vmax.f32 %v682_v50, 0.0  ;;  %v999_v4 = vmax.f32 %v795_v51, 0.0  ;;  %v2595_v52 = vld [vmem:[#allocation5 + $0x2f4] ss:$8 sps:$4 sm:$0xff]  }
 0x21d   :  { %v1002_v0 = vmax.f32 %v684_v53, 0.0  ;;  %v1004_v1 = vmax.f32 %v797_v54, 0.0  ;;  %1904 = vmatprep.subr.bf16.mxu0 %v2583_v49  ;;  %2249 = vmatprep.subr.bf16.mxu1 %v2583_v49 }
 0x21e   :  { %v1003_v56 = vmax.f32 %v686_v58, 0.0  ;;  %v1005_v5 = vmax.f32 %v799_v59, 0.0  ;;  %v2593_v59 = vld [vmem:[#allocation5 + $0x2f0] ss:$8 sps:$4 sm:$0xff]  }
 0x21f   :  { %v1056_v6 = vpack.c.bf16 %v1002_v0, %v996_v63  ;;  %v1058_v7 = vpack.c.bf16 %v1004_v1, %v998_v33 }
 0x220   :  { %v1057_v8 = vpack.c.bf16 %v1003_v56, %v997_v3  ;;  %v1059_v9 = vpack.c.bf16 %v1005_v5, %v999_v4  ;;  %v689_v10 = vpop.f32.mrb[28].mxu1  ;;  %v802_v13 = vpop.f32.mrb[44].mxu0  ;;  %1905 = vmatpush1.bf16.msra.mxu0 %v2581_v60  ;;  %2265 = vmatpush1.bf16.msra.mxu1 %v2581_v60 }
 0x221   :  { %v690_v22 = vadd.f32 %v689_v10, %v2909_v18  ;;  %v803_v23 = vadd.f32 %v802_v13, %v2912_v19  ;;  %v691_v24 = vpop.f32.mrb[29].mxu1  ;;  %v804_v25 = vpop.f32.mrb[45].mxu0  ;;  %1906 = vmatprep.subr.bf16.mxu0 %v2586_v2  ;;  %2250 = vmatprep.subr.bf16.mxu1 %v2586_v2 }
 0x222   :  { %v692_v27 = vadd.f32 %v691_v24, %v2917_v20  ;;  %v805_v28 = vadd.f32 %v804_v25, %v2920_v21  ;;  %v693_v29 = vpop.f32.mrb[30].mxu1  ;;  %v806_v30 = vpop.f32.mrb[46].mxu0  ;;  %1748 = vmatprep.mubr.bf16.mxu1 %v1057_v8  ;;  %1861 = vmatprep.mubr.bf16.mxu0 %v1059_v9 }
 0x223   :  { %v694_v31 = vadd.f32 %v693_v29, %v2909_v18  ;;  %v807_v32 = vadd.f32 %v806_v30, %v2912_v19  ;;  %v695_v35 = vpop.f32.mrb[31].mxu1  ;;  %v808_v36 = vpop.f32.mrb[47].mxu0  ;;  %1749 = vmatmul.mubr.bf16.gmra.mrb[88].mxu1 %v1056_v6  ;;  %1862 = vmatmul.mubr.bf16.gmra.mrb[72].mxu0 %v1058_v7  ;;  %v1008_v18 = vmax.f32 %v690_v22, 0.0  ;;  %v1010_v42 = vmax.f32 %v803_v23, 0.0 }
 0x224   :  { %v696_v38 = vadd.f32 %v695_v35, %v2917_v20  ;;  %v809_v39 = vadd.f32 %v808_v36, %v2920_v21  ;;  %1907 = vmatpush1.bf16.msra.mxu0 %v2584_v17  ;;  %2266 = vmatpush1.bf16.msra.mxu1 %v2584_v17  ;;  %v1009_v45 = vmax.f32 %v692_v27, 0.0  ;;  %v1011_v46 = vmax.f32 %v805_v28, 0.0 }
 0x225   :  { %v1014_v19 = vmax.f32 %v694_v31, 0.0  ;;  %v1016_v43 = vmax.f32 %v807_v32, 0.0  ;;  %1908 = vmatprep.subr.bf16.mxu0 %v2589_v26  ;;  %2251 = vmatprep.subr.bf16.mxu1 %v2589_v26 }
 0x226   :  { %v1015_v47 = vmax.f32 %v696_v38, 0.0  ;;  %v1017_v14 = vmax.f32 %v809_v39, 0.0 }
 0x227   :  { %v1062_v20 = vpack.c.bf16 %v1014_v19, %v1008_v18  ;;  %v1064_v48 = vpack.c.bf16 %v1016_v43, %v1010_v42 }
 0x228   :  { %v1063_v21 = vpack.c.bf16 %v1015_v47, %v1009_v45  ;;  %v1065_v49 = vpack.c.bf16 %v1017_v14, %v1011_v46  ;;  %v845_v50 = vpop.f32.mrb[32].mxu1  ;;  %1909 = vmatpush1.bf16.msra.mxu0 %v2587_v40  ;;  %2267 = vmatpush1.bf16.msra.mxu1 %v2587_v40 }
 0x229   :  { %v846_v51 = vadd.f32 %v845_v50, %v2987_v37  ;;  %v847_v12 = vpop.f32.mrb[33].mxu1  ;;  %1910 = vmatprep.subr.bf16.mxu0 %v2592_v44  ;;  %2252 = vmatprep.subr.bf16.mxu1 %v2592_v44 }
 0x22a   :  { %v848_v53 = vadd.f32 %v847_v12, %v2992_v41  ;;  %v849_v54 = vpop.f32.mrb[34].mxu1  ;;  %1758 = vmatprep.mubr.bf16.mxu1 %v1063_v21  ;;  %1871 = vmatprep.mubr.bf16.mxu0 %v1065_v49 }
 0x22b   :  { %v850_v34 = vadd.f32 %v849_v54, %v2987_v37  ;;  %v851_v57 = vpop.f32.mrb[35].mxu1  ;;  %1759 = vmatmul.mubr.bf16.gmra.mrb[92].mxu1 %v1062_v20  ;;  %1872 = vmatmul.mubr.bf16.gmra.mrb[76].mxu0 %v1064_v48  ;;  %v928_v60 = vmax.f32 %v846_v51, 0.0 }
 0x22c   :  { %v852_v58 = vadd.f32 %v851_v57, %v2992_v41  ;;  %1911 = vmatpush1.bf16.msra.mxu0 %v2590_v15  ;;  %2268 = vmatpush1.bf16.msra.mxu1 %v2590_v15  ;;  %v929_v33 = vmax.f32 %v848_v53, 0.0 }
 0x22d   :  { %v934_v63 = vmax.f32 %v850_v34, 0.0  ;;  %1912 = vmatprep.subr.bf16.mxu0 %v2595_v52  ;;  %2253 = vmatprep.subr.bf16.mxu1 %v2595_v52 }
 0x22e   :  { %v935_v0 = vmax.f32 %v852_v58, 0.0 }
 0x22f   :  { %v1024_v1 = vpack.c.bf16 %v934_v63, %v928_v60 }
 0x230   :  { %v1025_v2 = vpack.c.bf16 %v935_v0, %v929_v33  ;;  %v855_v3 = vpop.f32.mrb[36].mxu1  ;;  %1913 = vmatpush1.bf16.msra.mxu0 %v2593_v59  ;;  %2269 = vmatpush1.bf16.msra.mxu1 %v2593_v59 }
 0x231   :  { %v856_v4 = vadd.f32 %v855_v3, %v2987_v37  ;;  %v857_v56 = vpop.f32.mrb[37].mxu1 }
 0x232   :  { %v858_v5 = vadd.f32 %v857_v56, %v2992_v41  ;;  %v859_v6 = vpop.f32.mrb[38].mxu1  ;;  %1914 = vmatprep.mubr.bf16.mxu0 %v1025_v2 }
 0x233   :  { %v860_v7 = vadd.f32 %v859_v6, %v2987_v37  ;;  %v861_v55 = vpop.f32.mrb[39].mxu1  ;;  %1915 = vmatmul.mubr.bf16.vlgmr.msra.gmra.mrb[48].mxu0 %v1024_v1  ;;  %v940_v9 = vmax.f32 %v856_v4, 0.0 }
 0x234   :  { %v862_v8 = vadd.f32 %v861_v55, %v2992_v41  ;;  %v941_v13 = vmax.f32 %v858_v5, 0.0 }
 0x235   :  { %v946_v10 = vmax.f32 %v860_v7, 0.0 }
 0x236   :  { %v947_v17 = vmax.f32 %v862_v8, 0.0 }
 0x237   :  { %v1030_v62 = vpack.c.bf16 %v946_v10, %v940_v9 }
 0x238   :  { %v1031_v22 = vpack.c.bf16 %v947_v17, %v941_v13  ;;  %v865_v23 = vpop.f32.mrb[40].mxu1 }
 0x239   :  { %v866_v24 = vadd.f32 %v865_v23, %v2987_v37  ;;  %v867_v25 = vpop.f32.mrb[41].mxu1 }
 0x23a   :  { %v868_v26 = vadd.f32 %v867_v25, %v2992_v41  ;;  %v869_v27 = vpop.f32.mrb[42].mxu1  ;;  %1924 = vmatprep.mubr.bf16.mxu0 %v1031_v22 }
 0x23b   :  { %v870_v28 = vadd.f32 %v869_v27, %v2987_v37  ;;  %v871_v29 = vpop.f32.mrb[43].mxu1  ;;  %1925 = vmatmul.mubr.bf16.gmra.mrb[52].mxu0 %v1030_v62  ;;  %v952_v31 = vmax.f32 %v866_v24, 0.0 }
 0x23c   :  { %v872_v30 = vadd.f32 %v871_v29, %v2992_v41  ;;  %v953_v35 = vmax.f32 %v868_v26, 0.0 }
 0x23d   :  { %v958_v32 = vmax.f32 %v870_v28, 0.0 }
 0x23e   :  { %v959_v36 = vmax.f32 %v872_v30, 0.0 }
 0x23f   :  { %v1036_v38 = vpack.c.bf16 %v958_v32, %v952_v31 }
 0x240   :  { %v1037_v39 = vpack.c.bf16 %v959_v36, %v953_v35  ;;  %v875_v40 = vpop.f32.mrb[44].mxu1 }
 0x241   :  { %v876_v18 = vadd.f32 %v875_v40, %v2987_v37  ;;  %v877_v42 = vpop.f32.mrb[45].mxu1 }
 0x242   :  { %v878_v19 = vadd.f32 %v877_v42, %v2992_v41  ;;  %v879_v43 = vpop.f32.mrb[46].mxu1  ;;  %1934 = vmatprep.mubr.bf16.mxu0 %v1037_v39 }
 0x243   :  { %v880_v44 = vadd.f32 %v879_v43, %v2987_v37  ;;  %v881_v45 = vpop.f32.mrb[47].mxu1  ;;  %1935 = vmatmul.mubr.bf16.gmra.mrb[56].mxu0 %v1036_v38  ;;  %v964_v47 = vmax.f32 %v876_v18, 0.0 }
 0x244   :  { %v882_v46 = vadd.f32 %v881_v45, %v2992_v41  ;;  %v965_v20 = vmax.f32 %v878_v19, 0.0 }
 0x245   :  { %v970_v14 = vmax.f32 %v880_v44, 0.0 }
 0x246   :  { %v971_v48 = vmax.f32 %v882_v46, 0.0 }
 0x247   :  { %v1042_v21 = vpack.c.bf16 %v970_v14, %v964_v47 }
 0x248   :  { %v1043_v49 = vpack.c.bf16 %v971_v48, %v965_v20  ;;  %v885_v50 = vpop.f32.mrb[48].mxu1 }
 0x249   :  { %v886_v15 = vadd.f32 %v885_v50, %v2987_v37  ;;  %v887_v51 = vpop.f32.mrb[49].mxu1 }
 0x24a   :  { %v888_v12 = vadd.f32 %v887_v51, %v2992_v41  ;;  %v889_v52 = vpop.f32.mrb[50].mxu1  ;;  %1944 = vmatprep.mubr.bf16.mxu0 %v1043_v49 }
 0x24b   :  { %v890_v53 = vadd.f32 %v889_v52, %v2987_v37  ;;  %v891_v54 = vpop.f32.mrb[51].mxu1  ;;  %1945 = vmatmul.mubr.bf16.gmra.mrb[60].mxu0 %v1042_v21  ;;  %v976_v57 = vmax.f32 %v886_v15, 0.0 }
 0x24c   :  { %v892_v34 = vadd.f32 %v891_v54, %v2992_v41  ;;  %v977_v59 = vmax.f32 %v888_v12, 0.0 }
 0x24d   :  { %v982_v58 = vmax.f32 %v890_v53, 0.0 }
 0x24e   :  { %v983_v60 = vmax.f32 %v892_v34, 0.0 }
 0x24f   :  { %v1048_v63 = vpack.c.bf16 %v982_v58, %v976_v57 }
 0x250   :  { %v1049_v33 = vpack.c.bf16 %v983_v60, %v977_v59  ;;  %v895_v0 = vpop.f32.mrb[52].mxu1 }
 0x251   :  { %v896_v1 = vadd.f32 %v895_v0, %v2987_v37  ;;  %v897_v2 = vpop.f32.mrb[53].mxu1 }
 0x252   :  { %v898_v3 = vadd.f32 %v897_v2, %v2992_v41  ;;  %v899_v4 = vpop.f32.mrb[54].mxu1  ;;  %1954 = vmatprep.mubr.bf16.mxu0 %v1049_v33 }
 0x253   :  { %v900_v56 = vadd.f32 %v899_v4, %v2987_v37  ;;  %v901_v5 = vpop.f32.mrb[55].mxu1  ;;  %1955 = vmatmul.mubr.bf16.gmra.mrb[64].mxu0 %v1048_v63  ;;  %v988_v7 = vmax.f32 %v896_v1, 0.0 }
 0x254   :  { %v902_v6 = vadd.f32 %v901_v5, %v2992_v41  ;;  %v989_v8 = vmax.f32 %v898_v3, 0.0 }
 0x255   :  { %v994_v55 = vmax.f32 %v900_v56, 0.0 }
 0x256   :  { %v995_v9 = vmax.f32 %v902_v6, 0.0 }
 0x257   :  { %v1054_v10 = vpack.c.bf16 %v994_v55, %v988_v7  ;;  %v1164_v55 = vld [vmem:[%s3159_s6] sm:$0x3]  ;;  %s2675_s6 = smov [#allocation7]  }
 0x258   :  { %v1055_v13 = vpack.c.bf16 %v995_v9, %v989_v8  ;;  %v905_v17 = vpop.f32.mrb[56].mxu1  ;;  %v3071_v8 = vrot.slane %v1164_v55, %v317_v61  ;;  %v3075_v9 = vrot.slane %v1164_v55, %v321_v16  ;;  %s2032_s21 = sshll.u32 %s2675_s6, 4  ;;  %s2033_s21 = int_to_ptr.vmem [resolvable:$true] %s2032_s21 }
 0x259   :  { %v906_v62 = vadd.f32 %v905_v17, %v2987_v37  ;;  %v907_v22 = vpop.f32.mrb[57].mxu1  ;;  %s2640_s22 = scalar_lea.vmem %s2033_s21, 4096  ;;  %p2645_p3 = scmp.lt.s32.totalorder %s2033_s21, %s2033_s21 }
 0x25a   :  { %v908_v23 = vadd.f32 %v907_v22, %v2992_v41  ;;  %v909_v24 = vpop.f32.mrb[58].mxu1  ;;  %1964 = vmatprep.mubr.bf16.mxu0 %v1055_v13  ;;  %p2641_p2 = scmp.ne.s32.totalorder %s2033_s21, %s2640_s22  ;;  %p2646_p4 = scmp.lt.s32.totalorder %s2640_s22, %s2640_s22 }
 0x25b   :  { %v910_v25 = vadd.f32 %v909_v24, %v2987_v37  ;;  %v911_v26 = vpop.f32.mrb[59].mxu1  ;;  %1965 = vmatmul.mubr.bf16.gmra.mrb[68].mxu0 %v1054_v10  ;;  %v1000_v28 = vmax.f32 %v906_v62, 0.0 }
 0x25c   :  { %v912_v27 = vadd.f32 %v911_v26, %v2992_v41  ;;  %v1001_v30 = vmax.f32 %v908_v23, 0.0  ;;  %p2647_p5 = por %p2646_p4, %p2645_p3 }
 0x25d   :  { %v1006_v29 = vmax.f32 %v910_v25, 0.0 }
 0x25e   :  { %v1007_v31 = vmax.f32 %v912_v27, 0.0  ;;  %p2648_p6 = pnand %p2647_p5, %p2641_p2 }
 0x25f   :  { %v1060_v32 = vpack.c.bf16 %v1006_v29, %v1000_v28 }
 0x260   :  { %v1061_v35 = vpack.c.bf16 %v1007_v31, %v1001_v30  ;;  %v915_v36 = vpop.f32.mrb[60].mxu1 }
 0x261   :  { %v916_v38 = vadd.f32 %v915_v36, %v2987_v37  ;;  %v917_v39 = vpop.f32.mrb[61].mxu1 }
 0x262   :  { %v918_v40 = vadd.f32 %v917_v39, %v2992_v41  ;;  %v919_v18 = vpop.f32.mrb[62].mxu1  ;;  %1974 = vmatprep.mubr.bf16.mxu0 %v1061_v35 }
 0x263   :  { %v920_v42 = vadd.f32 %v919_v18, %v2987_v37  ;;  %v921_v19 = vpop.f32.mrb[63].mxu1  ;;  %1975 = vmatmul.mubr.bf16.gmra.mrb[72].mxu0 %v1060_v32  ;;  %v1012_v44 = vmax.f32 %v916_v38, 0.0 }
 0x264   :  { %v922_v43 = vadd.f32 %v921_v19, %v2992_v41  ;;  %v1013_v46 = vmax.f32 %v918_v40, 0.0 }
 0x265   :  { %v1018_v45 = vmax.f32 %v920_v42, 0.0 }
 0x266   :  { %v1019_v47 = vmax.f32 %v922_v43, 0.0 }
 0x267   :  { %v1066_v14 = vpack.c.bf16 %v1018_v45, %v1012_v44 }
 0x268   :  { %v1067_v20 = vpack.c.bf16 %v1019_v47, %v1013_v46 }
 0x26a   :  { %1984 = vmatprep.mubr.bf16.mxu1 %v1067_v20 }
 0x26b   :  { %1985 = vmatmul.mubr.bf16.vlgmr.msra.gmra.mrb[96].mxu1 %v1066_v14 }
 0x2c6   :  { %v1690_v48 = vpop.f32.mrb[64].mxu1 }
 0x2c7   :  { %v1692_v21 = vpop.f32.mrb[65].mxu1  ;;  %v1691_v31 = vadd.f32 %v1690_v48, %v3071_v8 }
 0x2c8   :  { %v1694_v49 = vpop.f32.mrb[66].mxu1  ;;  %v1693_v32 = vadd.f32 %v1692_v21, %v3075_v9 }
 0x2c9   :  { %v1696_v50 = vpop.f32.mrb[67].mxu1  ;;  %v1695_v36 = vadd.f32 %v1694_v49, %v3071_v8 }
 0x2ca   :  { %v1697_v40 = vadd.f32 %v1696_v50, %v3075_v9 }
 0x2ce   :  { %v1700_v15 = vpop.f32.mrb[68].mxu1 }
 0x2cf   :  { %v1702_v51 = vpop.f32.mrb[69].mxu1  ;;  %v1701_v45 = vadd.f32 %v1700_v15, %v3071_v8 }
 0x2d0   :  { %v1704_v12 = vpop.f32.mrb[70].mxu1  ;;  %v1703_v46 = vadd.f32 %v1702_v51, %v3075_v9 }
 0x2d1   :  { %v1706_v37 = vpop.f32.mrb[71].mxu1  ;;  %v1705_v14 = vadd.f32 %v1704_v12, %v3071_v8 }
 0x2d2   :  { %v1707_v21 = vadd.f32 %v1706_v37, %v3075_v9 }
 0x2d6   :  { %v3026_v52 = vpop.f32.mrb[72].mxu1 }
 0x2d7   :  { %v3028_v53 = vpop.f32.mrb[73].mxu1  ;;  %v1711_v15 = vadd.f32 %v3026_v52, %v3071_v8 }
 0x2d8   :  { %v3030_v41 = vpop.f32.mrb[74].mxu1  ;;  %v1713_v51 = vadd.f32 %v3028_v53, %v3075_v9 }
 0x2d9   :  { %v3032_v54 = vpop.f32.mrb[75].mxu1 }
 0x2de   :  { %v3034_v34 = vpop.f32.mrb[76].mxu1 }
 0x2df   :  { %v3036_v57 = vpop.f32.mrb[77].mxu1  ;;  %v1721_v52 = vadd.f32 %v3034_v34, %v3071_v8 }
 0x2e0   :  { %v3038_v58 = vpop.f32.mrb[78].mxu1  ;;  %v1723_v53 = vadd.f32 %v3036_v57, %v3075_v9 }
 0x2e1   :  { %v3040_v59 = vpop.f32.mrb[79].mxu1 }
 0x2e6   :  { %v3042_v60 = vpop.f32.mrb[80].mxu1 }
 0x2e7   :  { %v3044_v63 = vpop.f32.mrb[81].mxu1  ;;  %v1731_v34 = vadd.f32 %v3042_v60, %v3071_v8 }
 0x2e8   :  { %v3046_v33 = vpop.f32.mrb[82].mxu1  ;;  %v1733_v57 = vadd.f32 %v3044_v63, %v3075_v9 }
 0x2e9   :  { %v3048_v0 = vpop.f32.mrb[83].mxu1 }
 0x2ee   :  { %v3050_v1 = vpop.f32.mrb[84].mxu1 }
 0x2ef   :  { %v3052_v2 = vpop.f32.mrb[85].mxu1  ;;  %v1741_v60 = vadd.f32 %v3050_v1, %v3071_v8 }
 0x2f0   :  { %v3054_v3 = vpop.f32.mrb[86].mxu1  ;;  %v1743_v63 = vadd.f32 %v3052_v2, %v3075_v9 }
 0x2f1   :  { %v3056_v4 = vpop.f32.mrb[87].mxu1 }
 0x2f6   :  { %v3058_v56 = vpop.f32.mrb[88].mxu1 }
 0x2f7   :  { %v3060_v5 = vpop.f32.mrb[89].mxu1  ;;  %v1751_v1 = vadd.f32 %v3058_v56, %v3071_v8 }
 0x2f8   :  { %v3062_v6 = vpop.f32.mrb[90].mxu1  ;;  %v1753_v2 = vadd.f32 %v3060_v5, %v3075_v9 }
 0x2f9   :  { %v3064_v7 = vpop.f32.mrb[91].mxu1 }
 0x2fe   :  { %v1760_v10 = vpop.f32.mrb[92].mxu1  ;;  %v1873_v13 = vpop.f32.mrb[76].mxu0 }
 0x2ff   :  { %v1761_v17 = vadd.f32 %v1760_v10, %v3071_v8  ;;  %v1762_v62 = vpop.f32.mrb[93].mxu1  ;;  %v1875_v22 = vpop.f32.mrb[77].mxu0 }
 0x300   :  { %v1763_v23 = vadd.f32 %v1762_v62, %v3075_v9  ;;  %v1764_v24 = vpop.f32.mrb[94].mxu1  ;;  %v1877_v25 = vpop.f32.mrb[78].mxu0 }
 0x301   :  { %v3079_v26 = vadd.f32 %v1873_v13, %v1761_v17  ;;  %v1765_v27 = vadd.f32 %v1764_v24, %v3071_v8  ;;  %v1766_v61 = vpop.f32.mrb[95].mxu1  ;;  %v1879_v28 = vpop.f32.mrb[79].mxu0  ;;  %v1715_v17 = vadd.f32 %v3030_v41, %v3071_v8 }
 0x302   :  { %v3082_v29 = vadd.f32 %v1875_v22, %v1763_v23  ;;  %v1767_v11 = vadd.f32 %v1766_v61, %v3075_v9  ;;  %v1717_v22 = vadd.f32 %v3032_v54, %v3075_v9 }
 0x303   :  { %v3085_v16 = vadd.f32 %v1877_v25, %v1765_v27 }
 0x304   :  { %v3087_v30 = vadd.f32 %v1879_v28, %v1767_v11  ;;  %v1725_v28 = vadd.f32 %v3038_v58, %v3071_v8 }
 0x306   :  { %v1916_v35 = vpop.f32.mrb[48].mxu0 }
 0x307   :  { %v2271_v38 = vadd.f32 %v1916_v35, %v1691_v31  ;;  %v1918_v39 = vpop.f32.mrb[49].mxu0  ;;  %v1727_v31 = vadd.f32 %v3040_v59, %v3075_v9 }
 0x308   :  { %v2273_v18 = vadd.f32 %v1918_v39, %v1693_v32  ;;  %v1920_v42 = vpop.f32.mrb[50].mxu0 }
 0x309   :  { %1995 = vst [vmem:[#allocation7] sm:$0xff] %v2271_v38  ;;  %v2275_v19 = vadd.f32 %v1920_v42, %v1695_v36  ;;  %v1922_v43 = vpop.f32.mrb[51].mxu0  ;;  %v1737_v42 = vadd.f32 %v3048_v0, %v3075_v9 }
 0x30a   :  { %1996 = vst [vmem:[#allocation7 + $0x8] sm:$0xff] %v2273_v18  ;;  %v2277_v44 = vadd.f32 %v1922_v43, %v1697_v40  ;;  %v1735_v40 = vadd.f32 %v3046_v33, %v3071_v8 }
 0x30b   :  { %1997 = vst [vmem:[#allocation7 + $0x10] sm:$0xff] %v2275_v19 }
 0x30c   :  { %1998 = vst [vmem:[#allocation7 + $0x18] sm:$0xff] %v2277_v44 }
 0x30e   :  { %v1926_v47 = vpop.f32.mrb[52].mxu0 }
 0x30f   :  { %v2279_v20 = vadd.f32 %v1926_v47, %v1701_v45  ;;  %v1928_v48 = vpop.f32.mrb[53].mxu0  ;;  %v1745_v47 = vadd.f32 %v3054_v3, %v3071_v8 }
 0x310   :  { %v2281_v49 = vadd.f32 %v1928_v48, %v1703_v46  ;;  %v1930_v50 = vpop.f32.mrb[54].mxu0 }
 0x311   :  { %1999 = vst [vmem:[#allocation7 + $0x20] sm:$0xff] %v2279_v20  ;;  %v2283_v55 = vadd.f32 %v1930_v50, %v1705_v14  ;;  %v1932_v10 = vpop.f32.mrb[55].mxu0  ;;  %v1747_v20 = vadd.f32 %v3056_v4, %v3075_v9 }
 0x312   :  { %2000 = vst [vmem:[#allocation7 + $0x28] sm:$0xff] %v2281_v49  ;;  %v2285_v13 = vadd.f32 %v1932_v10, %v1707_v21  ;;  %v1755_v10 = vadd.f32 %v3062_v6, %v3071_v8 }
 0x313   :  { %2001 = vst [vmem:[#allocation7 + $0x30] sm:$0xff] %v2283_v55 }
 0x314   :  { %2002 = vst [vmem:[#allocation7 + $0x38] sm:$0xff] %v2285_v13 }
 0x316   :  { %v1936_v12 = vpop.f32.mrb[56].mxu0 }
 0x317   :  { %v2287_v37 = vadd.f32 %v1936_v12, %v1711_v15  ;;  %v1938_v62 = vpop.f32.mrb[57].mxu0  ;;  %v1757_v15 = vadd.f32 %v3064_v7, %v3075_v9 }
 0x318   :  { %v2289_v23 = vadd.f32 %v1938_v62, %v1713_v51  ;;  %v1940_v24 = vpop.f32.mrb[58].mxu0 }
 0x319   :  { %2003 = vst [vmem:[#allocation7 + $0x40] sm:$0xff] %v2287_v37  ;;  %v2291_v25 = vadd.f32 %v1940_v24, %v1715_v17  ;;  %v1942_v27 = vpop.f32.mrb[59].mxu0 }
 0x31a   :  { %2004 = vst [vmem:[#allocation7 + $0x48] sm:$0xff] %v2289_v23  ;;  %v2293_v61 = vadd.f32 %v1942_v27, %v1717_v22 }
 0x31b   :  { %2005 = vst [vmem:[#allocation7 + $0x50] sm:$0xff] %v2291_v25 }
 0x31c   :  { %2006 = vst [vmem:[#allocation7 + $0x58] sm:$0xff] %v2293_v61 }
 0x31e   :  { %v1946_v41 = vpop.f32.mrb[60].mxu0 }
 0x31f   :  { %v2295_v54 = vadd.f32 %v1946_v41, %v1721_v52  ;;  %v1948_v11 = vpop.f32.mrb[61].mxu0 }
 0x320   :  { %v2297_v32 = vadd.f32 %v1948_v11, %v1723_v53  ;;  %v1950_v35 = vpop.f32.mrb[62].mxu0 }
 0x321   :  { %2007 = vst [vmem:[#allocation7 + $0x60] sm:$0xff] %v2295_v54  ;;  %v2299_v36 = vadd.f32 %v1950_v35, %v1725_v28  ;;  %v1952_v38 = vpop.f32.mrb[63].mxu0 }
 0x322   :  { %2008 = vst [vmem:[#allocation7 + $0x68] sm:$0xff] %v2297_v32  ;;  %v2301_v39 = vadd.f32 %v1952_v38, %v1727_v31 }
 0x323   :  { %2009 = vst [vmem:[#allocation7 + $0x70] sm:$0xff] %v2299_v36 }
 0x324   :  { %2010 = vst [vmem:[#allocation7 + $0x78] sm:$0xff] %v2301_v39 }
 0x326   :  { %v1956_v58 = vpop.f32.mrb[64].mxu0 }
 0x327   :  { %v2303_v59 = vadd.f32 %v1956_v58, %v1731_v34  ;;  %v1958_v18 = vpop.f32.mrb[65].mxu0 }
 0x328   :  { %v2305_v19 = vadd.f32 %v1958_v18, %v1733_v57  ;;  %v1960_v43 = vpop.f32.mrb[66].mxu0 }
 0x329   :  { %2011 = vst [vmem:[#allocation7 + $0x80] sm:$0xff] %v2303_v59  ;;  %v2307_v44 = vadd.f32 %v1960_v43, %v1735_v40  ;;  %v1962_v45 = vpop.f32.mrb[67].mxu0 }
 0x32a   :  { %2012 = vst [vmem:[#allocation7 + $0x88] sm:$0xff] %v2305_v19  ;;  %v2309_v46 = vadd.f32 %v1962_v45, %v1737_v42 }
 0x32b   :  { %2013 = vst [vmem:[#allocation7 + $0x90] sm:$0xff] %v2307_v44 }
 0x32c   :  { %2014 = vst [vmem:[#allocation7 + $0x98] sm:$0xff] %v2309_v46 }
 0x32e   :  { %v1966_v33 = vpop.f32.mrb[68].mxu0 }
 0x32f   :  { %v2311_v0 = vadd.f32 %v1966_v33, %v1741_v60  ;;  %v1968_v14 = vpop.f32.mrb[69].mxu0 }
 0x330   :  { %v2313_v48 = vadd.f32 %v1968_v14, %v1743_v63  ;;  %v1970_v21 = vpop.f32.mrb[70].mxu0 }
 0x331   :  { %2015 = vst [vmem:[#allocation7 + $0xa0] sm:$0xff] %v2311_v0  ;;  %v2315_v49 = vadd.f32 %v1970_v21, %v1745_v47  ;;  %v1972_v50 = vpop.f32.mrb[71].mxu0 }
 0x332   :  { %2016 = vst [vmem:[#allocation7 + $0xa8] sm:$0xff] %v2313_v48  ;;  %v2317_v55 = vadd.f32 %v1972_v50, %v1747_v20 }
 0x333   :  { %2017 = vst [vmem:[#allocation7 + $0xb0] sm:$0xff] %v2315_v49 }
 0x334   :  { %2018 = vst [vmem:[#allocation7 + $0xb8] sm:$0xff] %v2317_v55 }
 0x336   :  { %v1976_v3 = vpop.f32.mrb[72].mxu0 }
 0x337   :  { %v2319_v4 = vadd.f32 %v1976_v3, %v1751_v1  ;;  %v1978_v13 = vpop.f32.mrb[73].mxu0 }
 0x338   :  { %v2321_v51 = vadd.f32 %v1978_v13, %v1753_v2  ;;  %v1980_v12 = vpop.f32.mrb[74].mxu0 }
 0x339   :  { %2019 = vst [vmem:[#allocation7 + $0xc0] sm:$0xff] %v2319_v4  ;;  %v2323_v17 = vadd.f32 %v1980_v12, %v1755_v10  ;;  %v1982_v37 = vpop.f32.mrb[75].mxu0 }
 0x33a   :  { %2020 = vst [vmem:[#allocation7 + $0xc8] sm:$0xff] %v2321_v51  ;;  %v2325_v62 = vadd.f32 %v1982_v37, %v1757_v15 }
 0x33b   :  { %2021 = vst [vmem:[#allocation7 + $0xd0] sm:$0xff] %v2323_v17 }
 0x33c   :  { %2022 = vst [vmem:[#allocation7 + $0xd8] sm:$0xff] %v2325_v62 }
 0x33e   :  { %v1986_v56 = vpop.f32.mrb[96].mxu1 }
 0x33f   :  { %v1987_v5 = vadd.f32 %v1986_v56, %v3079_v26  ;;  %v1988_v6 = vpop.f32.mrb[97].mxu1 }
 0x340   :  { %v1989_v8 = vadd.f32 %v1988_v6, %v3082_v29  ;;  %v1990_v22 = vpop.f32.mrb[98].mxu1 }
 0x341   :  { %2023 = vst [vmem:[#allocation7 + $0xe0] sm:$0xff] %v1987_v5  ;;  %v1991_v7 = vadd.f32 %v1990_v22, %v3085_v16  ;;  %v1992_v9 = vpop.f32.mrb[99].mxu1 }
 0x342   :  { %2024 = vst [vmem:[#allocation7 + $0xe8] sm:$0xff] %v1989_v8  ;;  %v1993_v23 = vadd.f32 %v1992_v9, %v3087_v30 }
 0x343   :  { %2025 = vst [vmem:[#allocation7 + $0xf0] sm:$0xff] %v1991_v7 }
 0x344   :  { %2026 = vst [vmem:[#allocation7 + $0xf8] sm:$0xff] %v1993_v23 }
 0x345   :  { %2651 = shalt.err (!%p2648_p6)
}
 0x346   :  { %s2652_s24 = scalar_lea.hbm %s3160_s7, 4096 }
 0x347   :  { %p2653_p7 = scmp.ne.s32.totalorder %s3160_s7, %s2652_s24  ;;  %p2656_p8 = scmp.lt.u32.totalorder %s2652_s24, %s3160_s7 }
 0x349   :  { %p2658_p9 = pnand %p2656_p8, %p2653_p7 }
 0x34b   :  { %2661 = shalt.err (!%p2658_p9)
}
 0x34c   :  { %s2676_s28 = smov 256   ;;  %s2677_s29 = smov 16  }
 0x34d   :  { %2038 = dma.vmem_to_hbm [thread:$0]  %s2033_s21, 4096, %s3160_s7, [#allocation4], %s2676_s28, %s2676_s28, %s2677_s29  }
 0x34e   :  { %2666 = dma.done.wait [#allocation4], 4096  }
 0x34f   :  { %2667 = vsyncadd [#allocation4], 4294963200 }
 0x350   :  { %2042 = vsyncpa [#allocation3], 1 }
 0x351   :  { %2043 = vsyncpa [#allocation6], 1 }
 0x352   :  { %2044 = vsyncpa [#allocation4], 1 }

</bundles_post_ra>
